<compile_context>
chip_gen: v7x
topology: tpu7x:2x2x1
jax: 0.10.0
libtpu: 0.0.40
codegen_flags: <defaults>
</compile_context>

<pallas_src>
import jax
import jax.numpy as jnp
from jax.experimental import pallas as pl
from jax.experimental.pallas import tpu as pltpu


def convblock_kernel(cols_ref, w1_ref, w2_ref, b2_ref, out_ref, y1g_ref):
    """One grid step: b_blk images of conv3x3+ReLU -> conv3x3 -> pool -> +b2, ReLU.

    cols_ref : (b_blk, R1p, K1) bf16  im2col of the padded conv1 grid; K1 = 9*Cin+1,
                                      last column is 1 on valid grid positions and 0
                                      on the halo ring / alignment-tail rows.
    w1_ref   : (K1, Cp)   bf16        conv1 taps stacked along K, bias in the last row.
    w2_ref   : (9, Cp, Cp) bf16       conv2 taps (kh*3 + kw major).
    b2_ref   : (1, Cp)    f32         conv2 bias (applied after the pool).
    out_ref  : (b_blk, H2, half, Cp) bf16  pooled output; column half-1 is garbage
                                           (wrap-around columns, dropped by wrapper).
    y1g_ref  : (R1p, Cp)  bf16 scratch conv1 activation staged on the padded flat grid.
    """
    b_blk, H2, half, Cp = out_ref.shape
    Wg = 2 * half                       # staged grid row width (= W + 2, even)
    H = 2 * H2
    R2 = H * Wg                         # conv2 output rows (flat)
    b2 = b2_ref[...]                    # (1, Cp) f32, hoisted once per step

    for i in range(b_blk):
        # ---- conv1: single im2col matmul; bias + halo mask ride the ones column.
        # relu(0) = 0 on halo / tail rows == exactly conv2's zero padding, and the
        # full-ref store also (re)zeroes the over-read tail every step.
        y1 = jnp.dot(cols_ref[i], w1_ref[...], preferred_element_type=jnp.float32)
        y1g_ref[...] = jnp.maximum(y1, 0.0).astype(y1g_ref.dtype)

        # ---- conv2: 9 flat-shifted taps, K = Cp per tap; accumulator = tap 0's dot.
        acc = jnp.dot(y1g_ref[pl.ds(0, R2), :], w2_ref[0],
                      preferred_element_type=jnp.float32)
        for t in range(1, 9):
            kh, kw = divmod(t, 3)
            acc = acc + jnp.dot(y1g_ref[pl.ds(kh * Wg + kw, R2), :], w2_ref[t],
                                preferred_element_type=jnp.float32)

        # ---- 2x2 stride-2 max-pool on the raw accumulator.  conv2's bias + ReLU
        # commute with max, so they run on the 4x smaller pooled tile.  Wg is even,
        # so (2j, 2j+1) column pairs never straddle a flat row boundary.
        wmax = jnp.max(acc.reshape(R2 // 2, 2, Cp), axis=1)       # pool along W
        hmax = jnp.max(wmax.reshape(H2, 2, half, Cp), axis=1)     # pool along H
        out_ref[i] = jnp.maximum(hmax + b2[None, :, :], 0.0).astype(out_ref.dtype)


def conv_block_forward(x_nchw, w1, b1, w2, b2, b_blk=None):
    """PyTorch-semantics forward of ConvBlock(in_ch, out_ch).  w1/w2 are HWIO."""
    N, Cin, H, W = x_nchw.shape
    Cout = w1.shape[-1]
    assert H % 2 == 0 and W % 2 == 0, "MaxPool2d(2,2) needs even H, W"
    assert w1.shape == (3, 3, Cin, Cout) and w2.shape == (3, 3, Cout, Cout)
    H2, W2 = H // 2, W // 2

    LANE = 128
    Cp = ((Cout + LANE - 1) // LANE) * LANE      # lane-dense channel width
    Hg, Wg = H + 2, W + 2                        # staged conv1-output grid (1-px halo)
    half = Wg // 2
    R1 = Hg * Wg
    R1p = ((R1 + 2 + 7) // 8) * 8                # covers conv2's +2-row over-read, 8-aligned
    K1 = 9 * Cin + 1

    if b_blk is None:                            # amortize ~0.35us per-grid-step overhead
        b_blk = max(1, min(N // 8, 8)) if H * W <= 96 * 96 else 1
        while N % b_blk:
            b_blk -= 1
    assert N % b_blk == 0

    # ---- wrapper-side im2col over the (Hg, Wg) staged grid (cheap: Cin is tiny) ----
    x = jnp.transpose(x_nchw, (0, 2, 3, 1))                         # NHWC
    xp = jnp.pad(x, ((0, 0), (2, 2), (2, 2), (0, 0)))               # 2-px halo
    taps = [xp[:, kh:kh + Hg, kw:kw + Wg, :]
            for kh in range(3) for kw in range(3)]
    cols = jnp.concatenate(taps, axis=-1)                           # (N, Hg, Wg, 9*Cin)
    ih = jnp.arange(Hg)[:, None]
    iw = jnp.arange(Wg)[None, :]
    valid = ((ih >= 1) & (ih <= H) & (iw >= 1) & (iw <= W)).astype(cols.dtype)
    cols = cols * valid[None, :, :, None]                           # zero the halo ring
    ones = jnp.broadcast_to(valid[None, :, :, None], (N, Hg, Wg, 1))
    cols = jnp.concatenate([cols, ones], axis=-1)                   # bias/mask column
    cols = cols.reshape(N, R1, K1)
    cols = jnp.pad(cols, ((0, 0), (0, R1p - R1), (0, 0))).astype(jnp.bfloat16)

    # ---- weights: conv1 taps + bias stacked along K; channels zero-padded to Cp ----
    w1m = jnp.concatenate([w1.astype(jnp.float32).reshape(9 * Cin, Cout),
                           b1.astype(jnp.float32).reshape(1, Cout)], axis=0)
    w1m = jnp.pad(w1m, ((0, 0), (0, Cp - Cout))).astype(jnp.bfloat16)      # (K1, Cp)
    w2r = jnp.pad(w2.astype(jnp.float32).reshape(9, Cout, Cout),
                  ((0, 0), (0, Cp - Cout), (0, Cp - Cout))).astype(jnp.bfloat16)
    b2r = jnp.pad(b2.astype(jnp.float32), (0, Cp - Cout)).reshape(1, Cp)

    out = pl.pallas_call(
        convblock_kernel,
        out_shape=jax.ShapeDtypeStruct((N, H2, half, Cp), jnp.bfloat16),
        grid=(N // b_blk,),
        in_specs=[
            pl.BlockSpec((b_blk, R1p, K1), lambda n: (n, 0, 0)),    # per-step im2col
            pl.BlockSpec((K1, Cp), lambda n: (0, 0)),               # conv1 weights+bias
            pl.BlockSpec((9, Cp, Cp), lambda n: (0, 0, 0)),         # conv2 weights
            pl.BlockSpec((1, Cp), lambda n: (0, 0)),                # conv2 bias
        ],
        out_specs=pl.BlockSpec((b_blk, H2, half, Cp), lambda n: (n, 0, 0, 0)),
        scratch_shapes=[pltpu.VMEM((R1p, Cp), jnp.bfloat16)],
        compiler_params=pltpu.CompilerParams(
            dimension_semantics=("parallel",)),
    )(cols, w1m, w2r, b2r)

    # drop the garbage pool column + padded channels; back to PyTorch's NCHW f32.
    out = out[:, :, :W2, :Cout].astype(jnp.float32)
    return jnp.transpose(out, (0, 3, 1, 2))


def reference_forward(x_nchw, w1, b1, w2, b2):
    """Pure-JAX reference matching nn.Conv2d(pad=1)/ReLU/MaxPool2d(2,2) semantics."""
    def conv_relu(x, w, b):
        y = jax.lax.conv_general_dilated(
            x, w, window_strides=(1, 1), padding="SAME",
            dimension_numbers=("NCHW", "HWIO", "NCHW"))
        return jax.nn.relu(y + b[None, :, None, None])

    y = conv_relu(x_nchw, w1, b1)
    y = conv_relu(y, w2, b2)
    return jax.lax.reduce_window(y, -jnp.inf, jax.lax.max,
                                 (1, 1, 2, 2), (1, 1, 2, 2), "VALID")


if __name__ == "__main__":
    # ConvBlock(in_channels=4, out_channels=8, num_convs=2, pool_kernel=2)
    N, Cin, Cout, H, W = 2, 4, 8, 16, 16

    key = jax.random.PRNGKey(0)
    kx, kw1, kb1, kw2, kb2 = jax.random.split(key, 5)
    x = jax.random.normal(kx, (N, Cin, H, W), jnp.float32)
    w1 = 0.1 * jax.random.normal(kw1, (3, 3, Cin, Cout), jnp.float32)   # HWIO
    b1 = 0.05 * jax.random.normal(kb1, (Cout,), jnp.float32)
    w2 = 0.1 * jax.random.normal(kw2, (3, 3, Cout, Cout), jnp.float32)  # HWIO
    b2 = 0.05 * jax.random.normal(kb2, (Cout,), jnp.float32)

    out = jax.jit(conv_block_forward)(x, w1, b1, w2, b2)
    out = jax.block_until_ready(out)
    assert out.shape == (N, Cout, H // 2, W // 2), out.shape

    # matched-precision reference: the kernel runs the MXU path (and the y1
    # staging / bias row / pooled output) in bf16, so round the operands too.
    f32 = jnp.float32
    xq = x.astype(jnp.bfloat16).astype(f32)
    w1q = w1.astype(jnp.bfloat16).astype(f32)
    b1q = b1.astype(jnp.bfloat16).astype(f32)
    w2q = w2.astype(jnp.bfloat16).astype(f32)
    ref = jax.block_until_ready(reference_forward(xq, w1q, b1q, w2q, b2))
    err = float(jnp.max(jnp.abs(out - ref)))
    assert jnp.allclose(out, ref, atol=2e-2, rtol=2e-2), err

    print("KERNEL_OK")
</pallas_src>

<mosaic_0001>
module attributes {stable_mosaic.version = 11 : i64} {
  func.func @convblock_kernel(%arg0: i32, %arg1: memref<1x328x37xbf16, #tpu.memory_space<vmem>>, %arg2: memref<37x128xbf16, #tpu.memory_space<vmem>>, %arg3: memref<9x128x128xbf16, #tpu.memory_space<vmem>>, %arg4: memref<1x128xf32, #tpu.memory_space<vmem>>, %arg5: memref<1x8x9x128xbf16, #tpu.memory_space<vmem>>, %arg6: memref<328x128xbf16, #tpu.memory_space<vmem>>) attributes {dimension_semantics = [#tpu.dimension_semantics<parallel>], iteration_bounds = array<i64: 2>, scalar_prefetch = 0 : i64, scratch_operands = 1 : i64, tpu.core_type = #tpu.core_type<tc>, window_params = [{transform_indices = @transform_0, window_bounds = array<i64: 1, 328, 37>}, {pipeline_mode = #tpu.pipeline_mode<synchronous>, transform_indices = @transform_1, window_bounds = array<i64: 37, 128>}, {pipeline_mode = #tpu.pipeline_mode<synchronous>, transform_indices = @transform_2, window_bounds = array<i64: 9, 128, 128>}, {pipeline_mode = #tpu.pipeline_mode<synchronous>, transform_indices = @transform_3, window_bounds = array<i64: 1, 128>}, {transform_indices = @transform_4, window_bounds = array<i64: 1, 8, 9, 128>}]} {
    %c0 = arith.constant 0 : index
    %c0_0 = arith.constant 0 : index
    %0 = vector.load %arg4[%c0, %c0_0] : memref<1x128xf32, #tpu.memory_space<vmem>>, vector<1x128xf32>
    %c0_1 = arith.constant 0 : index
    %c0_2 = arith.constant 0 : index
    %c0_3 = arith.constant 0 : index
    %1 = vector.load %arg1[%c0_1, %c0_2, %c0_3] : memref<1x328x37xbf16, #tpu.memory_space<vmem>>, vector<1x328x37xbf16>
    %2 = vector.shape_cast %1 : vector<1x328x37xbf16> to vector<328x37xbf16>
    %c0_4 = arith.constant 0 : index
    %c0_5 = arith.constant 0 : index
    %3 = vector.load %arg2[%c0_4, %c0_5] : memref<37x128xbf16, #tpu.memory_space<vmem>>, vector<37x128xbf16>
    %cst = arith.constant dense<0.000000e+00> : vector<328x128xf32>
    %4 = tpu.matmul %2, %3, %cst {dimension_numbers = #tpu.dot_dimension_numbers<[1], [0], [0], [1], [0, 0, 1, 1], [], []>} : vector<328x37xbf16>, vector<37x128xbf16>, vector<328x128xf32> -> vector<328x128xf32>
    %cst_6 = arith.constant 0.000000e+00 : f32
    %5 = vector.broadcast %cst_6 : f32 to vector<328x128xf32>
    %6 = arith.maximumf %4, %5 : vector<328x128xf32>
    %7 = arith.truncf %6 : vector<328x128xf32> to vector<328x128xbf16>
    %c0_7 = arith.constant 0 : index
    %c0_8 = arith.constant 0 : index
    %8 = vector.load %arg6[%c0_7, %c0_8] : memref<328x128xbf16, #tpu.memory_space<vmem>>, vector<328x128xbf16>
    tpu.vector_store %arg6[%c0_7, %c0_8], %7 {strides = array<i32>} : memref<328x128xbf16, #tpu.memory_space<vmem>>, vector<328x128xbf16>,
    %c0_9 = arith.constant 0 : index
    %c0_10 = arith.constant 0 : index
    %9 = vector.load %arg6[%c0_9, %c0_10] : memref<328x128xbf16, #tpu.memory_space<vmem>>, vector<288x128xbf16>
    %c0_11 = arith.constant 0 : index
    %c0_12 = arith.constant 0 : index
    %c0_13 = arith.constant 0 : index
    %10 = vector.load %arg3[%c0_11, %c0_12, %c0_13] : memref<9x128x128xbf16, #tpu.memory_space<vmem>>, vector<1x128x128xbf16>
    %11 = vector.shape_cast %10 : vector<1x128x128xbf16> to vector<128x128xbf16>
    %cst_14 = arith.constant dense<0.000000e+00> : vector<288x128xf32>
    %12 = tpu.matmul %9, %11, %cst_14 {dimension_numbers = #tpu.dot_dimension_numbers<[1], [0], [0], [1], [0, 0, 1, 1], [], []>} : vector<288x128xbf16>, vector<128x128xbf16>, vector<288x128xf32> -> vector<288x128xf32>
    %c1 = arith.constant 1 : index
    %c0_15 = arith.constant 0 : index
    %13 = vector.load %arg6[%c1, %c0_15] : memref<328x128xbf16, #tpu.memory_space<vmem>>, vector<288x128xbf16>
    %c1_16 = arith.constant 1 : index
    %c0_17 = arith.constant 0 : index
    %c0_18 = arith.constant 0 : index
    %14 = vector.load %arg3[%c1_16, %c0_17, %c0_18] : memref<9x128x128xbf16, #tpu.memory_space<vmem>>, vector<1x128x128xbf16>
    %15 = vector.shape_cast %14 : vector<1x128x128xbf16> to vector<128x128xbf16>
    %cst_19 = arith.constant dense<0.000000e+00> : vector<288x128xf32>
    %16 = tpu.matmul %13, %15, %cst_19 {dimension_numbers = #tpu.dot_dimension_numbers<[1], [0], [0], [1], [0, 0, 1, 1], [], []>} : vector<288x128xbf16>, vector<128x128xbf16>, vector<288x128xf32> -> vector<288x128xf32>
    %17 = arith.addf %12, %16 : vector<288x128xf32>
    %c2 = arith.constant 2 : index
    %c0_20 = arith.constant 0 : index
    %18 = vector.load %arg6[%c2, %c0_20] : memref<328x128xbf16, #tpu.memory_space<vmem>>, vector<288x128xbf16>
    %c2_21 = arith.constant 2 : index
    %c0_22 = arith.constant 0 : index
    %c0_23 = arith.constant 0 : index
    %19 = vector.load %arg3[%c2_21, %c0_22, %c0_23] : memref<9x128x128xbf16, #tpu.memory_space<vmem>>, vector<1x128x128xbf16>
    %20 = vector.shape_cast %19 : vector<1x128x128xbf16> to vector<128x128xbf16>
    %cst_24 = arith.constant dense<0.000000e+00> : vector<288x128xf32>
    %21 = tpu.matmul %18, %20, %cst_24 {dimension_numbers = #tpu.dot_dimension_numbers<[1], [0], [0], [1], [0, 0, 1, 1], [], []>} : vector<288x128xbf16>, vector<128x128xbf16>, vector<288x128xf32> -> vector<288x128xf32>
    %22 = arith.addf %17, %21 : vector<288x128xf32>
    %c18 = arith.constant 18 : index
    %c0_25 = arith.constant 0 : index
    %23 = vector.load %arg6[%c18, %c0_25] : memref<328x128xbf16, #tpu.memory_space<vmem>>, vector<288x128xbf16>
    %c3 = arith.constant 3 : index
    %c0_26 = arith.constant 0 : index
    %c0_27 = arith.constant 0 : index
    %24 = vector.load %arg3[%c3, %c0_26, %c0_27] : memref<9x128x128xbf16, #tpu.memory_space<vmem>>, vector<1x128x128xbf16>
    %25 = vector.shape_cast %24 : vector<1x128x128xbf16> to vector<128x128xbf16>
    %cst_28 = arith.constant dense<0.000000e+00> : vector<288x128xf32>
    %26 = tpu.matmul %23, %25, %cst_28 {dimension_numbers = #tpu.dot_dimension_numbers<[1], [0], [0], [1], [0, 0, 1, 1], [], []>} : vector<288x128xbf16>, vector<128x128xbf16>, vector<288x128xf32> -> vector<288x128xf32>
    %27 = arith.addf %22, %26 : vector<288x128xf32>
    %c19 = arith.constant 19 : index
    %c0_29 = arith.constant 0 : index
    %28 = vector.load %arg6[%c19, %c0_29] : memref<328x128xbf16, #tpu.memory_space<vmem>>, vector<288x128xbf16>
    %c4 = arith.constant 4 : index
    %c0_30 = arith.constant 0 : index
    %c0_31 = arith.constant 0 : index
    %29 = vector.load %arg3[%c4, %c0_30, %c0_31] : memref<9x128x128xbf16, #tpu.memory_space<vmem>>, vector<1x128x128xbf16>
    %30 = vector.shape_cast %29 : vector<1x128x128xbf16> to vector<128x128xbf16>
    %cst_32 = arith.constant dense<0.000000e+00> : vector<288x128xf32>
    %31 = tpu.matmul %28, %30, %cst_32 {dimension_numbers = #tpu.dot_dimension_numbers<[1], [0], [0], [1], [0, 0, 1, 1], [], []>} : vector<288x128xbf16>, vector<128x128xbf16>, vector<288x128xf32> -> vector<288x128xf32>
    %32 = arith.addf %27, %31 : vector<288x128xf32>
    %c20 = arith.constant 20 : index
    %c0_33 = arith.constant 0 : index
    %33 = vector.load %arg6[%c20, %c0_33] : memref<328x128xbf16, #tpu.memory_space<vmem>>, vector<288x128xbf16>
    %c5 = arith.constant 5 : index
    %c0_34 = arith.constant 0 : index
    %c0_35 = arith.constant 0 : index
    %34 = vector.load %arg3[%c5, %c0_34, %c0_35] : memref<9x128x128xbf16, #tpu.memory_space<vmem>>, vector<1x128x128xbf16>
    %35 = vector.shape_cast %34 : vector<1x128x128xbf16> to vector<128x128xbf16>
    %cst_36 = arith.constant dense<0.000000e+00> : vector<288x128xf32>
    %36 = tpu.matmul %33, %35, %cst_36 {dimension_numbers = #tpu.dot_dimension_numbers<[1], [0], [0], [1], [0, 0, 1, 1], [], []>} : vector<288x128xbf16>, vector<128x128xbf16>, vector<288x128xf32> -> vector<288x128xf32>
    %37 = arith.addf %32, %36 : vector<288x128xf32>
    %c36 = arith.constant 36 : index
    %c0_37 = arith.constant 0 : index
    %38 = vector.load %arg6[%c36, %c0_37] : memref<328x128xbf16, #tpu.memory_space<vmem>>, vector<288x128xbf16>
    %c6 = arith.constant 6 : index
    %c0_38 = arith.constant 0 : index
    %c0_39 = arith.constant 0 : index
    %39 = vector.load %arg3[%c6, %c0_38, %c0_39] : memref<9x128x128xbf16, #tpu.memory_space<vmem>>, vector<1x128x128xbf16>
    %40 = vector.shape_cast %39 : vector<1x128x128xbf16> to vector<128x128xbf16>
    %cst_40 = arith.constant dense<0.000000e+00> : vector<288x128xf32>
    %41 = tpu.matmul %38, %40, %cst_40 {dimension_numbers = #tpu.dot_dimension_numbers<[1], [0], [0], [1], [0, 0, 1, 1], [], []>} : vector<288x128xbf16>, vector<128x128xbf16>, vector<288x128xf32> -> vector<288x128xf32>
    %42 = arith.addf %37, %41 : vector<288x128xf32>
    %c37 = arith.constant 37 : index
    %c0_41 = arith.constant 0 : index
    %43 = vector.load %arg6[%c37, %c0_41] : memref<328x128xbf16, #tpu.memory_space<vmem>>, vector<288x128xbf16>
    %c7 = arith.constant 7 : index
    %c0_42 = arith.constant 0 : index
    %c0_43 = arith.constant 0 : index
    %44 = vector.load %arg3[%c7, %c0_42, %c0_43] : memref<9x128x128xbf16, #tpu.memory_space<vmem>>, vector<1x128x128xbf16>
    %45 = vector.shape_cast %44 : vector<1x128x128xbf16> to vector<128x128xbf16>
    %cst_44 = arith.constant dense<0.000000e+00> : vector<288x128xf32>
    %46 = tpu.matmul %43, %45, %cst_44 {dimension_numbers = #tpu.dot_dimension_numbers<[1], [0], [0], [1], [0, 0, 1, 1], [], []>} : vector<288x128xbf16>, vector<128x128xbf16>, vector<288x128xf32> -> vector<288x128xf32>
    %47 = arith.addf %42, %46 : vector<288x128xf32>
    %c38 = arith.constant 38 : index
    %c0_45 = arith.constant 0 : index
    %48 = vector.load %arg6[%c38, %c0_45] : memref<328x128xbf16, #tpu.memory_space<vmem>>, vector<288x128xbf16>
    %c8 = arith.constant 8 : index
    %c0_46 = arith.constant 0 : index
    %c0_47 = arith.constant 0 : index
    %49 = vector.load %arg3[%c8, %c0_46, %c0_47] : memref<9x128x128xbf16, #tpu.memory_space<vmem>>, vector<1x128x128xbf16>
    %50 = vector.shape_cast %49 : vector<1x128x128xbf16> to vector<128x128xbf16>
    %cst_48 = arith.constant dense<0.000000e+00> : vector<288x128xf32>
    %51 = tpu.matmul %48, %50, %cst_48 {dimension_numbers = #tpu.dot_dimension_numbers<[1], [0], [0], [1], [0, 0, 1, 1], [], []>} : vector<288x128xbf16>, vector<128x128xbf16>, vector<288x128xf32> -> vector<288x128xf32>
    %52 = arith.addf %47, %51 : vector<288x128xf32>
    %53 = vector.shape_cast %52 : vector<288x128xf32> to vector<144x2x128xf32>
    %cst_49 = arith.constant dense<0xFF800000> : vector<144x128xf32>
    %54 = vector.multi_reduction <maximumf>, %53, %cst_49 [1] : vector<144x2x128xf32> to vector<144x128xf32>
    %55 = vector.shape_cast %54 : vector<144x128xf32> to vector<8x2x9x128xf32>
    %cst_50 = arith.constant dense<0xFF800000> : vector<8x9x128xf32>
    %56 = vector.multi_reduction <maximumf>, %55, %cst_50 [1] : vector<8x2x9x128xf32> to vector<8x9x128xf32>
    %57 = vector.shape_cast %0 : vector<1x128xf32> to vector<1x1x128xf32>
    %58 = vector.broadcast %57 : vector<1x1x128xf32> to vector<8x9x128xf32>
    %59 = arith.addf %56, %58 : vector<8x9x128xf32>
    %cst_51 = arith.constant 0.000000e+00 : f32
    %60 = vector.broadcast %cst_51 : f32 to vector<8x9x128xf32>
    %61 = arith.maximumf %59, %60 : vector<8x9x128xf32>
    %62 = arith.truncf %61 : vector<8x9x128xf32> to vector<8x9x128xbf16>
    %c0_52 = arith.constant 0 : index
    %c0_53 = arith.constant 0 : index
    %c0_54 = arith.constant 0 : index
    %c0_55 = arith.constant 0 : index
    %63 = vector.load %arg5[%c0_52, %c0_53, %c0_54, %c0_55] : memref<1x8x9x128xbf16, #tpu.memory_space<vmem>>, vector<1x8x9x128xbf16>
    %64 = vector.shape_cast %63 : vector<1x8x9x128xbf16> to vector<8x9x128xbf16>
    %65 = vector.shape_cast %62 : vector<8x9x128xbf16> to vector<1x8x9x128xbf16>
    tpu.vector_store %arg5[%c0_52, %c0_53, %c0_54, %c0_55], %65 {strides = array<i32>} : memref<1x8x9x128xbf16, #tpu.memory_space<vmem>>, vector<1x8x9x128xbf16>,
    return
  }
  func.func @transform_0(%arg0: i32) -> (i32, i32, i32) {
    %c0_i32 = arith.constant 0 : i32
    %c0_i32_0 = arith.constant 0 : i32
    %c0_i32_1 = arith.constant 0 : i32
    return %arg0, %c0_i32, %c0_i32_0 : i32, i32, i32
  }
  func.func @transform_1(%arg0: i32) -> (i32, i32) {
    %c0_i32 = arith.constant 0 : i32
    %c0_i32_0 = arith.constant 0 : i32
    %c0_i32_1 = arith.constant 0 : i32
    return %c0_i32, %c0_i32_0 : i32, i32
  }
  func.func @transform_2(%arg0: i32) -> (i32, i32, i32) {
    %c0_i32 = arith.constant 0 : i32
    %c0_i32_0 = arith.constant 0 : i32
    %c0_i32_1 = arith.constant 0 : i32
    %c0_i32_2 = arith.constant 0 : i32
    return %c0_i32, %c0_i32_0, %c0_i32_1 : i32, i32, i32
  }
  func.func @transform_3(%arg0: i32) -> (i32, i32) {
    %c0_i32 = arith.constant 0 : i32
    %c0_i32_0 = arith.constant 0 : i32
    %c0_i32_1 = arith.constant 0 : i32
    return %c0_i32, %c0_i32_0 : i32, i32
  }
  func.func @transform_4(%arg0: i32) -> (i32, i32, i32, i32) {
    %c0_i32 = arith.constant 0 : i32
    %c0_i32_0 = arith.constant 0 : i32
    %c0_i32_1 = arith.constant 0 : i32
    %c0_i32_2 = arith.constant 0 : i32
    return %arg0, %c0_i32, %c0_i32_0, %c0_i32_1 : i32, i32, i32, i32
  }
}

</mosaic_0001>

<bundles_post_ra>
// kernel: conv_block_forward.1
= control target key start
LH: loop header
LB: loop body
LE: loop exit
PB: predicated region body
PF: predicated region fallthrough
CT: control target
= control target key end

     0   :  { %s9219_s15 = smov 0   ;;  %s11201_s0 = inlined_call_operand.vmem [shape: bf16[2,328,37], index: 0, kind: input, shape index: {}]   ;;  %s11202_s1 = inlined_call_operand.vmem [shape: bf16[37,128], index: 1, kind: input, shape index: {}]   ;;  %s11203_s2 = inlined_call_operand.vmem [shape: bf16[9,128,128], index: 2, kind: input, shape index: {}]   ;;  %s11204_s3 = inlined_call_operand.vmem [shape: f32[1,128], index: 3, kind: input, shape index: {}]   ;;  %s11205_s4 = inlined_call_operand.vmem [shape: bf16[2,8,9,128], index: 4, kind: output, shape index: {}]  }
   0x1 LB: > { %s7185_s16 = sadd.s32 4294967295, %s9188_s15   ;;  %p7189_p0 = scmp.ge.s32.totalorder %s9188_s15, 1  ;;  %s9188_s15 = sphi %s9219_s15, %s14_s15  }
   0x2   : > { %p162_p1 = scmp.lt.s32.totalorder %s9188_s15, 3 }
   0x4   : > { %p163_p2 = pnand %p7189_p0, %p162_p1 }
   0x6   : > { %166 = sbr.rel (%p163_p2) target bundleno = 1355 (0x54b), region = 36 }
   0xd   : > { %v8998_v0 = vld [vmem:[%s11202_s1] sm:$0xff]   ;;  %v9190_v1 = vmov 0.0   ;;  %v8999_v2 = vld [vmem:[%s11202_s1 + $0x8] sm:$0xff]   ;;  %vm428_vm0 = vcmask 1041408   ;;  %vm429_vm1 = vcmask 1042432   ;;  %p188_p3 = scmp.lt.s32.totalorder %s7185_s16, 1 }
   0xe   : > { %8123 = vmatprep.subr.bf16.mxu0 %v9190_v1  ;;  %v9000_v3 = vld [vmem:[%s11202_s1 + $0x10] ss:$0 sps:$4 sm:$0x77]   ;;  %v9191_v4 = vmov 65535   ;;  %vm9192_vm2 = vmmov 0   ;;  %vm364_vm3 = vcmask 302080  }
   0xf   : > { %8124 = vmatpush3.bf16.msra.mxu0 %v8998_v0  ;;  %v430_v5 = vsel %vm428_vm0, 4294967295, %v9191_v4  ;;  %8129 = vmatprep.mubr.msk.bf16.mxu0 %vm9192_vm2, %v9190_v1  ;;  %s11293_s16 = smov (!%p188_p3, %s7185_s16), 1  ;;  %v9022_v20 = vld [vmem:[%s11203_s2 + $0x40] sm:$0xff]   ;;  %v9023_v21 = vld [vmem:[%s11203_s2 + $0x48] sm:$0xff]   ;;  %v9024_v23 = vld [vmem:[%s11203_s2 + $0x50] sm:$0xff]   ;;  %vm2973_vm5 = vcmask 1045504  }
  0x10   : > { %8125 = vmatprep.subr.bf16.mxu0 %v9190_v1  ;;  %v431_v6 = vsel %vm429_vm1, %v430_v5, 0  ;;  %s8985_s23 = smul.u32 164, %s11293_s16  ;;  %v9025_v24 = vld [vmem:[%s11203_s2 + $0x58] sm:$0xff]   ;;  %v9026_v26 = vld [vmem:[%s11203_s2 + $0x60] sm:$0xff]   ;;  %v9027_v27 = vld [vmem:[%s11203_s2 + $0x68] sm:$0xff]   ;;  %vm1701_vm6 = vcmask 1046528  }
  0x11   : > { %v433_v7 = vand.u32 %v9000_v3, %v431_v6  ;;  %v9028_v29 = vld [vmem:[%s11203_s2 + $0x70] sm:$0xff]   ;;  %v9031_v30 = vld [vmem:[%s11203_s2 + $0x78] sm:$0xff]   ;;  %v9037_v37 = vld [vmem:[%s11203_s2 + $0xc0] sm:$0xff]   ;;  %vm1045_vm4 = vsmask.f32 7424  ;;  %vm4245_vm9 = vcmask 1044480  }
  0x12   : > { %s9248_s26 = scalar_lea.vmem %s11201_s0, %s8985_s23  ;;  %8681 = vmatprep.subr.bf16.mxu1 %v9037_v37  ;;  %v9039_v38 = vld [vmem:[%s11203_s2 + $0xc8] sm:$0xff]   ;;  %v9040_v39 = vld [vmem:[%s11203_s2 + $0xd0] sm:$0xff]   ;;  %v9042_v40 = vld [vmem:[%s11203_s2 + $0xd8] sm:$0xff]   ;;  %vm2502_vm7 = vsmask.f32 6400  ;;  %vm6945_vm10 = vcmask 1041409  }
  0x13   : > { %8126 = vmatpush3.bf16.msra.mxu0 %v8999_v2  ;;  %v9001_v8 = vld [vmem:[%s9248_s26] sm:$0xff]   ;;  %v9002_v9 = vld [vmem:[%s9248_s26 + $0x8] sm:$0xff]   ;;  %v9003_v10 = vld [vmem:[%s9248_s26 + $0x10] sm:$0xff]   ;;  %8689 = vmatpush3.bf16.msra.mxu1 %v9037_v37  ;;  %vm3774_vm8 = vsmask.f32 5376  ;;  %vm6948_vm11 = vcmask 1042434  }
  0x14   : > { %8127 = vmatprep.subr.bf16.mxu0 %v9190_v1  ;;  %v9004_v11 = vld [vmem:[%s9248_s26 + $0x18] sm:$0xff]   ;;  %v9005_v12 = vld [vmem:[%s9248_s26 + $0x20] sm:$0xff]   ;;  %v9006_v13 = vld [vmem:[%s9248_s26 + $0x28] sm:$0xff]   ;;  %8682 = vmatprep.subr.bf16.mxu1 %v9039_v38  ;;  %vm6951_vm12 = vcmask 1043459   ;;  %vm6954_vm13 = vcmask 1044484   ;;  %vm6957_vm14 = vcmask 1045509  }
  0x15   : > { %v9007_v14 = vld [vmem:[%s9248_s26 + $0x30] sm:$0xff]   ;;  %v9008_v15 = vld [vmem:[%s9248_s26 + $0x38] sm:$0xff]   ;;  %v9009_v16 = vld [vmem:[%s9248_s26 + $0x40] sm:$0xff]   ;;  %vm6960_vm15 = vcmask 1046534   ;;  %vm7096_vm1 = vcmask 1040384   ;;  %s7624_s21 = sshll.u32 %s11293_s16, 6 }
  0x16   : > { %v9010_v17 = vld [vmem:[%s9248_s26 + $0x48] sm:$0xff]   ;;  %v9011_v18 = vld [vmem:[%s9248_s26 + $0x50] sm:$0xff]   ;;  %v9012_v19 = vld [vmem:[%s9248_s26 + $0x58] sm:$0xff]   ;;  %s10385_s23 = scalar_lea.vmem %s11205_s4, %s7624_s21 }
  0x17   : > { %8128 = vmatpush3.bf16.msra.mxu0 %v433_v7  ;;  %v9013_v22 = vld [vmem:[%s9248_s26 + $0x60] sm:$0xff]   ;;  %v9014_v25 = vld [vmem:[%s9248_s26 + $0x68] sm:$0xff]   ;;  %v9015_v28 = vld [vmem:[%s9248_s26 + $0x70] sm:$0xff]   ;;  %8690 = vmatpush3.bf16.msra.mxu1 %v9039_v38 }
  0x18   : > { %8213 = vmatprep.subr.bf16.mxu0 %v9022_v20  ;;  %v9016_v31 = vld [vmem:[%s9248_s26 + $0x78] sm:$0xff]   ;;  %v9017_v32 = vld [vmem:[%s9248_s26 + $0x80] sm:$0xff]   ;;  %v9018_v33 = vld [vmem:[%s9248_s26 + $0x88] sm:$0xff]   ;;  %8683 = vmatprep.subr.bf16.mxu1 %v9040_v39 }
  0x19   : > { %v9019_v34 = vld [vmem:[%s9248_s26 + $0x90] sm:$0xff]   ;;  %v9020_v35 = vld [vmem:[%s9248_s26 + $0x98] sm:$0xff]   ;;  %v9021_v36 = vld [vmem:[%s9248_s26 + $0xa0] ss:$0 sps:$4 sm:$0xff]  }
  0x1a   : > { %8130 = vmatmul.mubr.msk.bf16.vlgmr.msra.gmra.mrb[0].mxu0 %vm364_vm3, %v9001_v8  ;;  %v9043_v41 = vld [vmem:[%s11203_s2 + $0xe0] sm:$0xff]   ;;  %v9045_v42 = vld [vmem:[%s11203_s2 + $0xe8] sm:$0xff]   ;;  %v9046_v43 = vld [vmem:[%s11203_s2 + $0xf0] sm:$0xff]  }
  0x1b   : > { %8133 = vmatprep.mubr.msk.bf16.mxu0 %vm9192_vm2, %v9190_v1  ;;  %8214 = vmatpush3.bf16.msra.mxu0 %v9022_v20  ;;  %v9050_v44 = vld [vmem:[%s11203_s2 + $0xf8] sm:$0xff]   ;;  %v9383_v58 = vld [vmem:[%s11203_s2] sm:$0xff]  }
  0x1c   : > { %8215 = vmatprep.subr.bf16.mxu0 %v9023_v21  ;;  %8691 = vmatpush3.bf16.msra.mxu1 %v9040_v39  ;;  %v9391_v63 = vld [vmem:[%s11203_s2 + $0x100] sm:$0xff]   ;;  %v9064_v39 = vld [vmem:[%s11203_s2 + $0x8] sm:$0xff]  }
  0x1d   : > { %8684 = vmatprep.subr.bf16.mxu1 %v9042_v40 }
  0x1f   : > { %8216 = vmatpush3.bf16.msra.mxu0 %v9023_v21 }
  0x20   : > { %8217 = vmatprep.subr.bf16.mxu0 %v9024_v23  ;;  %8692 = vmatpush3.bf16.msra.mxu1 %v9042_v40 }
  0x21   : > { %8685 = vmatprep.subr.bf16.mxu1 %v9043_v41 }
  0x22   : > { %8134 = vmatmul.mubr.msk.bf16.gmra.mrb[4].mxu0 %vm364_vm3, %v9002_v9 }
  0x23   : > { %8137 = vmatprep.mubr.msk.bf16.mxu0 %vm9192_vm2, %v9190_v1  ;;  %8218 = vmatpush3.bf16.msra.mxu0 %v9024_v23 }
  0x24   : > { %8219 = vmatprep.subr.bf16.mxu0 %v9025_v24  ;;  %8693 = vmatpush3.bf16.msra.mxu1 %v9043_v41 }
  0x25   : > { %8686 = vmatprep.subr.bf16.mxu1 %v9045_v42 }
  0x27   : > { %8220 = vmatpush3.bf16.msra.mxu0 %v9025_v24 }
  0x28   : > { %8221 = vmatprep.subr.bf16.mxu0 %v9026_v26  ;;  %8694 = vmatpush3.bf16.msra.mxu1 %v9045_v42 }
  0x29   : > { %8687 = vmatprep.subr.bf16.mxu1 %v9046_v43 }
  0x2a   : > { %8138 = vmatmul.mubr.msk.bf16.gmra.mrb[8].mxu0 %vm364_vm3, %v9003_v10 }
  0x2b   : > { %8141 = vmatprep.mubr.msk.bf16.mxu0 %vm9192_vm2, %v9190_v1  ;;  %8222 = vmatpush3.bf16.msra.mxu0 %v9026_v26 }
  0x2c   : > { %8223 = vmatprep.subr.bf16.mxu0 %v9027_v27  ;;  %8695 = vmatpush3.bf16.msra.mxu1 %v9046_v43 }
  0x2d   : > { %8688 = vmatprep.subr.bf16.mxu1 %v9050_v44 }
  0x2f   : > { %8224 = vmatpush3.bf16.msra.mxu0 %v9027_v27 }
  0x30   : > { %8225 = vmatprep.subr.bf16.mxu0 %v9028_v29  ;;  %8696 = vmatpush3.bf16.msra.mxu1 %v9050_v44 }
  0x31   : > { %8421 = vmatprep.subr.bf16.mxu1 %v9391_v63 }
  0x32   : > { %8142 = vmatmul.mubr.msk.bf16.gmra.mrb[12].mxu0 %vm364_vm3, %v9004_v11 }
  0x33   : > { %8145 = vmatprep.mubr.msk.bf16.mxu0 %vm9192_vm2, %v9190_v1  ;;  %8226 = vmatpush3.bf16.msra.mxu0 %v9028_v29 }
  0x34   : > { %8227 = vmatprep.subr.bf16.mxu0 %v9031_v30 }
  0x37   : > { %8228 = vmatpush3.bf16.msra.mxu0 %v9031_v30 }
  0x38   : > { %8265 = vmatprep.subr.bf16.mxu0 %v9383_v58 }
  0x3a   : > { %8146 = vmatmul.mubr.msk.bf16.gmra.mrb[16].mxu0 %vm364_vm3, %v9005_v12 }
  0x3b   : > { %8149 = vmatprep.mubr.msk.bf16.mxu0 %vm9192_vm2, %v9190_v1 }
  0x42   : > { %8150 = vmatmul.mubr.msk.bf16.gmra.mrb[20].mxu0 %vm364_vm3, %v9006_v13 }
  0x43   : > { %8153 = vmatprep.mubr.msk.bf16.mxu0 %vm9192_vm2, %v9190_v1 }
  0x4a   : > { %8154 = vmatmul.mubr.msk.bf16.gmra.mrb[24].mxu0 %vm364_vm3, %v9007_v14 }
  0x4b   : > { %8157 = vmatprep.mubr.msk.bf16.mxu0 %vm9192_vm2, %v9190_v1 }
  0x52   : > { %8158 = vmatmul.mubr.msk.bf16.gmra.mrb[28].mxu0 %vm364_vm3, %v9008_v15 }
  0x53   : > { %8161 = vmatprep.mubr.msk.bf16.mxu0 %vm9192_vm2, %v9190_v1 }
  0x5a   : > { %8162 = vmatmul.mubr.msk.bf16.gmra.mrb[32].mxu0 %vm364_vm3, %v9009_v16 }
  0x5b   : > { %8165 = vmatprep.mubr.msk.bf16.mxu0 %vm9192_vm2, %v9190_v1 }
  0x62   : > { %8166 = vmatmul.mubr.msk.bf16.gmra.mrb[36].mxu0 %vm364_vm3, %v9010_v17 }
  0x63   : > { %8169 = vmatprep.mubr.msk.bf16.mxu0 %vm9192_vm2, %v9190_v1 }
  0x6a   : > { %8170 = vmatmul.mubr.msk.bf16.gmra.mrb[40].mxu0 %vm364_vm3, %v9011_v18 }
  0x6b   : > { %8173 = vmatprep.mubr.msk.bf16.mxu0 %vm9192_vm2, %v9190_v1 }
  0x72   : > { %8174 = vmatmul.mubr.msk.bf16.gmra.mrb[44].mxu0 %vm364_vm3, %v9012_v19 }
  0x73   : > { %8177 = vmatprep.mubr.msk.bf16.mxu0 %vm9192_vm2, %v9190_v1 }
  0x7a   : > { %8178 = vmatmul.mubr.msk.bf16.gmra.mrb[48].mxu0 %vm364_vm3, %v9013_v22 }
  0x7b   : > { %8181 = vmatprep.mubr.msk.bf16.mxu0 %vm9192_vm2, %v9190_v1 }
  0x82   : > { %8182 = vmatmul.mubr.msk.bf16.gmra.mrb[52].mxu0 %vm364_vm3, %v9014_v25 }
  0x83   : > { %8185 = vmatprep.mubr.msk.bf16.mxu0 %vm9192_vm2, %v9190_v1 }
  0x8a   : > { %8186 = vmatmul.mubr.msk.bf16.gmra.mrb[56].mxu0 %vm364_vm3, %v9015_v28 }
  0x8b   : > { %8189 = vmatprep.mubr.msk.bf16.mxu0 %vm9192_vm2, %v9190_v1 }
  0x92   : > { %8190 = vmatmul.mubr.msk.bf16.gmra.mrb[60].mxu0 %vm364_vm3, %v9016_v31 }
  0x93   : > { %8193 = vmatprep.mubr.msk.bf16.mxu0 %vm9192_vm2, %v9190_v1 }
  0x9a   : > { %8194 = vmatmul.mubr.msk.bf16.gmra.mrb[64].mxu0 %vm364_vm3, %v9017_v32 }
  0x9b   : > { %8197 = vmatprep.mubr.msk.bf16.mxu0 %vm9192_vm2, %v9190_v1 }
  0xa2   : > { %8198 = vmatmul.mubr.msk.bf16.gmra.mrb[68].mxu0 %vm364_vm3, %v9018_v33 }
  0xa3   : > { %8201 = vmatprep.mubr.msk.bf16.mxu0 %vm9192_vm2, %v9190_v1 }
  0xaa   : > { %8202 = vmatmul.mubr.msk.bf16.gmra.mrb[72].mxu0 %vm364_vm3, %v9019_v34 }
  0xab   : > { %8205 = vmatprep.mubr.msk.bf16.mxu0 %vm9192_vm2, %v9190_v1 }
  0xb2   : > { %8206 = vmatmul.mubr.msk.bf16.gmra.mrb[76].mxu0 %vm364_vm3, %v9020_v35 }
  0xb3   : > { %8209 = vmatprep.mubr.msk.bf16.mxu0 %vm9192_vm2, %v9190_v1  ;;  %vm7097_vm2 = vsmask.f32 256 }
  0xba   : > { %8210 = vmatmul.mubr.msk.bf16.gmra.mrb[80].mxu0 %vm364_vm3, %v9021_v36  ;;  %vm6963_vm3 = vcmask 1047559  }
  0xed   : > { %v469_v45 = vpop.f32.mrb[0].mxu0 }
  0xee   : > { %v8131_v46 = vpop.f32.mrb[1].mxu0  ;;  %v635_v48 = vmax.f32 %v469_v45, 0.0 }
  0xef   : > { %v472_v47 = vpop.f32.mrb[2].mxu0 }
  0xf0   : > { %v636_v49 = vmax.f32 %v472_v47, 0.0  ;;  %v8132_v50 = vpop.f32.mrb[3].mxu0 }
  0xf2   : > { %v7749_v51 = vpack.c.bf16 %v636_v49, %v635_v48  ;;  %v9068_v49 = vld [vmem:[%s11203_s2 + $0x10] sm:$0xff]  }
  0xf4   : > { %7750 = vst [vmem:[#allocation2] sm:$0xff] %v7749_v51  }
  0xf5   : > { %v477_v52 = vpop.f32.mrb[4].mxu0 }
  0xf6   : > { %v8135_v53 = vpop.f32.mrb[5].mxu0  ;;  %v637_v55 = vmax.f32 %v477_v52, 0.0 }
  0xf7   : > { %v480_v54 = vpop.f32.mrb[6].mxu0 }
  0xf8   : > { %v638_v56 = vmax.f32 %v480_v54, 0.0  ;;  %v8136_v57 = vpop.f32.mrb[7].mxu0 }
  0xfa   : > { %v7754_v59 = vpack.c.bf16 %v638_v56, %v637_v55 }
  0xfb   : > { %v882_v60 = vld [vmem:[#allocation2] sm:$0xf]  ;;  %v883_v61 = vld [vmem:[#allocation2 + $0x4] sm:$0xf] }
  0xfc   : > { %7846 = vst [vmem:[#allocation2 + $0x8] sm:$0xff] %v7754_v59   ;;  %v9386_v62 = vcombine.low %v882_v60, %v883_v61 }
  0xfd   : > { %v485_v0 = vpop.f32.mrb[8].mxu0 }
  0xfe   : > { %v8139_v1 = vpop.f32.mrb[9].mxu0  ;;  %v1049_v3 = vshll.u32 %v9386_v62, 16  ;;  %v639_v4 = vmax.f32 %v485_v0, 0.0  ;;  %v1047_v11 = vshrl.u32 %v9386_v62, 16  ;;  %v9069_v0 = vld [vmem:[%s11203_s2 + $0x18] sm:$0xff]  }
  0xff   : > { %v488_v2 = vpop.f32.mrb[10].mxu0 }
 0x100   : > { %v640_v5 = vmax.f32 %v488_v2, 0.0  ;;  %v8140_v6 = vpop.f32.mrb[11].mxu0  ;;  %v1051_v9 = vrot.slane %v1049_v3, 1 }
 0x101   : > { %v9073_v6 = vld [vmem:[%s11203_s2 + $0x20] sm:$0xff]  }
 0x102   : > { %v7759_v7 = vpack.c.bf16 %v640_v5, %v639_v4  ;;  %v1052_v15 = vor.u32 %v1051_v9, %v1047_v11 }
 0x103   : > { %v9030_v8 = vld [vmem:[#allocation2 + $0x8] sm:$0xff]  }
 0x104   : > { %7847 = vst [vmem:[#allocation2 + $0x10] sm:$0xff] %v7759_v7   ;;  %v1054_v12 = vshll.u32 %v9030_v8, 16  ;;  %v2019_v21 = vld [vmem:[#allocation2 + $0xc] sm:$0xf]  ;;  %v2952_v22 = vld [vmem:[#allocation2 + $0x8] sm:$0xc] }
 0x105   : > { %v493_v10 = vpop.f32.mrb[12].mxu0  ;;  %v2018_v24 = vld [vmem:[#allocation2 + $0x8] sm:$0xe]  ;;  %v7439_v26 = vcombine.low %v2952_v22, %v2019_v21  ;;  %v1058_v27 = vshrl.u32 %v9030_v8, 16 }
 0x106   : > { %v8143_v13 = vpop.f32.mrb[13].mxu0  ;;  %v1056_v16 = vrot.slane %v1054_v12, 1  ;;  %v641_v17 = vmax.f32 %v493_v10, 0.0  ;;  %v9397_v30 = vcombine.low %v2018_v24, %v2019_v21  ;;  %v9079_v24 = vld [vmem:[%s11203_s2 + $0x30] sm:$0xff]  }
 0x107   : > { %v496_v14 = vpop.f32.mrb[14].mxu0  ;;  %v2974_v40 = vrot.slane %v7439_v26, 2 }
 0x108   : > { %v642_v18 = vmax.f32 %v496_v14, 0.0  ;;  %v8144_v19 = vpop.f32.mrb[15].mxu0  ;;  %v1057_v20 = vsel %vm1045_vm4, %v1052_v15, %v1056_v16  ;;  %v1060_v33 = vor.u32 %v1058_v27, %v1056_v16  ;;  %v2165_v43 = vrot.slane %v9397_v30, 1  ;;  %v9075_v16 = vld [vmem:[%s11203_s2 + $0x28] sm:$0xff]  }
 0x109   : > { %8229 = vmatprep.mubr.bf16.mxu0 %v1057_v20 }
 0x10a   : > { %v7764_v23 = vpack.c.bf16 %v642_v18, %v641_v17 }
 0x10b   : > { %v9032_v25 = vld [vmem:[#allocation2 + $0x10] sm:$0xff]  }
 0x10c   : > { %7848 = vst [vmem:[#allocation2 + $0x18] sm:$0xff] %v7764_v23   ;;  %v1062_v29 = vshll.u32 %v9032_v25, 16  ;;  %v9399_v32 = vld [vmem:[#allocation2 + $0x10] sm:$0xff]   ;;  %v1066_v51 = vshrl.u32 %v9032_v25, 16 }
 0x10d   : > { %v501_v28 = vpop.f32.mrb[16].mxu0  ;;  %v2975_v41 = vrot.slane %v9399_v32, 2  ;;  %v2166_v44 = vrot.slane %v9399_v32, 1 }
 0x10e   : > { %v8147_v31 = vpop.f32.mrb[17].mxu0  ;;  %v1064_v35 = vrot.slane %v1062_v29, 1  ;;  %v643_v36 = vmax.f32 %v501_v28, 0.0 }
 0x10f   : > { %v504_v34 = vpop.f32.mrb[18].mxu0  ;;  %v9409_v46 = vsel %vm2973_vm5, %v2974_v40, %v2975_v41  ;;  %v9413_v48 = vsel %vm1701_vm6, %v2165_v43, %v2166_v44  ;;  %v9081_v43 = vld [vmem:[%s11203_s2 + $0x38] sm:$0xff]  }
 0x110   : > { %v644_v37 = vmax.f32 %v504_v34, 0.0  ;;  %v8148_v38 = vpop.f32.mrb[19].mxu0  ;;  %v1065_v42 = vsel %vm1045_vm4, %v1060_v33, %v1064_v35  ;;  %11209 = vst [vmem:[#allocation3_spill] sm:$0xff] %v9413_v48  ;;  %v1068_v56 = vor.u32 %v1066_v51, %v1064_v35 }
 0x111   : > { %8230 = vmatmul.mubr.bf16.vlgmr.msra.gmra.mrb[84].mxu0 %v1065_v42 }
 0x112   : > { %v7769_v45 = vpack.c.bf16 %v644_v37, %v643_v36  ;;  %8266 = vmatpush3.bf16.msra.mxu0 %v9383_v58 }
 0x113   : > { %v9033_v47 = vld [vmem:[#allocation2 + $0x18] sm:$0xff]   ;;  %8267 = vmatprep.subr.bf16.mxu0 %v9064_v39 }
 0x114   : > { %7849 = vst [vmem:[#allocation2 + $0x20] sm:$0xff] %v7769_v45   ;;  %v1070_v52 = vshll.u32 %v9033_v47, 16  ;;  %v9418_v53 = vld [vmem:[#allocation2 + $0x18] sm:$0xff]   ;;  %v1074_v9 = vshrl.u32 %v9033_v47, 16 }
 0x115   : > { %v509_v50 = vpop.f32.mrb[20].mxu0  ;;  %v2977_v58 = vrot.slane %v9418_v53, 2  ;;  %v2168_v4 = vrot.slane %v9418_v53, 1 }
 0x116   : > { %v8151_v54 = vpop.f32.mrb[21].mxu0  ;;  %v1072_v57 = vrot.slane %v1070_v52, 1  ;;  %8268 = vmatpush3.bf16.msra.mxu0 %v9064_v39  ;;  %v645_v59 = vmax.f32 %v509_v50, 0.0 }
 0x117   : > { %v512_v55 = vpop.f32.mrb[22].mxu0  ;;  %8269 = vmatprep.subr.bf16.mxu0 %v9068_v49  ;;  %v9426_v3 = vsel %vm2973_vm5, %v2975_v41, %v2977_v58  ;;  %v9433_v7 = vsel %vm1701_vm6, %v2166_v44, %v2168_v4 }
 0x118   : > { %v646_v60 = vmax.f32 %v512_v55, 0.0  ;;  %v8152_v61 = vpop.f32.mrb[23].mxu0  ;;  %v1073_v1 = vsel %vm1045_vm4, %v1068_v56, %v1072_v57  ;;  %11210 = vst [vmem:[#allocation4_spill] sm:$0xff] %v9433_v7  ;;  %v1076_v14 = vor.u32 %v1074_v9, %v1072_v57 }
 0x119   : > { %8233 = vmatprep.mubr.bf16.mxu0 %v1073_v1 }
 0x11a   : > { %v7774_v2 = vpack.c.bf16 %v646_v60, %v645_v59  ;;  %8270 = vmatpush3.bf16.msra.mxu0 %v9068_v49 }
 0x11b   : > { %v9034_v5 = vld [vmem:[#allocation2 + $0x20] sm:$0xff]   ;;  %8271 = vmatprep.subr.bf16.mxu0 %v9069_v0 }
 0x11c   : > { %7850 = vst [vmem:[#allocation2 + $0x28] sm:$0xff] %v7774_v2   ;;  %v1078_v10 = vshll.u32 %v9034_v5, 16  ;;  %v9435_v11 = vld [vmem:[#allocation2 + $0x20] sm:$0xff]   ;;  %v1082_v31 = vshrl.u32 %v9034_v5, 16 }
 0x11d   : > { %v517_v8 = vpop.f32.mrb[24].mxu0  ;;  %v2979_v17 = vrot.slane %v9435_v11, 2  ;;  %v2170_v21 = vrot.slane %v9435_v11, 1 }
 0x11e   : > { %v8155_v12 = vpop.f32.mrb[25].mxu0  ;;  %v1080_v15 = vrot.slane %v1078_v10, 1  ;;  %8272 = vmatpush3.bf16.msra.mxu0 %v9069_v0  ;;  %v647_v18 = vmax.f32 %v517_v8, 0.0 }
 0x11f   : > { %v520_v13 = vpop.f32.mrb[26].mxu0  ;;  %8273 = vmatprep.subr.bf16.mxu0 %v9073_v6  ;;  %v9447_v25 = vsel %vm2973_vm5, %v2977_v58, %v2979_v17  ;;  %v9450_v26 = vsel %vm1701_vm6, %v2168_v4, %v2170_v21 }
 0x120   : > { %v648_v19 = vmax.f32 %v520_v13, 0.0  ;;  %v8156_v20 = vpop.f32.mrb[27].mxu0  ;;  %v1081_v22 = vsel %vm1045_vm4, %v1076_v14, %v1080_v15  ;;  %11211 = vst [vmem:[#allocation5_spill] sm:$0xff] %v9450_v26  ;;  %v1084_v37 = vor.u32 %v1082_v31, %v1080_v15 }
 0x121   : > { %8234 = vmatmul.mubr.bf16.gmra.mrb[88].mxu0 %v1081_v22 }
 0x122   : > { %v7779_v23 = vpack.c.bf16 %v648_v19, %v647_v18  ;;  %8274 = vmatpush3.bf16.msra.mxu0 %v9073_v6 }
 0x123   : > { %v9035_v27 = vld [vmem:[#allocation2 + $0x28] sm:$0xff]   ;;  %8275 = vmatprep.subr.bf16.mxu0 %v9075_v16 }
 0x124   : > { %7851 = vst [vmem:[#allocation2 + $0x30] sm:$0xff] %v7779_v23   ;;  %v9089_v28 = vld [vmem:[#allocation2 + $0x28] sm:$0xff]   ;;  %v1086_v33 = vshll.u32 %v9035_v27, 16  ;;  %v1090_v54 = vshrl.u32 %v9035_v27, 16 }
 0x125   : > { %v525_v29 = vpop.f32.mrb[28].mxu0  ;;  %v2981_v35 = vrot.slane %v9089_v28, 2  ;;  %v2172_v39 = vrot.slane %v9089_v28, 1 }
 0x126   : > { %v8159_v34 = vpop.f32.mrb[29].mxu0  ;;  %v1088_v38 = vrot.slane %v1086_v33, 1  ;;  %8276 = vmatpush3.bf16.msra.mxu0 %v9075_v16  ;;  %v649_v40 = vmax.f32 %v525_v29, 0.0 }
 0x127   : > { %v528_v36 = vpop.f32.mrb[30].mxu0  ;;  %8277 = vmatprep.subr.bf16.mxu0 %v9079_v24  ;;  %v9456_v44 = vsel %vm2973_vm5, %v2979_v17, %v2981_v35  ;;  %v9460_v47 = vsel %vm1701_vm6, %v2170_v21, %v2172_v39 }
 0x128   : > { %v650_v41 = vmax.f32 %v528_v36, 0.0  ;;  %v8160_v42 = vpop.f32.mrb[31].mxu0  ;;  %11212 = vst [vmem:[#allocation6_spill] sm:$0xff] %v9456_v44  ;;  %v1089_v45 = vsel %vm1045_vm4, %v1084_v37, %v1088_v38  ;;  %11213 = vst [vmem:[#allocation7_spill] sm:$0xff] %v9460_v47  ;;  %v1092_v59 = vor.u32 %v1090_v54, %v1088_v38  ;;  %v2507_v47 = vshll.u32 %v9397_v30, 16 }
 0x129   : > { %8237 = vmatprep.mubr.bf16.mxu0 %v1089_v45 }
 0x12a   : > { %v7784_v49 = vpack.c.bf16 %v650_v41, %v649_v40  ;;  %8278 = vmatpush3.bf16.msra.mxu0 %v9079_v24 }
 0x12b   : > { %v9036_v50 = vld [vmem:[#allocation2 + $0x30] sm:$0xff]   ;;  %8279 = vmatprep.subr.bf16.mxu0 %v9081_v43 }
 0x12c   : > { %7852 = vst [vmem:[#allocation2 + $0x38] sm:$0xff] %v7784_v49   ;;  %v9462_v51 = vld [vmem:[#allocation2 + $0x30] sm:$0xff]   ;;  %v1094_v55 = vshll.u32 %v9036_v50, 16  ;;  %v1098_v13 = vshrl.u32 %v9036_v50, 16 }
 0x12d   : > { %v533_v52 = vpop.f32.mrb[32].mxu0  ;;  %v2983_v57 = vrot.slane %v9462_v51, 2  ;;  %v2174_v61 = vrot.slane %v9462_v51, 1 }
 0x12e   : > { %v8163_v56 = vpop.f32.mrb[33].mxu0  ;;  %v1096_v60 = vrot.slane %v1094_v55, 1  ;;  %8280 = vmatpush3.bf16.msra.mxu0 %v9081_v43  ;;  %v651_v0 = vmax.f32 %v533_v52, 0.0 }
 0x12f   : > { %v536_v58 = vpop.f32.mrb[34].mxu0  ;;  %v9467_v4 = vsel %vm2973_vm5, %v2981_v35, %v2983_v57  ;;  %v9471_v6 = vsel %vm1701_vm6, %v2172_v39, %v2174_v61 }
 0x130   : > { %v652_v1 = vmax.f32 %v536_v58, 0.0  ;;  %v8164_v2 = vpop.f32.mrb[35].mxu0  ;;  %11214 = vst [vmem:[#allocation8_spill] sm:$0xff] %v9467_v4  ;;  %v1097_v5 = vsel %vm1045_vm4, %v1092_v59, %v1096_v60  ;;  %11215 = vst [vmem:[#allocation9_spill] sm:$0xff] %v9471_v6  ;;  %v1100_v18 = vor.u32 %v1098_v13, %v1096_v60 }
 0x131   : > { %8238 = vmatmul.mubr.bf16.gmra.mrb[92].mxu0 %v1097_v5 }
 0x132   : > { %v7789_v8 = vpack.c.bf16 %v652_v1, %v651_v0 }
 0x133   : > { %v9038_v9 = vld [vmem:[#allocation2 + $0x38] sm:$0xff]  }
 0x134   : > { %7853 = vst [vmem:[#allocation2 + $0x40] sm:$0xff] %v7789_v8   ;;  %v9473_v10 = vld [vmem:[#allocation2 + $0x38] sm:$0xff]   ;;  %v1102_v14 = vshll.u32 %v9038_v9, 16  ;;  %v1106_v35 = vshrl.u32 %v9038_v9, 16 }
 0x135   : > { %v541_v12 = vpop.f32.mrb[36].mxu0  ;;  %v2985_v16 = vrot.slane %v9473_v10, 2  ;;  %v2176_v20 = vrot.slane %v9473_v10, 1 }
 0x136   : > { %v8167_v15 = vpop.f32.mrb[37].mxu0  ;;  %v1104_v19 = vrot.slane %v1102_v14, 1  ;;  %v653_v21 = vmax.f32 %v541_v12, 0.0 }
 0x137   : > { %v544_v17 = vpop.f32.mrb[38].mxu0  ;;  %v9478_v24 = vsel %vm2973_vm5, %v2983_v57, %v2985_v16  ;;  %v9482_v28 = vsel %vm1701_vm6, %v2174_v61, %v2176_v20  ;;  %v9498_v61 = vld [vmem:[%s11203_s2 + $0x80] sm:$0xff]  }
 0x138   : > { %v654_v22 = vmax.f32 %v544_v17, 0.0  ;;  %v8168_v23 = vpop.f32.mrb[39].mxu0  ;;  %11216 = vst [vmem:[#allocation10_spill] sm:$0xff] %v9478_v24  ;;  %v1105_v27 = vsel %vm1045_vm4, %v1100_v18, %v1104_v19  ;;  %11217 = vst [vmem:[#allocation11_spill] sm:$0xff] %v9482_v28  ;;  %v1108_v40 = vor.u32 %v1106_v35, %v1104_v19  ;;  %8317 = vmatprep.subr.bf16.mxu0 %v9498_v61 }
 0x139   : > { %8241 = vmatprep.mubr.bf16.mxu0 %v1105_v27 }
 0x13a   : > { %v7794_v29 = vpack.c.bf16 %v654_v22, %v653_v21 }
 0x13b   : > { %v9041_v31 = vld [vmem:[#allocation2 + $0x40] sm:$0xff]  }
 0x13c   : > { %7854 = vst [vmem:[#allocation2 + $0x48] sm:$0xff] %v7794_v29   ;;  %v9484_v33 = vld [vmem:[#allocation2 + $0x40] sm:$0xff]   ;;  %v1110_v36 = vshll.u32 %v9041_v31, 16  ;;  %v1114_v59 = vshrl.u32 %v9041_v31, 16 }
 0x13d   : > { %v549_v34 = vpop.f32.mrb[40].mxu0  ;;  %v2987_v38 = vrot.slane %v9484_v33, 2  ;;  %v2178_v42 = vrot.slane %v9484_v33, 1 }
 0x13e   : > { %v8171_v37 = vpop.f32.mrb[41].mxu0  ;;  %v1112_v41 = vrot.slane %v1110_v36, 1  ;;  %v655_v43 = vmax.f32 %v549_v34, 0.0 }
 0x13f   : > { %v552_v39 = vpop.f32.mrb[42].mxu0  ;;  %v9489_v50 = vsel %vm2973_vm5, %v2985_v16, %v2987_v38  ;;  %v9493_v54 = vsel %vm1701_vm6, %v2176_v20, %v2178_v42 }
 0x140   : > { %v656_v45 = vmax.f32 %v552_v39, 0.0  ;;  %v8172_v49 = vpop.f32.mrb[43].mxu0  ;;  %11218 = vst [vmem:[#allocation12_spill] sm:$0xff] %v9489_v50  ;;  %v1113_v52 = vsel %vm1045_vm4, %v1108_v40, %v1112_v41  ;;  %11219 = vst [vmem:[#allocation13_spill] sm:$0xff] %v9493_v54  ;;  %v1116_v5 = vor.u32 %v1114_v59, %v1112_v41 }
 0x141   : > { %8242 = vmatmul.mubr.bf16.gmra.mrb[96].mxu0 %v1113_v52 }
 0x142   : > { %v7799_v55 = vpack.c.bf16 %v656_v45, %v655_v43 }
 0x143   : > { %v9044_v56 = vld [vmem:[#allocation2 + $0x48] sm:$0xff]  }
 0x144   : > { %7855 = vst [vmem:[#allocation2 + $0x50] sm:$0xff] %v7799_v55   ;;  %v9047_v57 = vld [vmem:[#allocation2 + $0x48] sm:$0xff]   ;;  %v1118_v60 = vshll.u32 %v9044_v56, 16  ;;  %v1122_v22 = vshrl.u32 %v9044_v56, 16 }
 0x145   : > { %v557_v58 = vpop.f32.mrb[44].mxu0  ;;  %v2180_v1 = vrot.slane %v9047_v57, 1  ;;  %v2989_v9 = vrot.slane %v9047_v57, 2  ;;  %v2575_v15 = vshrl.u32 %v9047_v57, 16  ;;  %v2578_v18 = vshll.u32 %v9047_v57, 16 }
 0x146   : > { %v8175_v0 = vpop.f32.mrb[45].mxu0  ;;  %v1120_v8 = vrot.slane %v1118_v60, 1  ;;  %v657_v12 = vmax.f32 %v557_v58, 0.0 }
 0x147   : > { %v560_v2 = vpop.f32.mrb[46].mxu0  ;;  %v9502_v16 = vsel %vm1701_vm6, %v2178_v42, %v2180_v1  ;;  %v9506_v19 = vsel %vm2973_vm5, %v2987_v38, %v2989_v9  ;;  %v2577_v27 = vrot.slane %v2575_v15, 1  ;;  %v2580_v34 = vrot.slane %v2578_v18, 2  ;;  %v9063_v18 = vld [vmem:[%s11203_s2 + $0x108] sm:$0xff]  }
 0x148   : > { %v658_v13 = vmax.f32 %v560_v2, 0.0  ;;  %v8176_v14 = vpop.f32.mrb[47].mxu0  ;;  %11220 = vst [vmem:[#allocation14_spill] sm:$0xff] %v9502_v16  ;;  %v1121_v17 = vsel %vm1045_vm4, %v1116_v5, %v1120_v8  ;;  %11221 = vst [vmem:[#allocation15_spill] sm:$0xff] %v9506_v19  ;;  %v1124_v42 = vor.u32 %v1122_v22, %v1120_v8 }
 0x149   : > { %8245 = vmatprep.mubr.bf16.mxu0 %v1121_v17  ;;  %v9515_v58 = vor.u32 %v2580_v34, %v2577_v27 }
 0x14a   : > { %v7804_v20 = vpack.c.bf16 %v658_v13, %v657_v12 }
 0x14b   : > { %v9048_v21 = vld [vmem:[#allocation2 + $0x50] sm:$0xff]  }
 0x14c   : > { %7856 = vst [vmem:[#allocation2 + $0x58] sm:$0xff] %v7804_v20   ;;  %v9508_v23 = vld [vmem:[#allocation2 + $0x50] sm:$0xff]   ;;  %v2182_v31 = vrot.slane %v9048_v21, 1  ;;  %v2584_v35 = vshrl.u32 %v9048_v21, 16  ;;  %v2587_v36 = vshll.u32 %v9048_v21, 16  ;;  %v2991_v40 = vrot.slane %v9048_v21, 2 }
 0x14d   : > { %v565_v29 = vpop.f32.mrb[48].mxu0  ;;  %v1126_v39 = vshll.u32 %v9508_v23, 16  ;;  %v1130_v15 = vshrl.u32 %v9508_v23, 16 }
 0x14e   : > { %v8179_v37 = vpop.f32.mrb[49].mxu0  ;;  %v2183_v38 = vsel %vm1701_vm6, %v2180_v1, %v2182_v31  ;;  %v2586_v43 = vrot.slane %v2584_v35, 1  ;;  %v2589_v45 = vrot.slane %v2587_v36, 2  ;;  %v659_v49 = vmax.f32 %v565_v29, 0.0 }
 0x14f   : > { %v568_v41 = vpop.f32.mrb[50].mxu0  ;;  %8401 = vmatprep.mubr.bf16.mxu1 %v2183_v38  ;;  %v1128_v56 = vrot.slane %v1126_v39, 1  ;;  %v9513_v57 = vsel %vm2973_vm5, %v2989_v9, %v2991_v40 }
 0x150   : > { %v660_v52 = vmax.f32 %v568_v41, 0.0  ;;  %v8180_v55 = vpop.f32.mrb[51].mxu0  ;;  %11222 = vst [vmem:[#allocation16_spill] sm:$0xff] %v9513_v57  ;;  %v2590_v59 = vor.u32 %v2589_v45, %v2586_v43 }
 0x151   : > { %v1129_v0 = vsel %vm1045_vm4, %v1124_v42, %v1128_v56  ;;  %v1132_v37 = vor.u32 %v1130_v15, %v1128_v56 }
 0x152   : > { %v7809_v60 = vpack.c.bf16 %v660_v52, %v659_v49  ;;  %8246 = vmatmul.mubr.bf16.gmra.mrb[100].mxu0 %v1129_v0  ;;  %v9520_v2 = vsel %vm2502_vm7, %v9515_v58, %v2590_v59 }
 0x153   : > { %v9051_v1 = vld [vmem:[#allocation2 + $0x58] sm:$0xff]  }
 0x154   : > { %7857 = vst [vmem:[#allocation2 + $0x60] sm:$0xff] %v7809_v60   ;;  %v9522_v5 = vld [vmem:[#allocation2 + $0x58] sm:$0xff]   ;;  %v2184_v12 = vrot.slane %v9051_v1, 1  ;;  %v2593_v9 = vshrl.u32 %v9051_v1, 16  ;;  %v2596_v13 = vshll.u32 %v9051_v1, 16  ;;  %v2993_v29 = vrot.slane %v9051_v1, 2 }
 0x155   : > { %v573_v8 = vpop.f32.mrb[52].mxu0  ;;  %v1134_v17 = vshll.u32 %v9522_v5, 16 }
 0x156   : > { %v8183_v14 = vpop.f32.mrb[53].mxu0  ;;  %v2185_v21 = vsel %vm1701_vm6, %v2182_v31, %v2184_v12  ;;  %v2595_v22 = vrot.slane %v2593_v9, 1  ;;  %v2598_v27 = vrot.slane %v2596_v13, 2  ;;  %v661_v34 = vmax.f32 %v573_v8, 0.0  ;;  %v9066_v31 = vld [vmem:[%s11203_s2 + $0x110] sm:$0xff]   ;;  %v9070_v8 = vld [vmem:[%s11203_s2 + $0x118] sm:$0xff]  }
 0x157   : > { %v576_v20 = vpop.f32.mrb[54].mxu0  ;;  %8402 = vmatmul.mubr.bf16.vlgmr.msra.gmra.mrb[0].mxu1 %v2185_v21  ;;  %v1136_v39 = vrot.slane %v1134_v17, 1  ;;  %v9532_v38 = vsel %vm2973_vm5, %v2991_v40, %v2993_v29  ;;  %v1138_v40 = vshrl.u32 %v9522_v5, 16 }
 0x158   : > { %v662_v35 = vmax.f32 %v576_v20, 0.0  ;;  %v8184_v36 = vpop.f32.mrb[55].mxu0  ;;  %8422 = vmatpush3.bf16.msra.mxu1 %v9391_v63  ;;  %v2599_v41 = vor.u32 %v2598_v27, %v2595_v22  ;;  %11223 = vst [vmem:[#allocation17_spill] sm:$0xff] %v9532_v38 }
 0x159   : > { %v1137_v43 = vsel %vm1045_vm4, %v1132_v37, %v1136_v39  ;;  %8423 = vmatprep.subr.bf16.mxu1 %v9063_v18  ;;  %v1140_v14 = vor.u32 %v1138_v40, %v1136_v39 }
 0x15a   : > { %v7814_v42 = vpack.c.bf16 %v662_v35, %v661_v34  ;;  %8249 = vmatprep.mubr.bf16.mxu0 %v1137_v43  ;;  %v9539_v49 = vsel %vm2502_vm7, %v2590_v59, %v2599_v41 }
 0x15b   : > { %v9053_v45 = vld [vmem:[#allocation2 + $0x60] sm:$0xff]  }
 0x15c   : > { %7858 = vst [vmem:[#allocation2 + $0x68] sm:$0xff] %v7814_v42   ;;  %v9541_v52 = vld [vmem:[#allocation2 + $0x60] sm:$0xff]   ;;  %v2186_v55 = vrot.slane %v9053_v45, 1  ;;  %8424 = vmatpush3.bf16.msra.mxu1 %v9063_v18  ;;  %v2602_v56 = vshrl.u32 %v9053_v45, 16  ;;  %v2605_v60 = vshll.u32 %v9053_v45, 16  ;;  %v2995_v59 = vrot.slane %v9053_v45, 2 }
 0x15d   : > { %v581_v63 = vpop.f32.mrb[56].mxu0  ;;  %v1142_v1 = vshll.u32 %v9541_v52, 16  ;;  %8425 = vmatprep.subr.bf16.mxu1 %v9066_v31 }
 0x15e   : > { %v8187_v0 = vpop.f32.mrb[57].mxu0  ;;  %v2187_v13 = vsel %vm1701_vm6, %v2184_v12, %v2186_v55  ;;  %v2604_v15 = vrot.slane %v2602_v56, 1  ;;  %v2607_v17 = vrot.slane %v2605_v60, 2  ;;  %v663_v20 = vmax.f32 %v581_v63, 0.0  ;;  %v9074_v12 = vld [vmem:[%s11203_s2 + $0x120] sm:$0xff]  }
 0x15f   : > { %v584_v9 = vpop.f32.mrb[58].mxu0  ;;  %8405 = vmatprep.mubr.bf16.mxu1 %v2187_v13  ;;  %v1144_v22 = vrot.slane %v1142_v1, 1  ;;  %v9550_v27 = vsel %vm2973_vm5, %v2993_v29, %v2995_v59  ;;  %v1146_v56 = vshrl.u32 %v9541_v52, 16 }
 0x160   : > { %v664_v21 = vmax.f32 %v584_v9, 0.0  ;;  %v8188_v18 = vpop.f32.mrb[59].mxu0  ;;  %11224 = vst [vmem:[#allocation18_spill] sm:$0xff] %v9550_v27  ;;  %8426 = vmatpush3.bf16.msra.mxu1 %v9066_v31  ;;  %v2608_v34 = vor.u32 %v2607_v17, %v2604_v15 }
 0x161   : > { %v1145_v36 = vsel %vm1045_vm4, %v1140_v14, %v1144_v22  ;;  %8427 = vmatprep.subr.bf16.mxu1 %v9070_v8 }
 0x162   : > { %v7819_v35 = vpack.c.bf16 %v664_v21, %v663_v20  ;;  %8250 = vmatmul.mubr.bf16.gmra.mrb[104].mxu0 %v1145_v36  ;;  %v9557_v39 = vsel %vm2502_vm7, %v2599_v41, %v2608_v34  ;;  %v9077_v41 = vld [vmem:[%s11203_s2 + $0x128] sm:$0xff]   ;;  %v1148_v20 = vor.u32 %v1146_v56, %v1144_v22 }
 0x163   : > { %v9055_v37 = vld [vmem:[#allocation2 + $0x68] sm:$0xff]  }
 0x164   : > { %7859 = vst [vmem:[#allocation2 + $0x70] sm:$0xff] %v7819_v35   ;;  %v9559_v42 = vld [vmem:[#allocation2 + $0x68] sm:$0xff]   ;;  %v2188_v43 = vrot.slane %v9055_v37, 1  ;;  %8428 = vmatpush3.bf16.msra.mxu1 %v9070_v8  ;;  %v2611_v31 = vshrl.u32 %v9055_v37, 16  ;;  %v2614_v45 = vshll.u32 %v9055_v37, 16  ;;  %v2997_v63 = vrot.slane %v9055_v37, 2 }
 0x165   : > { %v589_v29 = vpop.f32.mrb[60].mxu0  ;;  %v1150_v60 = vshll.u32 %v9559_v42, 16  ;;  %8429 = vmatprep.subr.bf16.mxu1 %v9074_v12  ;;  %v9609_v26 = vld [vmem:[#allocation2 + $0x68] sm:$0xff]  }
 0x166   : > { %v8191_v40 = vpop.f32.mrb[61].mxu0  ;;  %v2189_v1 = vsel %vm1701_vm6, %v2186_v55, %v2188_v43  ;;  %v2613_v9 = vrot.slane %v2611_v31, 1  ;;  %v2616_v13 = vrot.slane %v2614_v45, 2  ;;  %v9568_v8 = vsel %vm2973_vm5, %v2995_v59, %v2997_v63  ;;  %v9080_v55 = vld [vmem:[%s11203_s2 + $0x130] sm:$0xff]  }
 0x167   : > { %v592_v0 = vpop.f32.mrb[62].mxu0  ;;  %11225 = vst [vmem:[#allocation19_spill] sm:$0xff] %v9568_v8  ;;  %v665_v14 = vmax.f32 %v589_v29, 0.0  ;;  %8406 = vmatmul.mubr.bf16.gmra.mrb[4].mxu1 %v2189_v1  ;;  %v1152_v21 = vrot.slane %v1150_v60, 1  ;;  %v1154_v60 = vshrl.u32 %v9559_v42, 16 }
 0x168   : > { %v666_v15 = vmax.f32 %v592_v0, 0.0  ;;  %v8192_v17 = vpop.f32.mrb[63].mxu0  ;;  %8430 = vmatpush3.bf16.msra.mxu1 %v9074_v12  ;;  %v2617_v18 = vor.u32 %v2616_v13, %v2613_v9 }
 0x169   : > { %v1153_v36 = vsel %vm1045_vm4, %v1148_v20, %v1152_v21  ;;  %8431 = vmatprep.subr.bf16.mxu1 %v9077_v41 }
 0x16a   : > { %v7824_v35 = vpack.c.bf16 %v666_v15, %v665_v14  ;;  %8253 = vmatprep.mubr.bf16.mxu0 %v1153_v36  ;;  %v9575_v59 = vsel %vm2502_vm7, %v2608_v34, %v2617_v18  ;;  %v9085_v34 = vld [vmem:[%s11203_s2 + $0x138] sm:$0xff]  }
 0x16b   : > { %v9057_v37 = vld [vmem:[#allocation2 + $0x70] sm:$0xff]  }
 0x16c   : > { %7860 = vst [vmem:[#allocation2 + $0x78] sm:$0xff] %v7824_v35   ;;  %v9577_v29 = vld [vmem:[#allocation2 + $0x70] sm:$0xff]   ;;  %v2190_v31 = vrot.slane %v9057_v37, 1  ;;  %8432 = vmatpush3.bf16.msra.mxu1 %v9077_v41  ;;  %v2620_v12 = vshrl.u32 %v9057_v37, 16  ;;  %v2623_v45 = vshll.u32 %v9057_v37, 16  ;;  %v2999_v40 = vrot.slane %v9057_v37, 2 }
 0x16d   : > { %v597_v22 = vpop.f32.mrb[64].mxu0  ;;  %v1158_v0 = vshll.u32 %v9577_v29, 16  ;;  %8433 = vmatprep.subr.bf16.mxu1 %v9080_v55  ;;  %v1156_v35 = vor.u32 %v1154_v60, %v1152_v21 }
 0x16e   : > { %v8195_v56 = vpop.f32.mrb[65].mxu0  ;;  %v2191_v9 = vsel %vm1701_vm6, %v2188_v43, %v2190_v31  ;;  %v2622_v13 = vrot.slane %v2620_v12, 1  ;;  %v2625_v14 = vrot.slane %v2623_v45, 2  ;;  %v9586_v41 = vsel %vm2973_vm5, %v2997_v63, %v2999_v40  ;;  %v9592_v43 = vld [vmem:[%s11203_s2 + $0x140] sm:$0xff]  }
 0x16f   : > { %v600_v1 = vpop.f32.mrb[66].mxu0  ;;  %11226 = vst [vmem:[#allocation20_spill] sm:$0xff] %v9586_v41  ;;  %v667_v15 = vmax.f32 %v597_v22, 0.0  ;;  %8409 = vmatprep.mubr.bf16.mxu1 %v2191_v9  ;;  %v1160_v36 = vrot.slane %v1158_v0, 1  ;;  %v1162_v9 = vshrl.u32 %v9577_v29, 16  ;;  %v2515_v41 = vshll.u32 %v9399_v32, 16 }
 0x170   : > { %v668_v17 = vmax.f32 %v600_v1, 0.0  ;;  %v8196_v20 = vpop.f32.mrb[67].mxu0  ;;  %8434 = vmatpush3.bf16.msra.mxu1 %v9080_v55  ;;  %v2626_v37 = vor.u32 %v2625_v14, %v2622_v13 }
 0x171   : > { %v1161_v16 = vsel %vm1045_vm4, %v1156_v35, %v1160_v36  ;;  %8435 = vmatprep.subr.bf16.mxu1 %v9085_v34  ;;  %v2517_v50 = vrot.slane %v2515_v41, 2 }
 0x172   : > { %v7829_v56 = vpack.c.bf16 %v668_v17, %v667_v15  ;;  %8254 = vmatmul.mubr.bf16.gmra.mrb[108].mxu0 %v1161_v16  ;;  %v9595_v22 = vsel %vm2502_vm7, %v2617_v18, %v2626_v37  ;;  %v2504_v16 = vshrl.u32 %v9397_v30, 16  ;;  %v9619_v30 = vld [vmem:[#allocation2 + $0x70] sm:$0xff]  }
 0x173   : > { %v9060_v63 = vld [vmem:[#allocation2 + $0x78] sm:$0xff]   ;;  %v3883_v27 = vshrl.u32 %v9619_v30, 16  ;;  %v3886_v38 = vshll.u32 %v9619_v30, 16 }
 0x174   : > { %7861 = vst [vmem:[#allocation2 + $0x80] sm:$0xff] %v7829_v56   ;;  %v9597_v12 = vld [vmem:[#allocation2 + $0x78] sm:$0xff]   ;;  %v2192_v55 = vrot.slane %v9060_v63, 1  ;;  %8436 = vmatpush3.bf16.msra.mxu1 %v9085_v34  ;;  %v2629_v45 = vshrl.u32 %v9060_v63, 16  ;;  %v2632_v60 = vshll.u32 %v9060_v63, 16  ;;  %v3001_v0 = vrot.slane %v9060_v63, 2 }
 0x175   : > { %v605_v21 = vpop.f32.mrb[68].mxu0  ;;  %v1166_v13 = vshll.u32 %v9597_v12, 16  ;;  %8473 = vmatprep.subr.bf16.mxu1 %v9592_v43  ;;  %v1164_v63 = vor.u32 %v1162_v9, %v1160_v36  ;;  %v2512_v36 = vshrl.u32 %v9399_v32, 16  ;;  %v3888_v32 = vrot.slane %v3886_v38, 3 }
 0x176   : > { %v8199_v1 = vpop.f32.mrb[69].mxu0  ;;  %v2193_v14 = vsel %vm1701_vm6, %v2190_v31, %v2192_v55  ;;  %v2631_v15 = vrot.slane %v2629_v45, 1  ;;  %v2634_v17 = vrot.slane %v2632_v60, 2  ;;  %v9605_v20 = vsel %vm2973_vm5, %v2999_v40, %v3001_v0 }
 0x177   : > { %v608_v18 = vpop.f32.mrb[70].mxu0  ;;  %11227 = vst [vmem:[#allocation21_spill] sm:$0xff] %v9605_v20  ;;  %v669_v34 = vmax.f32 %v605_v21, 0.0  ;;  %8410 = vmatmul.mubr.bf16.gmra.mrb[8].mxu1 %v2193_v14  ;;  %v1168_v1 = vrot.slane %v1166_v13, 1  ;;  %v9611_v45 = vrot.slane %v2504_v16, 1 }
 0x178   : > { %v670_v35 = vmax.f32 %v608_v18, 0.0  ;;  %v8200_v56 = vpop.f32.mrb[71].mxu0  ;;  %v2635_v54 = vor.u32 %v2634_v17, %v2631_v15 }
 0x179   : > { %v1169_v6 = vsel %vm1045_vm4, %v1164_v63, %v1168_v1 }
 0x17a   : > { %v7834_v28 = vpack.c.bf16 %v670_v35, %v669_v34  ;;  %8257 = vmatprep.mubr.bf16.mxu0 %v1169_v6  ;;  %v9614_v40 = vsel %vm2502_vm7, %v2626_v37, %v2635_v54  ;;  %v1170_v6 = vshrl.u32 %v9597_v12, 16  ;;  %v3874_v37 = vshrl.u32 %v9609_v26, 16 }
 0x17b   : > { %v9065_v31 = vld [vmem:[#allocation2 + $0x80] sm:$0xff]  }
 0x17c   : > { %7862 = vst [vmem:[#allocation2 + $0x88] sm:$0xff] %v7834_v28   ;;  %v9616_v21 = vld [vmem:[#allocation2 + $0x80] sm:$0xff]   ;;  %v2194_v9 = vrot.slane %v9065_v31, 1  ;;  %v2638_v13 = vshrl.u32 %v9065_v31, 16  ;;  %v2641_v18 = vshll.u32 %v9065_v31, 16  ;;  %v3003_v14 = vrot.slane %v9065_v31, 2 }
 0x17d   : > { %v613_v60 = vpop.f32.mrb[72].mxu0  ;;  %v1174_v16 = vshll.u32 %v9616_v21, 16  ;;  %v3877_v28 = vshll.u32 %v9609_v26, 16 }
 0x17e   : > { %v8203_v15 = vpop.f32.mrb[73].mxu0  ;;  %v2195_v34 = vsel %vm1701_vm6, %v2192_v55, %v2194_v9  ;;  %v2640_v35 = vrot.slane %v2638_v13, 1  ;;  %v2643_v56 = vrot.slane %v2641_v18, 2  ;;  %v9627_v63 = vsel %vm2973_vm5, %v3001_v0, %v3003_v14 }
 0x17f   : > { %v616_v17 = vpop.f32.mrb[74].mxu0  ;;  %11228 = vst [vmem:[#allocation22_spill] sm:$0xff] %v9627_v63  ;;  %v671_v31 = vmax.f32 %v613_v60, 0.0  ;;  %8413 = vmatprep.mubr.bf16.mxu1 %v2195_v34  ;;  %v1172_v15 = vor.u32 %v1170_v6, %v1168_v1  ;;  %v1176_v20 = vrot.slane %v1174_v16, 1  ;;  %v3876_v13 = vrot.slane %v3874_v37, 2 }
 0x180   : > { %v672_v7 = vmax.f32 %v616_v17, 0.0  ;;  %v8204_v48 = vpop.f32.mrb[75].mxu0  ;;  %v2644_v8 = vor.u32 %v2643_v56, %v2640_v35  ;;  %v3879_v0 = vrot.slane %v3877_v28, 3  ;;  %v3885_v1 = vrot.slane %v3883_v27, 2 }
 0x181   : > { %v1177_v55 = vsel %vm1045_vm4, %v1172_v15, %v1176_v20  ;;  %v1178_v56 = vshrl.u32 %v9616_v21, 16  ;;  %v9640_v28 = vrot.slane %v2507_v47, 2 }
 0x182   : > { %v7839_v57 = vpack.c.bf16 %v672_v7, %v671_v31  ;;  %8258 = vmatmul.mubr.bf16.gmra.mrb[112].mxu0 %v1177_v55  ;;  %v9634_v48 = vsel %vm2502_vm7, %v2635_v54, %v2644_v8  ;;  %v2514_v31 = vrot.slane %v2512_v36, 1  ;;  %v9646_v4 = vor.u32 %v3879_v0, %v3876_v13  ;;  %v9666_v13 = vld [vmem:[#allocation2 + $0x78] sm:$0xff]  }
 0x183   : > { %v9071_v60 = vld [vmem:[#allocation2 + $0x88] sm:$0xff]   ;;  %v9648_v47 = vor.u32 %v3888_v32, %v3885_v1  ;;  %v9672_v32 = vld [vmem:[#allocation2 + $0x80] sm:$0xff]  }
 0x184   : > { %7863 = vst [vmem:[#allocation2 + $0x90] sm:$0xff] %v7839_v57   ;;  %v9636_v18 = vld [vmem:[#allocation2 + $0x88] sm:$0xff]   ;;  %v2196_v16 = vrot.slane %v9071_v60, 1  ;;  %v2647_v17 = vshrl.u32 %v9071_v60, 16  ;;  %v2650_v34 = vshll.u32 %v9071_v60, 16  ;;  %v3005_v7 = vrot.slane %v9071_v60, 2 }
 0x185   : > { %v621_v6 = vpop.f32.mrb[76].mxu0  ;;  %v1182_v37 = vshll.u32 %v9636_v18, 16  ;;  %v1180_v60 = vor.u32 %v1178_v56, %v1176_v20  ;;  %11230 = vst [vmem:[#allocation24_spill] sm:$0xff] %v9646_v4  ;;  %v9662_v41 = vsel %vm3774_vm8, %v9646_v4, %v9648_v47  ;;  %v1186_v56 = vshrl.u32 %v9636_v18, 16 }
 0x186   : > { %v8207_v35 = vpop.f32.mrb[77].mxu0  ;;  %v2197_v27 = vsel %vm1701_vm6, %v2194_v9, %v2196_v16  ;;  %v2649_v57 = vrot.slane %v2647_v17, 1  ;;  %v2652_v15 = vrot.slane %v2650_v34, 2  ;;  %v9644_v38 = vsel %vm2973_vm5, %v3003_v14, %v3005_v7  ;;  %11231 = vst [vmem:[#allocation25_spill] sm:$0xff] %v9662_v41 }
 0x187   : > { %v624_v54 = vpop.f32.mrb[78].mxu0  ;;  %11229 = vst [vmem:[#allocation23_spill] sm:$0xff] %v9644_v38  ;;  %v673_v55 = vmax.f32 %v621_v6, 0.0  ;;  %8414 = vmatmul.mubr.bf16.gmra.mrb[12].mxu1 %v2197_v27  ;;  %v1184_v35 = vrot.slane %v1182_v37, 1  ;;  %v2521_v17 = vshrl.u32 %v9418_v53, 16  ;;  %v2524_v14 = vshll.u32 %v9418_v53, 16 }
 0x188   : > { %v674_v63 = vmax.f32 %v624_v54, 0.0  ;;  %v8208_v19 = vpop.f32.mrb[79].mxu0  ;;  %v2653_v24 = vor.u32 %v2652_v15, %v2649_v57  ;;  %v9676_v54 = vor.u32 %v2517_v50, %v2514_v31  ;;  %v3892_v4 = vshrl.u32 %v9666_v13, 16  ;;  %v9156_v50 = vld [vmem:[#allocation2 + $0x20] sm:$0xff]  }
 0x189   : > { %v1185_v9 = vsel %vm1045_vm4, %v1180_v60, %v1184_v35  ;;  %v2530_v19 = vshrl.u32 %v9435_v11, 16  ;;  %v2523_v38 = vrot.slane %v2521_v17, 1  ;;  %v2533_v31 = vshll.u32 %v9156_v50, 16 }
 0x18a   : > { %v7844_v36 = vpack.c.bf16 %v674_v63, %v673_v55  ;;  %8261 = vmatprep.mubr.bf16.mxu0 %v1185_v9  ;;  %v9657_v20 = vsel %vm2502_vm7, %v2644_v8, %v2653_v24  ;;  %v2510_v17 = vor.u32 %v9640_v28, %v9611_v45 }
 0x18b   : > { %v9653_v6 = vld [vmem:[#allocation2 + $0x90] sm:$0xff]  }
 0x18c   : > { %7864 = vst [vmem:[#allocation2 + $0x98] sm:$0xff] %v7844_v36   ;;  %v9664_v63 = vld [vmem:[#allocation2 + $0x90] ss:$0 sps:$4 sm:$0x11]   ;;  %v2198_v53 = vrot.slane %v9653_v6, 1  ;;  %v2656_v1 = vshrl.u32 %v9653_v6, 16 }
 0x18d   : > { %11232 = vst [vmem:[#allocation26_spill] sm:$0xff] %v9664_v63  ;;  %v629_v0 = vpop.f32.mrb[80].mxu0  ;;  %v2659_v11 = vshll.u32 %v9653_v6, 16  ;;  %v3007_v8 = vrot.slane %v9653_v6, 2  ;;  %v1190_v37 = vshll.u32 %v9664_v63, 16  ;;  %v1188_v6 = vor.u32 %v1186_v56, %v1184_v35  ;;  %v9704_v28 = vld [vmem:[#allocation2 + $0x90] sm:$0xff]  }
 0x18e   : > { %v675_v34 = vmax.f32 %v629_v0, 0.0  ;;  %v8211_v27 = vpop.f32.mrb[81].mxu0  ;;  %v2199_v57 = vsel %vm1701_vm6, %v2196_v16, %v2198_v53  ;;  %v2658_v15 = vrot.slane %v2656_v1, 1  ;;  %v2526_v63 = vrot.slane %v2524_v14, 2  ;;  %v9685_v16 = vld [vmem:[#allocation2 + $0x88] sm:$0xff]  }
 0x18f   : > { %v2661_v55 = vrot.slane %v2659_v11, 2  ;;  %v9680_v60 = vsel %vm2973_vm5, %v3005_v7, %v3007_v8  ;;  %v632_v36 = vpop.f32.mrb[82].mxu0  ;;  %8417 = vmatprep.mubr.bf16.mxu1 %v2199_v57  ;;  %v1192_v41 = vrot.slane %v1190_v37, 1  ;;  %v2532_v1 = vrot.slane %v2530_v19, 1 }
 0x190   : > { %11233 = vst [vmem:[#allocation27_spill] sm:$0xff] %v9680_v60  ;;  %v7665_v9 = vpack.c.bf16 %v675_v34, %v675_v34  ;;  %v8212_v0 = vpop.f32.mrb[83].mxu0  ;;  %v3895_v11 = vshll.u32 %v9666_v13, 16  ;;  %v3901_v35 = vshrl.u32 %v9672_v32, 16  ;;  %v3904_v56 = vshll.u32 %v9672_v32, 16 }
 0x191   : > { %v9683_v27 = vor.u32 %v2661_v55, %v2658_v15  ;;  %v1193_v7 = vsel %vm1045_vm4, %v1188_v6, %v1192_v41  ;;  %v3894_v19 = vrot.slane %v3892_v4, 2  ;;  %v2519_v57 = vsel %vm2502_vm7, %v2510_v17, %v9676_v54  ;;  %vm10391_vm4 = vmand %vm7096_vm1, %vm7097_vm2 }
 0x192   : > { %881 = vst [vmem:[#allocation2 + $0xa0] sm:$0xf] %v7665_v9  ;;  %8262 = vmatmul.mubr.bf16.gmra.mrb[116].mxu0 %v1193_v7  ;;  %v3910_v15 = vshrl.u32 %v9685_v16, 16  ;;  %v2535_v55 = vrot.slane %v2533_v31, 2  ;;  %v3913_v36 = vshll.u32 %v9685_v16, 16  ;;  %v3903_v4 = vrot.slane %v3901_v35, 2 }
 0x193   : > { %v9082_v34 = vld [vmem:[#allocation2 + $0x98] ss:$0 sps:$4 sm:$0x11]   ;;  %v9694_v14 = vsel %vm2502_vm7, %v2653_v24, %v9683_v27  ;;  %8281 = vmatprep.mubr.bf16.mxu0 %v9386_v62  ;;  %v3897_v24 = vrot.slane %v3895_v11, 3  ;;  %v9157_v62 = vld [vmem:[#allocation2 + $0x28] sm:$0xff]   ;;  %v3906_v50 = vrot.slane %v3904_v56, 3  ;;  %v2527_v7 = vor.u32 %v2526_v63, %v2523_v38 }
 0x194   : > { %v9698_v37 = vld [vmem:[#allocation2 + $0x98] ss:$0 sps:$4 sm:$0x33]   ;;  %v2200_v41 = vrot.slane %v9082_v34, 1  ;;  %v2539_v6 = vshrl.u32 %v9157_v62, 16  ;;  %v2542_v34 = vshll.u32 %v9157_v62, 16  ;;  %v2536_v35 = vor.u32 %v2535_v55, %v2532_v1 }
 0x195   : > { %v3009_v45 = vrot.slane %v9698_v37, 2  ;;  %v9708_v0 = vld [vmem:[#allocation2 + $0x98] sm:$0xff]   ;;  %v3898_v17 = vor.u32 %v3897_v24, %v3894_v19  ;;  %v2548_v11 = vshrl.u32 %v9462_v51, 16  ;;  %v2551_v60 = vshll.u32 %v9462_v51, 16  ;;  %v9723_v56 = vld [vmem:[#allocation2 + $0x8] sm:$0xff]   ;;  %v9731_v1 = vld [vmem:[#allocation2 + $0x10] sm:$0xff]  }
 0x196   : > { %v2201_v9 = vsel %vm1701_vm6, %v2198_v53, %v2200_v41  ;;  %v9098_v53 = vld [vmem:[%s11203_s2 + $0x88] sm:$0xff]   ;;  %v3907_v41 = vor.u32 %v3906_v50, %v3903_v4  ;;  %v3912_v44 = vrot.slane %v3910_v15, 2  ;;  %v3915_v63 = vrot.slane %v3913_v36, 3  ;;  %v9099_v50 = vld [vmem:[%s11203_s2 + $0x90] sm:$0xff]  }
 0x197   : > { %8418 = vmatmul.mubr.bf16.gmra.mrb[16].mxu1 %v2201_v9  ;;  %v9711_v31 = vsel %vm2973_vm5, %v3007_v8, %v3009_v45  ;;  %v9720_v38 = vsel %vm3774_vm8, %v9648_v47, %v3898_v17  ;;  %v3919_v8 = vshrl.u32 %v9704_v28, 16  ;;  %v2541_v19 = vrot.slane %v2539_v6, 1  ;;  %v9090_v4 = vld [vmem:[%s11203_s2 + $0x148] sm:$0xff]  }
 0x198   : > { %8437 = vmatprep.mubr.bf16.mxu1 %v2519_v57  ;;  %v9727_v51 = vsel %vm3774_vm8, %v3898_v17, %v3907_v41  ;;  %v3922_v57 = vshll.u32 %v9704_v28, 16  ;;  %v3928_v15 = vshrl.u32 %v9708_v0, 16  ;;  %v2544_v47 = vrot.slane %v2542_v34, 2 }
 0x199   : > { %v3916_v55 = vor.u32 %v3915_v63, %v3912_v44  ;;  %v3921_v45 = vrot.slane %v3919_v8, 2  ;;  %v3931_v24 = vshll.u32 %v9708_v0, 16  ;;  %v2550_v36 = vrot.slane %v2548_v11, 1 }
 0x19a   : > { %8282 = vmatmul.mubr.bf16.vlgmr.msra.gmra.mrb[84].mxu0 %v9723_v56  ;;  %v2553_v9 = vrot.slane %v2551_v60, 2  ;;  %v3924_v62 = vrot.slane %v3922_v57, 3  ;;  %v3930_v6 = vrot.slane %v3928_v15, 2  ;;  %v2537_v60 = vsel %vm2502_vm7, %v2527_v7, %v2536_v35 }
 0x19b   : > { %8285 = vmatprep.mubr.bf16.mxu0 %v9731_v1  ;;  %8318 = vmatpush3.bf16.msra.mxu0 %v9498_v61  ;;  %v9743_v34 = vsel %vm3774_vm8, %v3907_v41, %v3916_v55  ;;  %v3933_v44 = vrot.slane %v3931_v24, 3  ;;  %v2528_v61 = vsel %vm2502_vm7, %v9676_v54, %v2527_v7  ;;  %v2545_v63 = vor.u32 %v2544_v47, %v2541_v19  ;;  %v9101_v41 = vld [vmem:[%s11203_s2 + $0x98] sm:$0xff]   ;;  %v9772_v47 = vld [vmem:[#allocation2 + $0x20] sm:$0xff]  }
 0x19c   : > { %8319 = vmatprep.subr.bf16.mxu0 %v9098_v53  ;;  %v3925_v17 = vor.u32 %v3924_v62, %v3921_v45  ;;  %v9751_v8 = vor.u32 %v2553_v9, %v2550_v36  ;;  %v2557_v54 = vshrl.u32 %v9473_v10, 16  ;;  %v2560_v7 = vshll.u32 %v9473_v10, 16  ;;  %v9768_v19 = vld [vmem:[#allocation2 + $0x18] sm:$0xff]  }
 0x19d   : > { %v9748_v11 = vor.u32 %v3933_v44, %v3930_v6  ;;  %v2566_v15 = vshrl.u32 %v9484_v33, 16  ;;  %v2569_v10 = vshll.u32 %v9484_v33, 16  ;;  %v11208_v24 = vrot.slane %v9609_v26, 3  ;;  %v9095_v33 = vld [vmem:[%s11203_s2 + $0x158] sm:$0xff]  }
 0x19e   : > { %v9757_v57 = vsel %vm3774_vm8, %v3916_v55, %v3925_v17  ;;  %v2546_v55 = vsel %vm2502_vm7, %v2536_v35, %v2545_v63  ;;  %v2555_v45 = vsel %vm2502_vm7, %v2545_v63, %v9751_v8  ;;  %v4269_v36 = vrot.slane %v9619_v30, 3  ;;  %v9102_v35 = vld [vmem:[%s11203_s2 + $0xa0] sm:$0xff]  }
 0x19f   : > { %8438 = vmatmul.mubr.bf16.vlgmr.msra.gmra.mrb[20].mxu1 %v2528_v61  ;;  %8320 = vmatpush3.bf16.msra.mxu0 %v9098_v53  ;;  %v9766_v53 = vsel %vm3774_vm8, %v3925_v17, %v9748_v11  ;;  %v2559_v9 = vrot.slane %v2557_v54, 1  ;;  %v2562_v62 = vrot.slane %v2560_v7, 2  ;;  %v4271_v6 = vrot.slane %v9666_v13, 3  ;;  %v9789_v44 = vld [vmem:[#allocation2 + $0xa0] ss:$0 sps:$4 sm:$0x77]  }
 0x1a0   : > { %8474 = vmatpush3.bf16.msra.mxu1 %v9592_v43  ;;  %8441 = vmatprep.mubr.bf16.mxu1 %v2537_v60  ;;  %v9094_v43 = vld [vmem:[%s11203_s2 + $0x150] sm:$0xff]   ;;  %v9794_v61 = vsel %vm4245_vm9, %v11208_v24, %v4269_v36  ;;  %v4275_v17 = vrot.slane %v9685_v16, 3  ;;  %v4277_v60 = vrot.slane %v9704_v28, 3  ;;  %v2571_v63 = vrot.slane %v2569_v10, 2  ;;  %v9104_v24 = vld [vmem:[%s11203_s2 + $0xa8] sm:$0xff]  }
 0x1a1   : > { %8475 = vmatprep.subr.bf16.mxu1 %v9090_v4  ;;  %8321 = vmatprep.subr.bf16.mxu0 %v9099_v50  ;;  %11234 = vst [vmem:[#allocation28_spill] sm:$0xff] %v9794_v61  ;;  %v9799_v54 = vsel %vm4245_vm9, %v4269_v36, %v4271_v6  ;;  %v4281_v36 = vrot.slane %v9789_v44, 3 }
 0x1a2   : > { %8286 = vmatmul.mubr.bf16.gmra.mrb[88].mxu0 %v9768_v19  ;;  %v9812_v10 = vsel %vm4245_vm9, %v4275_v17, %v4277_v60 }
 0x1a3   : > { %8289 = vmatprep.mubr.bf16.mxu0 %v9772_v47  ;;  %8322 = vmatpush3.bf16.msra.mxu0 %v9099_v50  ;;  %v2568_v50 = vrot.slane %v2566_v15, 1  ;;  %v4279_v15 = vrot.slane %v9708_v0, 3 }
 0x1a4   : > { %8476 = vmatpush3.bf16.msra.mxu1 %v9090_v4  ;;  %8323 = vmatprep.subr.bf16.mxu0 %v9101_v41  ;;  %v4273_v4 = vrot.slane %v9672_v32, 3 }
 0x1a5   : > { %8477 = vmatprep.subr.bf16.mxu1 %v9094_v43 }
 0x1a6   : > { %v9802_v7 = vsel %vm4245_vm9, %v4271_v6, %v4273_v4  ;;  %v9809_v61 = vsel %vm4245_vm9, %v4273_v4, %v4275_v17  ;;  %v9824_v6 = vld [vmem:[#allocation2 + $0x30] sm:$0xff]   ;;  %v2572_v4 = vor.u32 %v2571_v63, %v2568_v50  ;;  %v9828_v17 = vsel %vm4245_vm9, %v4279_v15, %v4281_v36  ;;  %v9845_v63 = vld [vmem:[#allocation2 + $0x38] sm:$0xff]   ;;  %v9863_v36 = vld [vmem:[#allocation2 + $0x48] sm:$0xff]  }
 0x1a7   : > { %8442 = vmatmul.mubr.bf16.gmra.mrb[24].mxu1 %v2546_v55  ;;  %8324 = vmatpush3.bf16.msra.mxu0 %v9101_v41  ;;  %v9097_v41 = vld [vmem:[%s11203_s2 + $0x160] sm:$0xff]   ;;  %v9818_v55 = vsel %vm4245_vm9, %v4277_v60, %v4279_v15  ;;  %v9100_v60 = vld [vmem:[%s11203_s2 + $0x168] sm:$0xff]   ;;  %v9103_v50 = vld [vmem:[%s11203_s2 + $0x170] sm:$0xff]  }
 0x1a8   : > { %8445 = vmatprep.mubr.bf16.mxu1 %v2555_v45  ;;  %8478 = vmatpush3.bf16.msra.mxu1 %v9094_v43  ;;  %v9820_v43 = vld [vmem:[#allocation2 + $0x28] sm:$0xff]   ;;  %v2563_v45 = vor.u32 %v2562_v62, %v2559_v9  ;;  %v9105_v9 = vld [vmem:[%s11203_s2 + $0xb0] sm:$0xff]   ;;  %v2582_v15 = vsel %vm2502_vm7, %v2572_v4, %v9515_v58  ;;  %v2665_v58 = vshrl.u32 %v9698_v37, 16 }
 0x1a9   : > { %8479 = vmatprep.subr.bf16.mxu1 %v9095_v33  ;;  %8325 = vmatprep.subr.bf16.mxu0 %v9102_v35 }
 0x1aa   : > { %8290 = vmatmul.mubr.bf16.gmra.mrb[92].mxu0 %v9820_v43  ;;  %v2564_v62 = vsel %vm2502_vm7, %v9751_v8, %v2563_v45  ;;  %v9848_v8 = vld [vmem:[#allocation2 + $0x40] sm:$0xff]  }
 0x1ab   : > { %8293 = vmatprep.mubr.bf16.mxu0 %v9824_v6  ;;  %8326 = vmatpush3.bf16.msra.mxu0 %v9102_v35  ;;  %v2573_v35 = vsel %vm2502_vm7, %v2563_v45, %v2572_v4  ;;  %v9166_v45 = vld [vmem:[%s11203_s2 + $0xc0] sm:$0xff]  }
 0x1ac   : > { %8480 = vmatpush3.bf16.msra.mxu1 %v9095_v33  ;;  %8327 = vmatprep.subr.bf16.mxu0 %v9104_v24  ;;  %v9107_v33 = vld [vmem:[%s11203_s2 + $0xb8] sm:$0xff]  }
 0x1ad   : > { %8481 = vmatprep.subr.bf16.mxu1 %v9097_v41 }
 0x1af   : > { %8446 = vmatmul.mubr.bf16.gmra.mrb[28].mxu1 %v2564_v62  ;;  %8328 = vmatpush3.bf16.msra.mxu0 %v9104_v24  ;;  %v9108_v24 = vld [vmem:[%s11203_s2 + $0x178] sm:$0xff]  }
 0x1b0   : > { %8449 = vmatprep.mubr.bf16.mxu1 %v2573_v35  ;;  %8482 = vmatpush3.bf16.msra.mxu1 %v9097_v41  ;;  %v9111_v41 = vld [vmem:[%s11203_s2 + $0x180] sm:$0xff]   ;;  %v9114_v62 = vld [vmem:[%s11203_s2 + $0x198] sm:$0xff]   ;;  %v1715_v35 = vrot.slane %v9845_v63, 1 }
 0x1b1   : > { %8483 = vmatprep.subr.bf16.mxu1 %v9100_v60  ;;  %8329 = vmatprep.subr.bf16.mxu0 %v9105_v9 }
 0x1b2   : > { %8294 = vmatmul.mubr.bf16.gmra.mrb[96].mxu0 %v9845_v63 }
 0x1b3   : > { %8297 = vmatprep.mubr.bf16.mxu0 %v9848_v8  ;;  %8330 = vmatpush3.bf16.msra.mxu0 %v9105_v9  ;;  %v9113_v9 = vld [vmem:[%s11203_s2 + $0x190] sm:$0xff]  }
 0x1b4   : > { %8484 = vmatpush3.bf16.msra.mxu1 %v9100_v60  ;;  %8331 = vmatprep.subr.bf16.mxu0 %v9107_v33  ;;  %v9169_v60 = vld [vmem:[%s11203_s2 + $0xc8] sm:$0xff]  }
 0x1b5   : > { %8485 = vmatprep.subr.bf16.mxu1 %v9103_v50 }
 0x1b7   : > { %8450 = vmatmul.mubr.bf16.gmra.mrb[32].mxu1 %v2582_v15  ;;  %8332 = vmatpush3.bf16.msra.mxu0 %v9107_v33  ;;  %v11235_v33 = vld [vmem:[#allocation6_spill] sm:$0xff] }
 0x1b8   : > { %8453 = vmatprep.mubr.bf16.mxu1 %v9520_v2  ;;  %8486 = vmatpush3.bf16.msra.mxu1 %v9103_v50  ;;  %v2668_v2 = vshll.u32 %v9698_v37, 16  ;;  %v1705_v37 = vrot.slane %v9731_v1, 1  ;;  %v1709_v1 = vrot.slane %v9772_v47, 1  ;;  %v9170_v47 = vld [vmem:[%s11203_s2 + $0xd0] sm:$0xff]   ;;  %v9172_v15 = vld [vmem:[%s11203_s2 + $0xe0] sm:$0xff]  }
 0x1b9   : > { %8487 = vmatprep.subr.bf16.mxu1 %v9108_v24  ;;  %8369 = vmatprep.subr.bf16.mxu0 %v9166_v45  ;;  %v11236_v50 = vld [vmem:[#allocation8_spill] sm:$0xff] }
 0x1ba   : > { %8298 = vmatmul.mubr.bf16.gmra.mrb[100].mxu0 %v9863_v36 }
 0x1bb   : > { %8301 = vmatprep.mubr.bf16.mxu0 %v9508_v23  ;;  %v1680_v23 = vld [vmem:[#allocation2] sm:$0xe] }
 0x1bc   : > { %8488 = vmatpush3.bf16.msra.mxu1 %v9108_v24 }
 0x1bd   : > { %8525 = vmatprep.subr.bf16.mxu1 %v9111_v41 }
 0x1bf   : > { %8454 = vmatmul.mubr.bf16.gmra.mrb[0].mxu1 %v9539_v49 }
 0x1c0   : > { %8457 = vmatprep.mubr.bf16.mxu1 %v9557_v39  ;;  %v2667_v39 = vrot.slane %v2665_v58, 1  ;;  %v1719_v58 = vrot.slane %v9863_v36, 1 }
 0x1c2   : > { %8302 = vmatmul.mubr.bf16.gmra.mrb[104].mxu0 %v9522_v5  ;;  %v9168_v5 = vld [vmem:[#allocation2 + $0x4] sm:$0xf] }
 0x1c3   : > { %8305 = vmatprep.mubr.bf16.mxu0 %v9541_v52  ;;  %v7346_v49 = vcombine.low %v1680_v23, %v9168_v5  ;;  %v1703_v52 = vrot.slane %v9723_v56, 1  ;;  %v1707_v56 = vrot.slane %v9768_v19, 1  ;;  %v9116_v23 = vld [vmem:[%s11203_s2 + $0x1a8] sm:$0xff]  }
 0x1c4   : > { %v11238_v5 = vld [vmem:[#allocation12_spill] sm:$0xff] }
 0x1c5   : > { %v1710_v19 = vsel %vm1701_vm6, %v1707_v56, %v1709_v1 }
 0x1c7   : > { %8458 = vmatmul.mubr.bf16.gmra.mrb[4].mxu1 %v9575_v59  ;;  %v2670_v59 = vrot.slane %v2668_v2, 2  ;;  %v11237_v2 = vld [vmem:[#allocation10_spill] sm:$0xff] }
 0x1c8   : > { %8461 = vmatprep.mubr.bf16.mxu1 %v9595_v22  ;;  %v1702_v22 = vrot.slane %v7346_v49, 1 }
 0x1ca   : > { %8306 = vmatmul.mubr.bf16.gmra.mrb[108].mxu0 %v9559_v42 }
 0x1cb   : > { %8309 = vmatprep.mubr.bf16.mxu0 %v9577_v29 }
 0x1cf   : > { %8462 = vmatmul.mubr.bf16.gmra.mrb[8].mxu1 %v9614_v40  ;;  %v1704_v40 = vsel %vm1701_vm6, %v1702_v22, %v1703_v52 }
 0x1d0   : > { %8465 = vmatprep.mubr.bf16.mxu1 %v9634_v48  ;;  %v2671_v48 = vor.u32 %v2670_v59, %v2667_v39  ;;  %v9175_v39 = vld [vmem:[%s11203_s2 + $0xf8] sm:$0xff]   ;;  %v9176_v59 = vld [vmem:[#allocation2 + $0x50] sm:$0xff]  }
 0x1d1   : > { %v1721_v22 = vrot.slane %v9176_v59, 1  ;;  %v9995_v59 = vld [vmem:[#allocation2 + $0x28] sm:$0xff]  }
 0x1d2   : > { %8310 = vmatmul.mubr.bf16.gmra.mrb[112].mxu0 %v9597_v12  ;;  %v2672_v4 = vsel %vm2502_vm7, %v9683_v27, %v2671_v48  ;;  %v9112_v27 = vld [vmem:[%s11203_s2 + $0x188] sm:$0xff]   ;;  %v9177_v48 = vld [vmem:[#allocation2 + $0x58] sm:$0xff]  }
 0x1d3   : > { %8313 = vmatprep.mubr.bf16.mxu0 %v9616_v21 }
 0x1d7   : > { %8466 = vmatmul.mubr.bf16.gmra.mrb[12].mxu1 %v9657_v20  ;;  %v1706_v20 = vsel %vm1701_vm6, %v1703_v52, %v1705_v37  ;;  %v9174_v52 = vld [vmem:[%s11203_s2 + $0xf0] sm:$0xff]  }
 0x1d8   : > { %8469 = vmatprep.mubr.bf16.mxu1 %v9694_v14  ;;  %v1708_v14 = vsel %vm1701_vm6, %v1705_v37, %v1707_v56  ;;  %v1723_v37 = vrot.slane %v9177_v48, 1  ;;  %v11240_v56 = vld [vmem:[#allocation16_spill] sm:$0xff]  ;;  %v11252_v48 = vld [vmem:[#allocation5_spill] sm:$0xff] }
 0x1da   : > { %8314 = vmatmul.mubr.bf16.gmra.mrb[116].mxu0 %v9636_v18 }
 0x1db   : > { %8333 = vmatprep.mubr.bf16.mxu0 %v1704_v40  ;;  %v9118_v40 = vld [vmem:[%s11203_s2 + $0x1b8] sm:$0xff]  }
 0x1df   : > { %8470 = vmatmul.mubr.bf16.gmra.mrb[16].mxu1 %v2672_v4  ;;  %v11239_v4 = vld [vmem:[#allocation15_spill] sm:$0xff] }
 0x1e0   : > { %8489 = vmatprep.mubr.bf16.mxu1 %v9409_v46  ;;  %v1711_v46 = vrot.slane %v9820_v43, 1 }
 0x1e2   : > { %8334 = vmatmul.mubr.bf16.vlgmr.msra.gmra.mrb[84].mxu0 %v1706_v20  ;;  %v1712_v43 = vsel %vm1701_vm6, %v1709_v1, %v1711_v46  ;;  %v1722_v20 = vsel %vm1701_vm6, %v1719_v58, %v1721_v22  ;;  %v9178_v1 = vld [vmem:[#allocation2 + $0x60] sm:$0xff]  }
 0x1e3   : > { %8337 = vmatprep.mubr.bf16.mxu0 %v1708_v14  ;;  %8370 = vmatpush3.bf16.msra.mxu0 %v9166_v45  ;;  %v1717_v45 = vrot.slane %v9848_v8, 1  ;;  %v9117_v8 = vld [vmem:[%s11203_s2 + $0x1b0] sm:$0xff]   ;;  %v9121_v14 = vld [vmem:[%s11203_s2 + $0x1c0] sm:$0xff]  }
 0x1e4   : > { %8371 = vmatprep.subr.bf16.mxu0 %v9169_v60 }
 0x1e5   : > { %v1718_v49 = vsel %vm1701_vm6, %v1715_v35, %v1717_v45  ;;  %v1720_v36 = vsel %vm1701_vm6, %v1717_v45, %v1719_v58  ;;  %v3290_v45 = vld [vmem:[#allocation2 + $0x10] sm:$0xc]  ;;  %v11248_v58 = vld [vmem:[#allocation23_spill] sm:$0xff] }
 0x1e7   : > { %8490 = vmatmul.mubr.bf16.vlgmr.msra.gmra.mrb[20].mxu1 %v9426_v3  ;;  %8372 = vmatpush3.bf16.msra.mxu0 %v9169_v60  ;;  %v9171_v3 = vld [vmem:[%s11203_s2 + $0xd8] sm:$0xff]   ;;  %v1724_v60 = vsel %vm1701_vm6, %v1721_v22, %v1723_v37  ;;  %v11251_v22 = vld [vmem:[#allocation4_spill] sm:$0xff] }
 0x1e8   : > { %8526 = vmatpush3.bf16.msra.mxu1 %v9111_v41  ;;  %8493 = vmatprep.mubr.bf16.mxu1 %v9447_v25  ;;  %v1713_v25 = vrot.slane %v9824_v6, 1  ;;  %v9115_v6 = vld [vmem:[%s11203_s2 + $0x1a0] sm:$0xff]   ;;  %v9173_v41 = vld [vmem:[%s11203_s2 + $0xe8] sm:$0xff]  }
 0x1e9   : > { %8527 = vmatprep.subr.bf16.mxu1 %v9112_v27  ;;  %8373 = vmatprep.subr.bf16.mxu0 %v9170_v47 }
 0x1ea   : > { %8338 = vmatmul.mubr.bf16.gmra.mrb[88].mxu0 %v1710_v19  ;;  %v1714_v24 = vsel %vm1701_vm6, %v1711_v46, %v1713_v25  ;;  %v1716_v63 = vsel %vm1701_vm6, %v1713_v25, %v1715_v35  ;;  %v1727_v46 = vrot.slane %v9559_v42, 1  ;;  %v11241_v19 = vld [vmem:[#allocation17_spill] sm:$0xff]  ;;  %v1731_v25 = vrot.slane %v9597_v12, 1  ;;  %v11244_v35 = vld [vmem:[#allocation20_spill] sm:$0xff] }
 0x1eb   : > { %8341 = vmatprep.mubr.bf16.mxu0 %v1712_v43  ;;  %8374 = vmatpush3.bf16.msra.mxu0 %v9170_v47 }
 0x1ec   : > { %8528 = vmatpush3.bf16.msra.mxu1 %v9112_v27  ;;  %8375 = vmatprep.subr.bf16.mxu0 %v9171_v3  ;;  %v1725_v27 = vrot.slane %v9178_v1, 1  ;;  %v9129_v1 = vld [vmem:[%s11203_s2 + $0x1d0] sm:$0xff]  }
 0x1ed   : > { %8529 = vmatprep.subr.bf16.mxu1 %v9113_v9 }
 0x1ee   : > { %v1726_v47 = vsel %vm1701_vm6, %v1723_v37, %v1725_v27  ;;  %v1728_v43 = vsel %vm1701_vm6, %v1725_v27, %v1727_v46  ;;  %v3442_v37 = vrot.slane %v9995_v59, 2  ;;  %v11253_v27 = vld [vmem:[#allocation7_spill] sm:$0xff] }
 0x1ef   : > { %8494 = vmatmul.mubr.bf16.gmra.mrb[24].mxu1 %v11235_v33  ;;  %8376 = vmatpush3.bf16.msra.mxu0 %v9171_v3  ;;  %v1729_v3 = vrot.slane %v9577_v29, 1 }
 0x1f0   : > { %8497 = vmatprep.mubr.bf16.mxu1 %v11236_v50  ;;  %8530 = vmatpush3.bf16.msra.mxu1 %v9113_v9  ;;  %v11242_v9 = vld [vmem:[#allocation18_spill] sm:$0xff]  ;;  %v1733_v50 = vrot.slane %v9616_v21, 1 }
 0x1f1   : > { %8531 = vmatprep.subr.bf16.mxu1 %v9114_v62  ;;  %8377 = vmatprep.subr.bf16.mxu0 %v9172_v15  ;;  %v1730_v42 = vsel %vm1701_vm6, %v1727_v46, %v1729_v3  ;;  %v1732_v33 = vsel %vm1701_vm6, %v1729_v3, %v1731_v25  ;;  %v9981_v21 = vld [vmem:[#allocation2 + $0x18] sm:$0xff]  }
 0x1f2   : > { %8342 = vmatmul.mubr.bf16.gmra.mrb[92].mxu0 %v1714_v24  ;;  %v1735_v24 = vrot.slane %v9636_v18, 1  ;;  %v1734_v29 = vsel %vm1701_vm6, %v1731_v25, %v1733_v50  ;;  %v11249_v18 = vld [vmem:[#allocation27_spill] sm:$0xff] }
 0x1f3   : > { %8345 = vmatprep.mubr.bf16.mxu0 %v1716_v63  ;;  %8378 = vmatpush3.bf16.msra.mxu0 %v9172_v15  ;;  %v11246_v15 = vld [vmem:[#allocation22_spill] sm:$0xff]  ;;  %v10024_v25 = vld [vmem:[#allocation2 + $0x48] sm:$0xff]  }
 0x1f4   : > { %8532 = vmatpush3.bf16.msra.mxu1 %v9114_v62  ;;  %8379 = vmatprep.subr.bf16.mxu0 %v9173_v41  ;;  %v11243_v62 = vld [vmem:[#allocation19_spill] sm:$0xff]  ;;  %v1736_v12 = vsel %vm1701_vm6, %v1733_v50, %v1735_v24  ;;  %v11247_v63 = vld [vmem:[#allocation26_spill] sm:$0xff]  ;;  %v3450_v50 = vrot.slane %v10024_v25, 2 }
 0x1f5   : > { %8533 = vmatprep.subr.bf16.mxu1 %v9115_v6 }
 0x1f7   : > { %8498 = vmatmul.mubr.bf16.gmra.mrb[28].mxu1 %v11237_v2  ;;  %8380 = vmatpush3.bf16.msra.mxu0 %v9173_v41  ;;  %v1737_v41 = vrot.slane %v11247_v63, 1  ;;  %v9141_v63 = vld [vmem:[%s11203_s2 + $0x1f0] sm:$0xff]  }
 0x1f8   : > { %8501 = vmatprep.mubr.bf16.mxu1 %v11238_v5  ;;  %8534 = vmatpush3.bf16.msra.mxu1 %v9115_v6  ;;  %v11245_v6 = vld [vmem:[#allocation21_spill] sm:$0xff] }
 0x1f9   : > { %8535 = vmatprep.subr.bf16.mxu1 %v9116_v23  ;;  %8381 = vmatprep.subr.bf16.mxu0 %v9174_v52  ;;  %v1738_v2 = vsel %vm1701_vm6, %v1735_v24, %v1737_v41  ;;  %v9138_v24 = vld [vmem:[%s11203_s2 + $0x1e8] sm:$0xff]   ;;  %v11257_v41 = vld [vmem:[#allocation14_spill] sm:$0xff] }
 0x1fa   : > { %8346 = vmatmul.mubr.bf16.gmra.mrb[96].mxu0 %v1718_v49  ;;  %v11250_v49 = vld [vmem:[#allocation3_spill] sm:$0xff] }
 0x1fb   : > { %8349 = vmatprep.mubr.bf16.mxu0 %v1720_v36  ;;  %8382 = vmatpush3.bf16.msra.mxu0 %v9174_v52  ;;  %v9991_v36 = vld [vmem:[#allocation2 + $0x20] sm:$0xff]  }
 0x1fc   : > { %8536 = vmatpush3.bf16.msra.mxu1 %v9116_v23  ;;  %8383 = vmatprep.subr.bf16.mxu0 %v9175_v39  ;;  %v9978_v23 = vld [vmem:[#allocation2 + $0x14] sm:$0xf] }
 0x1fd   : > { %8537 = vmatprep.subr.bf16.mxu1 %v9117_v8  ;;  %v9986_v5 = vcombine.low %v3290_v45, %v9978_v23 }
 0x1ff   : > { %8502 = vmatmul.mubr.bf16.gmra.mrb[32].mxu1 %v11239_v4  ;;  %8384 = vmatpush3.bf16.msra.mxu0 %v9175_v39  ;;  %v3437_v52 = vrot.slane %v9986_v5, 2  ;;  %v9125_v4 = vld [vmem:[%s11203_s2 + $0x1c8] sm:$0xff]  }
 0x200   : > { %8505 = vmatprep.mubr.bf16.mxu1 %v11240_v56  ;;  %8538 = vmatpush3.bf16.msra.mxu1 %v9117_v8  ;;  %v3438_v8 = vrot.slane %v9981_v21, 2 }
 0x201   : > { %8539 = vmatprep.subr.bf16.mxu1 %v9118_v40 }
 0x202   : > { %8350 = vmatmul.mubr.bf16.gmra.mrb[100].mxu0 %v1722_v20  ;;  %v3439_v39 = vsel %vm2973_vm5, %v3437_v52, %v3438_v8  ;;  %v10058_v52 = vld [vmem:[%s11203_s2 + $0x200] sm:$0xff]  }
 0x203   : > { %8353 = vmatprep.mubr.bf16.mxu0 %v1724_v60  ;;  %v10008_v60 = vld [vmem:[#allocation2 + $0x38] sm:$0xff]  }
 0x204   : > { %8540 = vmatpush3.bf16.msra.mxu1 %v9118_v40  ;;  %v3440_v40 = vrot.slane %v9991_v36, 2 }
 0x205   : > { %8577 = vmatprep.subr.bf16.mxu1 %v9121_v14 }
 0x206   : > { %v3441_v56 = vsel %vm2973_vm5, %v3438_v8, %v3440_v40  ;;  %v3443_v20 = vsel %vm2973_vm5, %v3440_v40, %v3442_v37 }
 0x207   : > { %8506 = vmatmul.mubr.bf16.gmra.mrb[0].mxu1 %v11241_v19  ;;  %v11254_v19 = vld [vmem:[#allocation9_spill] sm:$0xff] }
 0x208   : > { %8509 = vmatprep.mubr.bf16.mxu1 %v11242_v9  ;;  %v3446_v9 = vrot.slane %v10008_v60, 2 }
 0x20a   : > { %8354 = vmatmul.mubr.bf16.gmra.mrb[104].mxu0 %v1726_v47 }
 0x20b   : > { %8357 = vmatprep.mubr.bf16.mxu0 %v1728_v43  ;;  %v10021_v43 = vld [vmem:[#allocation2 + $0x40] sm:$0xff]  }
 0x20f   : > { %8510 = vmatmul.mubr.bf16.gmra.mrb[4].mxu1 %v11243_v62  ;;  %v9135_v62 = vld [vmem:[%s11203_s2 + $0x1e0] sm:$0xff]  }
 0x210   : > { %8513 = vmatprep.mubr.bf16.mxu1 %v11244_v35  ;;  %v11255_v35 = vld [vmem:[#allocation11_spill] sm:$0xff] }
 0x212   : > { %8358 = vmatmul.mubr.bf16.gmra.mrb[108].mxu0 %v1730_v42  ;;  %v3448_v42 = vrot.slane %v10021_v43, 2 }
 0x213   : > { %8361 = vmatprep.mubr.bf16.mxu0 %v1732_v33  ;;  %v11256_v33 = vld [vmem:[#allocation13_spill] sm:$0xff] }
 0x217   : > { %8514 = vmatmul.mubr.bf16.gmra.mrb[8].mxu1 %v11245_v6  ;;  %v3449_v6 = vsel %vm2973_vm5, %v3446_v9, %v3448_v42 }
 0x218   : > { %8517 = vmatprep.mubr.bf16.mxu1 %v11246_v15  ;;  %v10037_v15 = vld [vmem:[#allocation2 + $0x50] sm:$0xff]  }
 0x219   : > { %v3452_v45 = vrot.slane %v10037_v15, 2 }
 0x21a   : > { %8362 = vmatmul.mubr.bf16.gmra.mrb[112].mxu0 %v1734_v29  ;;  %v3451_v29 = vsel %vm2973_vm5, %v3448_v42, %v3450_v50 }
 0x21b   : > { %8365 = vmatprep.mubr.bf16.mxu0 %v1736_v12  ;;  %v10040_v12 = vld [vmem:[#allocation2 + $0x58] sm:$0xff]  }
 0x21f   : > { %8518 = vmatmul.mubr.bf16.gmra.mrb[12].mxu1 %v11248_v58  ;;  %v3454_v58 = vrot.slane %v10040_v12, 2 }
 0x220   : > { %8521 = vmatprep.mubr.bf16.mxu1 %v11249_v18  ;;  %v9144_v18 = vld [vmem:[%s11203_s2 + $0x1f8] sm:$0xff]  }
 0x221   : > { %v3455_v8 = vsel %vm2973_vm5, %v3452_v45, %v3454_v58 }
 0x222   : > { %8366 = vmatmul.mubr.bf16.gmra.mrb[116].mxu0 %v1738_v2  ;;  %v3453_v2 = vsel %vm2973_vm5, %v3450_v50, %v3452_v45  ;;  %v3793_v50 = vshrl.u32 %v9991_v36, 16 }
 0x223   : > { %8385 = vmatprep.mubr.bf16.mxu0 %v11250_v49  ;;  %v10052_v49 = vld [vmem:[#allocation2 + $0x60] sm:$0xff]  }
 0x224   : > { %v3795_v45 = vrot.slane %v3793_v50, 2  ;;  %v9150_v50 = vld [vmem:[%s11203_s2 + $0x220] sm:$0xff]  }
 0x227   : > { %8522 = vmatmul.mubr.bf16.gmra.mrb[16].mxu1 %v9711_v31  ;;  %v10005_v31 = vld [vmem:[#allocation2 + $0x30] sm:$0xff]  }
 0x228   : > { %8541 = vmatprep.mubr.bf16.mxu1 %v3439_v39  ;;  %v3444_v46 = vrot.slane %v10005_v31, 2  ;;  %v3456_v39 = vrot.slane %v10052_v49, 2 }
 0x22a   : > { %8386 = vmatmul.mubr.bf16.vlgmr.msra.gmra.mrb[84].mxu0 %v11251_v22  ;;  %v3445_v47 = vsel %vm2973_vm5, %v3442_v37, %v3444_v46  ;;  %v3447_v3 = vsel %vm2973_vm5, %v3444_v46, %v3446_v9  ;;  %v3458_v22 = vrot.slane %v9609_v26, 2  ;;  %v3457_v40 = vsel %vm2973_vm5, %v3454_v58, %v3456_v39 }
 0x22b   : > { %8389 = vmatprep.mubr.bf16.mxu0 %v11252_v48  ;;  %v3460_v37 = vrot.slane %v9619_v30, 2  ;;  %v3468_v30 = vrot.slane %v9704_v28, 2  ;;  %v3784_v9 = vshrl.u32 %v9981_v21, 16 }
 0x22c   : > { %v3459_v48 = vsel %vm2973_vm5, %v3456_v39, %v3458_v22 }
 0x22f   : > { %8542 = vmatmul.mubr.bf16.vlgmr.msra.gmra.mrb[20].mxu1 %v3441_v56  ;;  %v3461_v56 = vsel %vm2973_vm5, %v3458_v22, %v3460_v37  ;;  %v3811_v22 = vshrl.u32 %v10005_v31, 16 }
 0x230   : > { %8578 = vmatpush3.bf16.msra.mxu1 %v9121_v14  ;;  %8545 = vmatprep.mubr.bf16.mxu1 %v3443_v20  ;;  %v9132_v14 = vld [vmem:[%s11203_s2 + $0x1d8] sm:$0xff]  }
 0x231   : > { %8579 = vmatprep.subr.bf16.mxu1 %v9125_v4 }
 0x232   : > { %8390 = vmatmul.mubr.bf16.gmra.mrb[88].mxu0 %v11253_v27  ;;  %v3466_v27 = vrot.slane %v9685_v16, 2 }
 0x233   : > { %8393 = vmatprep.mubr.bf16.mxu0 %v11254_v19 }
 0x234   : > { %8580 = vmatpush3.bf16.msra.mxu1 %v9125_v4  ;;  %v3462_v4 = vrot.slane %v9666_v13, 2  ;;  %v3470_v13 = vrot.slane %v9708_v0, 2  ;;  %v3469_v16 = vsel %vm2973_vm5, %v3466_v27, %v3468_v30 }
 0x235   : > { %8581 = vmatprep.subr.bf16.mxu1 %v9129_v1 }
 0x236   : > { %v3463_v20 = vsel %vm2973_vm5, %v3460_v37, %v3462_v4  ;;  %v3820_v37 = vshrl.u32 %v10008_v60, 16 }
 0x237   : > { %8546 = vmatmul.mubr.bf16.gmra.mrb[24].mxu1 %v3445_v47  ;;  %v3776_v47 = vshrl.u32 %v9986_v5, 16 }
 0x238   : > { %8549 = vmatprep.mubr.bf16.mxu1 %v3447_v3  ;;  %8582 = vmatpush3.bf16.msra.mxu1 %v9129_v1  ;;  %v3464_v1 = vrot.slane %v9672_v32, 2  ;;  %v3779_v32 = vshll.u32 %v9986_v5, 16  ;;  %v9145_v3 = vld [vmem:[#allocation2 + $0xa0] ss:$0 sps:$4 sm:$0x33]   ;;  %v3805_v5 = vshll.u32 %v9995_v59, 16 }
 0x239   : > { %8583 = vmatprep.subr.bf16.mxu1 %v9132_v14  ;;  %v3778_v28 = vrot.slane %v3776_v47, 2  ;;  %v3472_v0 = vrot.slane %v9145_v3, 2  ;;  %v3832_v47 = vshll.u32 %v10021_v43, 16  ;;  %v3841_v3 = vshll.u32 %v10024_v25, 16 }
 0x23a   : > { %8394 = vmatmul.mubr.bf16.gmra.mrb[92].mxu0 %v11255_v35  ;;  %v3465_v46 = vsel %vm2973_vm5, %v3462_v4, %v3464_v1  ;;  %v3467_v19 = vsel %vm2973_vm5, %v3464_v1, %v3466_v27  ;;  %v3786_v35 = vrot.slane %v3784_v9, 2  ;;  %v3823_v4 = vshll.u32 %v10008_v60, 16 }
 0x23b   : > { %8397 = vmatprep.mubr.bf16.mxu0 %v11256_v33  ;;  %v3781_v33 = vrot.slane %v3779_v32, 3  ;;  %v3813_v1 = vrot.slane %v3811_v22, 2 }
 0x23c   : > { %8584 = vmatpush3.bf16.msra.mxu1 %v9132_v14  ;;  %v3787_v14 = vshll.u32 %v9981_v21, 16 }
 0x23d   : > { %8585 = vmatprep.subr.bf16.mxu1 %v9135_v62 }
 0x23e   : > { %v3789_v42 = vrot.slane %v3787_v14, 3  ;;  %v3829_v14 = vshrl.u32 %v10021_v43, 16 }
 0x23f   : > { %8550 = vmatmul.mubr.bf16.gmra.mrb[28].mxu1 %v3449_v6 }
 0x240   : > { %8553 = vmatprep.mubr.bf16.mxu1 %v3451_v29  ;;  %8586 = vmatpush3.bf16.msra.mxu1 %v9135_v62  ;;  %v3471_v62 = vsel %vm2973_vm5, %v3468_v30, %v3470_v13  ;;  %v3790_v6 = vor.u32 %v3789_v42, %v3786_v35  ;;  %v3802_v29 = vshrl.u32 %v9995_v59, 16  ;;  %v3825_v30 = vrot.slane %v3823_v4, 3 }
 0x241   : > { %8587 = vmatprep.subr.bf16.mxu1 %v9138_v24  ;;  %v3831_v35 = vrot.slane %v3829_v14, 2  ;;  %v3834_v42 = vrot.slane %v3832_v47, 3  ;;  %v3868_v4 = vshll.u32 %v10052_v49, 16  ;;  %v11259_v47 = vld [vmem:[#allocation25_spill] sm:$0xff] }
 0x242   : > { %8398 = vmatmul.mubr.bf16.gmra.mrb[96].mxu0 %v11257_v41  ;;  %v3473_v41 = vsel %vm2973_vm5, %v3470_v13, %v3472_v0  ;;  %v9148_v13 = vld [vmem:[%s11203_s2 + $0x210] sm:$0xff]   ;;  %v3843_v0 = vrot.slane %v3841_v3, 3 }
 0x244   : > { %8588 = vmatpush3.bf16.msra.mxu1 %v9138_v24  ;;  %v3796_v24 = vshll.u32 %v9991_v36, 16 }
 0x245   : > { %8589 = vmatprep.subr.bf16.mxu1 %v9141_v63 }
 0x246   : > { %v3798_v58 = vrot.slane %v3796_v24, 3  ;;  %v3835_v24 = vor.u32 %v3834_v42, %v3831_v35 }
 0x247   : > { %8554 = vmatmul.mubr.bf16.gmra.mrb[32].mxu1 %v3453_v2  ;;  %v3804_v2 = vrot.slane %v3802_v29, 2  ;;  %v3850_v29 = vshll.u32 %v10037_v15, 16 }
 0x248   : > { %8557 = vmatprep.mubr.bf16.mxu1 %v3455_v8  ;;  %8590 = vmatpush3.bf16.msra.mxu1 %v9141_v63  ;;  %v3782_v63 = vor.u32 %v3781_v33, %v3778_v28  ;;  %v3807_v8 = vrot.slane %v3805_v5, 3  ;;  %v3799_v39 = vor.u32 %v3798_v58, %v3795_v45  ;;  %v9151_v45 = vld [vmem:[%s11203_s2 + $0x228] sm:$0xff]  }
 0x249   : > { %8591 = vmatprep.subr.bf16.mxu1 %v9144_v18 }
 0x24c   : > { %8592 = vmatpush3.bf16.msra.mxu1 %v9144_v18  ;;  %v3791_v18 = vsel %vm3774_vm8, %v3782_v63, %v3790_v6  ;;  %v3856_v63 = vshrl.u32 %v10040_v12, 16 }
 0x24d   : > { %8629 = vmatprep.subr.bf16.mxu1 %v10058_v52 }
 0x24f   : > { %8558 = vmatmul.mubr.bf16.gmra.mrb[0].mxu1 %v3457_v40  ;;  %v3814_v40 = vshll.u32 %v10005_v31, 16 }
 0x250   : > { %8561 = vmatprep.mubr.bf16.mxu1 %v3459_v48  ;;  %v3808_v48 = vor.u32 %v3807_v8, %v3804_v2  ;;  %v3852_v2 = vrot.slane %v3850_v29, 3 }
 0x251   : > { %v3816_v27 = vrot.slane %v3814_v40, 3  ;;  %v9152_v40 = vld [vmem:[%s11203_s2 + $0x230] sm:$0xff]  }
 0x253   : > { %v3817_v9 = vor.u32 %v3816_v27, %v3813_v1 }
 0x257   : > { %8562 = vmatmul.mubr.bf16.gmra.mrb[4].mxu1 %v3461_v56  ;;  %v9147_v56 = vld [vmem:[%s11203_s2 + $0x208] sm:$0xff]  }
 0x258   : > { %8565 = vmatprep.mubr.bf16.mxu1 %v3463_v20  ;;  %v3800_v20 = vsel %vm3774_vm8, %v3790_v6, %v3799_v39  ;;  %v3847_v6 = vshrl.u32 %v10037_v15, 16 }
 0x25f   : > { %8566 = vmatmul.mubr.bf16.gmra.mrb[8].mxu1 %v3465_v46  ;;  %v3809_v46 = vsel %vm3774_vm8, %v3799_v39, %v3808_v48  ;;  %v3858_v39 = vrot.slane %v3856_v63, 2 }
 0x260   : > { %8569 = vmatprep.mubr.bf16.mxu1 %v3467_v19  ;;  %v3822_v19 = vrot.slane %v3820_v37, 2  ;;  %v3865_v37 = vshrl.u32 %v10052_v49, 16 }
 0x262   : > { %v3826_v32 = vor.u32 %v3825_v30, %v3822_v19  ;;  %v3867_v27 = vrot.slane %v3865_v37, 2 }
 0x264   : > { %v3827_v28 = vsel %vm3774_vm8, %v3817_v9, %v3826_v32  ;;  %v3836_v58 = vsel %vm3774_vm8, %v3826_v32, %v3835_v24  ;;  %v3937_v32 = vshrl.u32 %v9789_v44, 16 }
 0x266   : > { %v3939_v3 = vrot.slane %v3937_v32, 2 }
 0x267   : > { %8570 = vmatmul.mubr.bf16.gmra.mrb[12].mxu1 %v3469_v16  ;;  %v3838_v16 = vshrl.u32 %v10024_v25, 16 }
 0x268   : > { %8573 = vmatprep.mubr.bf16.mxu1 %v3471_v62  ;;  %v3818_v62 = vsel %vm3774_vm8, %v3808_v48, %v3817_v9  ;;  %v11258_v9 = vld [vmem:[#allocation24_spill] sm:$0xff] }
 0x269   : > { %v3840_v33 = vrot.slane %v3838_v16, 2  ;;  %v3940_v16 = vshll.u32 %v9789_v44, 16  ;;  %v4249_v44 = vrot.slane %v9991_v36, 3  ;;  %v4257_v36 = vrot.slane %v10021_v43, 3 }
 0x26b   : > { %v3844_v5 = vor.u32 %v3843_v0, %v3840_v33  ;;  %v4251_v33 = vrot.slane %v9995_v59, 3  ;;  %v4259_v59 = vrot.slane %v10024_v25, 3 }
 0x26d   : > { %v3845_v8 = vsel %vm3774_vm8, %v3835_v24, %v3844_v5  ;;  %v4260_v24 = vsel %vm4245_vm9, %v4257_v36, %v4259_v59 }
 0x26f   : > { %8574 = vmatmul.mubr.bf16.gmra.mrb[16].mxu1 %v3473_v41  ;;  %v3859_v41 = vshll.u32 %v10040_v12, 16 }
 0x270   : > { %8593 = vmatprep.mubr.bf16.mxu1 %v3791_v18  ;;  %v3849_v18 = vrot.slane %v3847_v6, 2 }
 0x271   : > { %v3861_v22 = vrot.slane %v3859_v41, 3  ;;  %v4265_v41 = vrot.slane %v10052_v49, 3 }
 0x272   : > { %v3853_v48 = vor.u32 %v3852_v2, %v3849_v18  ;;  %v11260_v18 = vrot.slane %v9609_v26, 3 }
 0x274   : > { %v3854_v1 = vsel %vm3774_vm8, %v3844_v5, %v3853_v48  ;;  %v4268_v2 = vsel %vm4245_vm9, %v4265_v41, %v11260_v18 }
 0x277   : > { %8594 = vmatmul.mubr.bf16.vlgmr.msra.gmra.mrb[20].mxu1 %v3800_v20  ;;  %v9153_v20 = vld [vmem:[%s11203_s2 + $0x238] sm:$0xff]  }
 0x278   : > { %8630 = vmatpush3.bf16.msra.mxu1 %v10058_v52  ;;  %8597 = vmatprep.mubr.bf16.mxu1 %v3809_v46  ;;  %v9149_v52 = vld [vmem:[%s11203_s2 + $0x218] sm:$0xff]   ;;  %v3870_v46 = vrot.slane %v3868_v4, 3 }
 0x279   : > { %8631 = vmatprep.subr.bf16.mxu1 %v9147_v56 }
 0x27a   : > { %v3871_v30 = vor.u32 %v3870_v46, %v3867_v27 }
 0x27c   : > { %8632 = vmatpush3.bf16.msra.mxu1 %v9147_v56  ;;  %v3862_v56 = vor.u32 %v3861_v22, %v3858_v39  ;;  %v3881_v14 = vsel %vm3774_vm8, %v3871_v30, %v11258_v9 }
 0x27d   : > { %8633 = vmatprep.subr.bf16.mxu1 %v9148_v13 }
 0x27e   : > { %v3863_v19 = vsel %vm3774_vm8, %v3853_v48, %v3862_v56 }
 0x27f   : > { %8598 = vmatmul.mubr.bf16.gmra.mrb[24].mxu1 %v3818_v62  ;;  %v4224_v62 = vld [vmem:[#allocation2 + $0x10] sm:$0x8] }
 0x280   : > { %8601 = vmatprep.mubr.bf16.mxu1 %v3827_v28  ;;  %8634 = vmatpush3.bf16.msra.mxu1 %v9148_v13  ;;  %v3872_v13 = vsel %vm3774_vm8, %v3862_v56, %v3871_v30  ;;  %v7532_v35 = vcombine.low %v4224_v62, %v9978_v23  ;;  %v4253_v23 = vrot.slane %v10005_v31, 3  ;;  %v4261_v31 = vrot.slane %v10037_v15, 3 }
 0x281   : > { %8635 = vmatprep.subr.bf16.mxu1 %v9149_v52  ;;  %v9193_v62 = vmov 1983009808  }
 0x282   : > { %v4246_v28 = vrot.slane %v7532_v35, 3  ;;  %v4262_v5 = vsel %vm4245_vm9, %v4259_v59, %v4261_v31  ;;  %v4600_v35 = vunpack.c.l.s4 %v9193_v62 }
 0x284   : > { %8636 = vmatpush3.bf16.msra.mxu1 %v9149_v52  ;;  %v3942_v52 = vrot.slane %v3940_v16, 3 }
 0x285   : > { %8637 = vmatprep.subr.bf16.mxu1 %v9150_v50 }
 0x286   : > { %v3943_v42 = vor.u32 %v3942_v52, %v3939_v3 }
 0x287   : > { %8602 = vmatmul.mubr.bf16.gmra.mrb[28].mxu1 %v3836_v58 }
 0x288   : > { %8605 = vmatprep.mubr.bf16.mxu1 %v3845_v8  ;;  %8638 = vmatpush3.bf16.msra.mxu1 %v9150_v50 }
 0x289   : > { %8639 = vmatprep.subr.bf16.mxu1 %v9151_v45 }
 0x28c   : > { %8640 = vmatpush3.bf16.msra.mxu1 %v9151_v45 }
 0x28d   : > { %8641 = vmatprep.subr.bf16.mxu1 %v9152_v40 }
 0x28f   : > { %8606 = vmatmul.mubr.bf16.gmra.mrb[32].mxu1 %v3854_v1 }
 0x290   : > { %8609 = vmatprep.mubr.bf16.mxu1 %v3863_v19  ;;  %8642 = vmatpush3.bf16.msra.mxu1 %v9152_v40  ;;  %v11265_v40 = vld [vmem:[#allocation28_spill] sm:$0xff] }
 0x291   : > { %8643 = vmatprep.subr.bf16.mxu1 %v9153_v20 }
 0x294   : > { %8644 = vmatpush3.bf16.msra.mxu1 %v9153_v20 }
 0x297   : > { %8610 = vmatmul.mubr.bf16.gmra.mrb[0].mxu1 %v3872_v13 }
 0x298   : > { %8613 = vmatprep.mubr.bf16.mxu1 %v3881_v14 }
 0x29f   : > { %8614 = vmatmul.mubr.bf16.gmra.mrb[4].mxu1 %v11259_v47 }
 0x2a0   : > { %8617 = vmatprep.mubr.bf16.mxu1 %v9720_v38  ;;  %v4247_v38 = vrot.slane %v9981_v21, 3  ;;  %v4255_v21 = vrot.slane %v10008_v60, 3  ;;  %v4263_v60 = vrot.slane %v10040_v12, 3 }
 0x2a2   : > { %v4256_v0 = vsel %vm4245_vm9, %v4253_v23, %v4255_v21  ;;  %v4258_v50 = vsel %vm4245_vm9, %v4255_v21, %v4257_v36  ;;  %v4264_v43 = vsel %vm4245_vm9, %v4261_v31, %v4263_v60  ;;  %v4266_v12 = vsel %vm4245_vm9, %v4263_v60, %v4265_v41 }
 0x2a7   : > { %8618 = vmatmul.mubr.bf16.gmra.mrb[8].mxu1 %v9727_v51  ;;  %v3944_v51 = vsel %vm3774_vm8, %v9748_v11, %v3943_v42  ;;  %v4254_v11 = vsel %vm4245_vm9, %v4251_v33, %v4253_v23  ;;  %v4602_v42 = vlaneseq }
 0x2a8   : > { %8621 = vmatprep.mubr.bf16.mxu1 %v9743_v34  ;;  %v4248_v34 = vsel %vm4245_vm9, %v4246_v28, %v4247_v38 }
 0x2a9   : > { %v4603_v28 = vshrl.u32 %v4602_v42, 7 }
 0x2af   : > { %8622 = vmatmul.mubr.bf16.gmra.mrb[12].mxu1 %v9757_v57  ;;  %v4250_v57 = vsel %vm4245_vm9, %v4247_v38, %v4249_v44  ;;  %v4601_v38 = vunpack.c.0.s8 %v4600_v35 }
 0x2b0   : > { %8625 = vmatprep.mubr.bf16.mxu1 %v9766_v53  ;;  %v4252_v53 = vsel %vm4245_vm9, %v4249_v44, %v4251_v33 }
 0x2b7   : > { %8626 = vmatmul.mubr.bf16.gmra.mrb[16].mxu1 %v3944_v51  ;;  %v10239_v51 = vsub.s32 %v4601_v38, %v4603_v28 }
 0x2b8   : > { %8645 = vmatprep.mubr.bf16.mxu1 %v4248_v34 }
 0x2bf   : > { %8646 = vmatmul.mubr.bf16.vlgmr.msra.gmra.mrb[20].mxu1 %v4250_v57 }
 0x2c0   : > { %8649 = vmatprep.mubr.bf16.mxu1 %v4252_v53 }
 0x2c7   : > { %8650 = vmatmul.mubr.bf16.gmra.mrb[24].mxu1 %v4254_v11 }
 0x2c8   : > { %8653 = vmatprep.mubr.bf16.mxu1 %v4256_v0 }
 0x2cf   : > { %8654 = vmatmul.mubr.bf16.gmra.mrb[28].mxu1 %v4258_v50 }
 0x2d0   : > { %8657 = vmatprep.mubr.bf16.mxu1 %v4260_v24 }
 0x2d5   : > { %v10161_v6 = vpop.f32.mrb[100].mxu0 }
 0x2d6   : > { %v10163_v29 = vpop.f32.mrb[101].mxu0 }
 0x2d7   : > { %v10166_v63 = vpop.f32.mrb[102].mxu0  ;;  %8658 = vmatmul.mubr.bf16.gmra.mrb[32].mxu1 %v4262_v5 }
 0x2d8   : > { %v10169_v25 = vpop.f32.mrb[103].mxu0  ;;  %8661 = vmatprep.mubr.bf16.mxu1 %v4264_v43 }
 0x2dd   : > { %v10172_v45 = vpop.f32.mrb[104].mxu0 }
 0x2de   : > { %v10174_v15 = vpop.f32.mrb[105].mxu0 }
 0x2df   : > { %v10177_v58 = vpop.f32.mrb[106].mxu0  ;;  %8662 = vmatmul.mubr.bf16.gmra.mrb[0].mxu1 %v4266_v12 }
 0x2e0   : > { %v10182_v8 = vpop.f32.mrb[107].mxu0  ;;  %8665 = vmatprep.mubr.bf16.mxu1 %v4268_v2 }
 0x2e1   : > { %11261 = vst [vmem:[#allocation6_spill] sm:$0xff] %v10182_v8 }
 0x2e5   : > { %v10184_v39 = vpop.f32.mrb[108].mxu0 }
 0x2e6   : > { %11262 = vst [vmem:[#allocation8_spill] sm:$0xff] %v10184_v39  ;;  %v10186_v22 = vpop.f32.mrb[109].mxu0 }
 0x2e7   : > { %11263 = vst [vmem:[#allocation10_spill] sm:$0xff] %v10186_v22  ;;  %v10188_v49 = vpop.f32.mrb[110].mxu0  ;;  %8666 = vmatmul.mubr.bf16.gmra.mrb[4].mxu1 %v11265_v40 }
 0x2e8   : > { %11264 = vst [vmem:[#allocation12_spill] sm:$0xff] %v10188_v49  ;;  %v10191_v48 = vpop.f32.mrb[111].mxu0  ;;  %8669 = vmatprep.mubr.bf16.mxu1 %v9799_v54 }
 0x2e9   : > { %11266 = vst [vmem:[#allocation15_spill] sm:$0xff] %v10191_v48 }
 0x2ed   : > { %v10194_v37 = vpop.f32.mrb[112].mxu0 }
 0x2ee   : > { %11267 = vst [vmem:[#allocation16_spill] sm:$0xff] %v10194_v37  ;;  %v10196_v26 = vpop.f32.mrb[113].mxu0 }
 0x2ef   : > { %11268 = vst [vmem:[#allocation17_spill] sm:$0xff] %v10196_v26  ;;  %v10198_v4 = vpop.f32.mrb[114].mxu0  ;;  %8670 = vmatmul.mubr.bf16.gmra.mrb[8].mxu1 %v9802_v7 }
 0x2f0   : > { %11269 = vst [vmem:[#allocation18_spill] sm:$0xff] %v10198_v4  ;;  %v10201_v56 = vpop.f32.mrb[115].mxu0  ;;  %8673 = vmatprep.mubr.bf16.mxu1 %v9809_v61 }
 0x2f1   : > { %11270 = vst [vmem:[#allocation19_spill] sm:$0xff] %v10201_v56 }
 0x2f5   : > { %v10204_v20 = vpop.f32.mrb[116].mxu0 }
 0x2f6   : > { %11271 = vst [vmem:[#allocation20_spill] sm:$0xff] %v10204_v20  ;;  %v10206_v1 = vpop.f32.mrb[117].mxu0 }
 0x2f7   : > { %11272 = vst [vmem:[#allocation21_spill] sm:$0xff] %v10206_v1  ;;  %v10208_v27 = vpop.f32.mrb[118].mxu0  ;;  %8674 = vmatmul.mubr.bf16.gmra.mrb[12].mxu1 %v9812_v10 }
 0x2f8   : > { %11273 = vst [vmem:[#allocation22_spill] sm:$0xff] %v10208_v27  ;;  %v10211_v54 = vpop.f32.mrb[119].mxu0  ;;  %8677 = vmatprep.mubr.bf16.mxu1 %v9818_v55 }
 0x2f9   : > { %11274 = vst [vmem:[#allocation26_spill] sm:$0xff] %v10211_v54 }
 0x2fd   : > { %v8387_v46 = vpop.f32.mrb[84].mxu0 }
 0x2fe   : > { %v2302_v19 = vpop.f32.mrb[85].mxu0 }
 0x2ff   : > { %v8388_v30 = vpop.f32.mrb[86].mxu0  ;;  %8678 = vmatmul.mubr.bf16.gmra.mrb[16].mxu1 %v9828_v17 }
 0x300   : > { %v2305_v7 = vpop.f32.mrb[87].mxu0 }
 0x305   : > { %v10215_v13 = vpop.f32.mrb[88].mxu0 }
 0x306   : > { %v10217_v61 = vpop.f32.mrb[89].mxu0 }
 0x307   : > { %v10219_v9 = vpop.f32.mrb[90].mxu0 }
 0x308   : > { %v10221_v14 = vpop.f32.mrb[91].mxu0 }
 0x30d   : > { %v10223_v47 = vpop.f32.mrb[92].mxu0 }
 0x30e   : > { %v10225_v10 = vpop.f32.mrb[93].mxu0 }
 0x30f   : > { %v10227_v32 = vpop.f32.mrb[94].mxu0 }
 0x310   : > { %v10229_v55 = vpop.f32.mrb[95].mxu0 }
 0x315   : > { %v10231_v16 = vpop.f32.mrb[96].mxu0 }
 0x316   : > { %v10233_v17 = vpop.f32.mrb[97].mxu0 }
 0x317   : > { %v10235_v3 = vpop.f32.mrb[98].mxu0 }
 0x318   : > { %v10237_v52 = vpop.f32.mrb[99].mxu0 }
 0x392   : > { %v8647_v34 = vpop.f32.mrb[20].mxu1 }
 0x393   : > { %v8697_v44 = vadd.f32 %v8647_v34, %v8387_v46  ;;  %v4383_v33 = vpop.f32.mrb[21].mxu1 }
 0x394   : > { %v8698_v57 = vadd.f32 %v4383_v33, %v2302_v19  ;;  %v8648_v53 = vpop.f32.mrb[22].mxu1 }
 0x395   : > { %v4632_v23 = vcombine.high %v8697_v44, %v8697_v44  ;;  %v4639_v21 = vrot.slane %v8697_v44, %v10239_v51  ;;  %v10242_v11 = vadd.f32 %v8648_v53, %v8388_v30  ;;  %v4386_v0 = vpop.f32.mrb[23].mxu1 }
 0x396   : > { %v4598_v36 = vcombine.high %v8698_v57, %v8698_v57  ;;  %v4605_v59 = vrot.slane %v8698_v57, %v10239_v51  ;;  %v10245_v50 = vadd.f32 %v4386_v0, %v2305_v7 }
 0x397   : > { %v4646_v24 = vrot.slane %v4632_v23, %v10239_v51  ;;  %v4647_v31 = vcombine.high %v4639_v21, %v4639_v21 }
 0x398   : > { %v4612_v60 = vrot.slane %v4598_v36, %v10239_v51  ;;  %v4613_v5 = vcombine.high %v4605_v59, %v4605_v59  ;;  %v5354_v43 = vsel %vm428_vm0, %v4605_v59, -inf }
 0x399   : > { %v4648_v41 = vcombine.high %v4646_v24, %v4646_v24  ;;  %v5417_v12 = vsel %vm428_vm0, %v4647_v31, -inf  ;;  %v5424_v18 = vsel %vm428_vm0, %v4646_v24, -inf  ;;  %v5355_v2 = vrot.slane %v5354_v43, 4 }
 0x39a   : > { %v5418_v40 = vrot.slane %v5417_v12, 4  ;;  %v5425_v46 = vrot.slane %v5424_v18, 4  ;;  %v4614_v19 = vcombine.high %v4612_v60, %v4612_v60  ;;  %v10252_v30 = vpop.f32.mrb[24].mxu1  ;;  %v5361_v35 = vsel %vm428_vm0, %v4613_v5, -inf }
 0x39b   : > { %v5431_v7 = vsel %vm428_vm0, %v4648_v41, -inf  ;;  %v5356_v62 = vmax.f32 %v5354_v43, %v5355_v2  ;;  %v5368_v42 = vsel %vm428_vm0, %v4612_v60, -inf  ;;  %v10257_v38 = vpop.f32.mrb[25].mxu1  ;;  %v5362_v53 = vrot.slane %v5361_v35, 4 }
 0x39c   : > { %v5419_v28 = vmax.f32 %v5417_v12, %v5418_v40  ;;  %v5426_v34 = vmax.f32 %v5424_v18, %v5425_v46  ;;  %v5432_v44 = vrot.slane %v5431_v7, 4  ;;  %v10259_v33 = vpop.f32.mrb[26].mxu1  ;;  %v5369_v23 = vrot.slane %v5368_v42, 4 }
 0x39d   : > { %v5357_v57 = vrot.slane %v5356_v62, 2  ;;  %v5375_v0 = vsel %vm428_vm0, %v4614_v19, -inf  ;;  %v10262_v36 = vpop.f32.mrb[27].mxu1  ;;  %v5363_v43 = vmax.f32 %v5361_v35, %v5362_v53  ;;  %v4649_v40 = vcombine.high %v10242_v11, %v10242_v11 }
 0x39e   : > { %v5420_v59 = vrot.slane %v5419_v28, 2  ;;  %v5427_v24 = vrot.slane %v5426_v34, 2  ;;  %v5433_v31 = vmax.f32 %v5431_v7, %v5432_v44  ;;  %v5370_v60 = vmax.f32 %v5368_v42, %v5369_v23 }
 0x39f   : > { %v5358_v5 = vmax.f32 %v5356_v62, %v5357_v57  ;;  %v5376_v41 = vrot.slane %v5375_v0, 4  ;;  %v5364_v54 = vrot.slane %v5363_v43, 2  ;;  %v5410_v19 = vsel %vm428_vm0, %v4639_v21, -inf  ;;  %v10278_v21 = vld [vmem:[%s11204_s3] ss:$0 sm:$0xff] }
 0x3a0   : > { %v5421_v2 = vmax.f32 %v5419_v28, %v5420_v59  ;;  %v5428_v12 = vmax.f32 %v5426_v34, %v5427_v24  ;;  %v5434_v18 = vrot.slane %v5433_v31, 2  ;;  %v5371_v27 = vrot.slane %v5370_v60, 2 }
 0x3a1   : > { %v5359_v46 = vrot.slane %v5358_v5, 1  ;;  %v5377_v1 = vmax.f32 %v5375_v0, %v5376_v41  ;;  %v5365_v35 = vmax.f32 %v5363_v43, %v5364_v54  ;;  %v4656_v23 = vrot.slane %v10242_v11, %v10239_v51 }
 0x3a2   : > { %v5422_v20 = vrot.slane %v5421_v2, 1  ;;  %v5429_v56 = vrot.slane %v5428_v12, 1  ;;  %v5435_v4 = vmax.f32 %v5433_v31, %v5434_v18  ;;  %v10267_v7 = vpop.f32.mrb[28].mxu1  ;;  %v5372_v42 = vmax.f32 %v5370_v60, %v5371_v27 }
 0x3a3   : > { %v5360_v62 = vmax.f32 %v5358_v5, %v5359_v46  ;;  %v5378_v28 = vrot.slane %v5377_v1, 2  ;;  %v10269_v34 = vpop.f32.mrb[29].mxu1  ;;  %v5366_v59 = vrot.slane %v5365_v35, 1  ;;  %v4663_v27 = vrot.slane %v4649_v40, %v10239_v51 }
 0x3a4   : > { %v5423_v44 = vmax.f32 %v5421_v2, %v5422_v20  ;;  %v5430_v57 = vmax.f32 %v5428_v12, %v5429_v56  ;;  %v5436_v53 = vrot.slane %v5435_v4, 1  ;;  %v10273_v0 = vpop.f32.mrb[30].mxu1  ;;  %v5373_v24 = vrot.slane %v5372_v42, 1 }
 0x3a5   : > { %v5379_v54 = vmax.f32 %v5377_v1, %v5378_v28  ;;  %v10281_v31 = vpop.f32.mrb[31].mxu1  ;;  %v4664_v5 = vcombine.high %v4656_v23, %v4656_v23  ;;  %v5438_v43 = vsel %vm428_vm0, %v4656_v23, -inf  ;;  %v5411_v11 = vrot.slane %v5410_v19, 4 }
 0x3a6   : > { %v5437_v20 = vmax.f32 %v5435_v4, %v5436_v53  ;;  %v6362_v56 = vmax.f32 %v5360_v62, %v5423_v44  ;;  %v5367_v60 = vmax.f32 %v5365_v35, %v5366_v59  ;;  %v5374_v41 = vmax.f32 %v5372_v42, %v5373_v24 }
 0x3a7   : > { %v4665_v2 = vcombine.high %v4663_v27, %v4663_v27  ;;  %v5439_v18 = vrot.slane %v5438_v43, 4  ;;  %v5445_v46 = vsel %vm428_vm0, %v4664_v5, -inf  ;;  %v5452_v1 = vsel %vm428_vm0, %v4663_v27, -inf }
 0x3a8   : > { %v6440_v12 = vadd.f32 %v10278_v21, %v6362_v56  ;;  %v5380_v28 = vrot.slane %v5379_v54, 1  ;;  %v6363_v40 = vmax.f32 %v5367_v60, %v5430_v57  ;;  %v6364_v26 = vmax.f32 %v5374_v41, %v5437_v20 }
 0x3a9   : > { %v5446_v37 = vrot.slane %v5445_v46, 4  ;;  %v5440_v62 = vmax.f32 %v5438_v43, %v5439_v18  ;;  %v5453_v44 = vrot.slane %v5452_v1, 4  ;;  %v5459_v53 = vsel %vm428_vm0, %v4665_v2, -inf }
 0x3aa   : > { %v6512_v4 = vmax.f32 %v6440_v12, 0.0  ;;  %v6441_v35 = vadd.f32 %v10278_v21, %v6363_v40  ;;  %v6442_v42 = vadd.f32 %v10278_v21, %v6364_v26  ;;  %v5460_v59 = vrot.slane %v5459_v53, 4  ;;  %v10290_v24 = vpop.f32.mrb[32].mxu1 }
 0x3ab   : > { %v5447_v23 = vmax.f32 %v5445_v46, %v5446_v37  ;;  %v10292_v56 = vmax.f32 %v5410_v19, %v5411_v11  ;;  %v5441_v27 = vrot.slane %v5440_v62, 2  ;;  %v5454_v57 = vmax.f32 %v5452_v1, %v5453_v44  ;;  %v10296_v5 = vpop.f32.mrb[33].mxu1 }
 0x3ac   : > { %v4615_v20 = vcombine.high %v10245_v50, %v10245_v50  ;;  %v6513_v43 = vmax.f32 %v6441_v35, 0.0  ;;  %v6514_v60 = vmax.f32 %v6442_v42, 0.0  ;;  %v5461_v2 = vmax.f32 %v5459_v53, %v5460_v59 }
 0x3ad   : > { %v5448_v41 = vrot.slane %v5447_v23, 2  ;;  %v7666_v12 = vpack.c.bf16 %v6512_v4, %v6512_v4  ;;  %v5442_v18 = vmax.f32 %v5440_v62, %v5441_v27  ;;  %v5455_v26 = vrot.slane %v5454_v57, 2 }
 0x3ae   : > { %v4622_v37 = vrot.slane %v10245_v50, %v10239_v51  ;;  %v7667_v46 = vpack.c.bf16 %v6513_v43, %v6513_v43  ;;  %v7668_v19 = vpack.c.bf16 %v6514_v60, %v6514_v60  ;;  %v5381_v11 = vmax.f32 %v5379_v54, %v5380_v28 }
 0x3af   : > { %v5449_v40 = vmax.f32 %v5447_v23, %v5448_v41  ;;  %v5443_v1 = vrot.slane %v5442_v18, 1  ;;  %v5462_v44 = vrot.slane %v5461_v2, 2  ;;  %v4629_v48 = vrot.slane %v4615_v20, %v10239_v51 }
 0x3b0   : > { %v4630_v49 = vcombine.high %v4622_v37, %v4622_v37  ;;  %v6873_v22 = vunpack.c.l.b16 %v7667_v46  ;;  %v6874_v35 = vunpack.c.l.b16 %v7668_v19  ;;  %v5456_v42 = vmax.f32 %v5454_v57, %v5455_v26 }
 0x3b1   : > { %v5413_v4 = vrot.slane %v10292_v56, 2  ;;  %v6872_v62 = vunpack.c.l.b16 %v7666_v12  ;;  %v5444_v53 = vmax.f32 %v5442_v18, %v5443_v1  ;;  %v5382_v59 = vsel %vm428_vm0, %v4622_v37, -inf }
 0x3b2   : > { %v6944_v50 = vrot.slane %v6873_v22, 7  ;;  %v6947_v27 = vrot.slane %v6874_v35, 6  ;;  %v5450_v43 = vrot.slane %v5449_v40, 1  ;;  %v4631_v54 = vcombine.high %v4629_v48, %v4629_v48 }
 0x3b3   : > { %v5463_v28 = vmax.f32 %v5461_v2, %v5462_v44  ;;  %v6365_v23 = vmax.f32 %v5381_v11, %v5444_v53  ;;  %v5383_v60 = vrot.slane %v5382_v59, 4  ;;  %v5389_v20 = vsel %vm428_vm0, %v4630_v49, -inf }
 0x3b4   : > { %v6946_v41 = vsel %vm6945_vm10, %v6944_v50, %v6872_v62  ;;  %v5457_v46 = vrot.slane %v5456_v42, 1  ;;  %v5390_v57 = vrot.slane %v5389_v20, 4  ;;  %v5396_v26 = vsel %vm428_vm0, %v4629_v48, -inf }
 0x3b5   : > { %v6949_v12 = vsel %vm6948_vm11, %v6947_v27, %v6946_v41  ;;  %v6443_v18 = vadd.f32 %v10278_v21, %v6365_v23  ;;  %v5384_v22 = vmax.f32 %v5382_v59, %v5383_v60  ;;  %v5397_v37 = vrot.slane %v5396_v26, 4 }
 0x3b6   : > { %v5391_v19 = vmax.f32 %v5389_v20, %v5390_v57  ;;  %v5403_v2 = vsel %vm428_vm0, %v4631_v54, -inf  ;;  %v8701_v11 = vadd.f32 %v10252_v30, %v10215_v13  ;;  %v8702_v49 = vadd.f32 %v10257_v38, %v10217_v61 }
 0x3b7   : > { %v6515_v1 = vmax.f32 %v6443_v18, 0.0  ;;  %v5385_v44 = vrot.slane %v5384_v22, 2  ;;  %v5398_v35 = vmax.f32 %v5396_v26, %v5397_v37  ;;  %v5404_v62 = vrot.slane %v5403_v2, 4  ;;  %v10315_v26 = vpop.f32.mrb[34].mxu1 }
 0x3b8   : > { %v5464_v48 = vrot.slane %v5463_v28, 1  ;;  %v5392_v53 = vrot.slane %v5391_v19, 2  ;;  %v4700_v50 = vcombine.high %v8701_v11, %v8701_v11  ;;  %v4707_v27 = vrot.slane %v8701_v11, %v10239_v51 }
 0x3b9   : > { %v5451_v59 = vmax.f32 %v5449_v40, %v5450_v43  ;;  %v7669_v23 = vpack.c.bf16 %v6515_v1, %v6515_v1  ;;  %v5386_v60 = vmax.f32 %v5384_v22, %v5385_v44  ;;  %v5399_v20 = vrot.slane %v5398_v35, 2  ;;  %v10318_v40 = vpop.f32.mrb[35].mxu1 }
 0x3ba   : > { %v5393_v54 = vmax.f32 %v5391_v19, %v5392_v53  ;;  %v5405_v41 = vmax.f32 %v5403_v2, %v5404_v62  ;;  %v4714_v13 = vrot.slane %v4700_v50, %v10239_v51  ;;  %v4715_v30 = vcombine.high %v4707_v27, %v4707_v27 }
 0x3bb   : > { %v5458_v57 = vmax.f32 %v5456_v42, %v5457_v46  ;;  %v6875_v61 = vunpack.c.l.b16 %v7669_v23  ;;  %v5387_v38 = vrot.slane %v5386_v60, 1  ;;  %v5400_v18 = vmax.f32 %v5398_v35, %v5399_v20  ;;  %v10325_v20 = vpop.f32.mrb[0].mxu1 }
 0x3bc   : > { %v5465_v37 = vmax.f32 %v5463_v28, %v5464_v48  ;;  %v5394_v39 = vrot.slane %v5393_v54, 1  ;;  %v4716_v8 = vcombine.high %v4714_v13, %v4714_v13  ;;  %v5522_v11 = vsel %vm428_vm0, %v4707_v27, -inf }
 0x3bd   : > { %v6950_v43 = vrot.slane %v6875_v61, 5  ;;  %v5388_v22 = vmax.f32 %v5386_v60, %v5387_v38  ;;  %v5401_v19 = vrot.slane %v5400_v18, 1  ;;  %v5529_v2 = vsel %vm428_vm0, %v4715_v30, -inf }
 0x3be   : > { %v5414_v1 = vmax.f32 %v10292_v56, %v5413_v4  ;;  %v5395_v42 = vmax.f32 %v5393_v54, %v5394_v39  ;;  %v5406_v46 = vrot.slane %v5405_v41, 2  ;;  %v5523_v48 = vrot.slane %v5522_v11, 4 }
 0x3bf   : > { %v6952_v44 = vsel %vm6951_vm12, %v6950_v43, %v6949_v12  ;;  %v5402_v35 = vmax.f32 %v5400_v18, %v5401_v19  ;;  %v6366_v62 = vmax.f32 %v5388_v22, %v5451_v59  ;;  %v5530_v53 = vrot.slane %v5529_v2, 4  ;;  %v10329_v59 = vpop.f32.mrb[1].mxu1 }
 0x3c0   : > { %v6367_v28 = vmax.f32 %v5395_v42, %v5458_v57  ;;  %v4666_v50 = vcombine.high %v8702_v49, %v8702_v49  ;;  %v5543_v60 = vsel %vm428_vm0, %v4716_v8, -inf  ;;  %v5415_v56 = vrot.slane %v5414_v1, 1 }
 0x3c1   : > { %v6368_v27 = vmax.f32 %v5402_v35, %v5465_v37  ;;  %v6444_v23 = vadd.f32 %v10278_v21, %v6366_v62  ;;  %v5407_v39 = vmax.f32 %v5405_v41, %v5406_v46  ;;  %v4673_v12 = vrot.slane %v8702_v49, %v10239_v51 }
 0x3c2   : > { %v6445_v4 = vadd.f32 %v10278_v21, %v6367_v28  ;;  %v5536_v57 = vsel %vm428_vm0, %v4714_v13, -inf  ;;  %v5544_v61 = vrot.slane %v5543_v60, 4  ;;  %v10333_v18 = vmax.f32 %v5522_v11, %v5523_v48 }
 0x3c3   : > { %v6446_v54 = vadd.f32 %v10278_v21, %v6368_v27  ;;  %v6516_v30 = vmax.f32 %v6444_v23, 0.0  ;;  %v10335_v8 = vmax.f32 %v5529_v2, %v5530_v53  ;;  %v4680_v37 = vrot.slane %v4666_v50, %v10239_v51 }
 0x3c4   : > { %v6517_v38 = vmax.f32 %v6445_v4, 0.0  ;;  %v5545_v22 = vmax.f32 %v5543_v60, %v5544_v61  ;;  %v10338_v49 = vmax.f32 %v5414_v1, %v5415_v56  ;;  %v5537_v42 = vrot.slane %v5536_v57, 4 }
 0x3c5   : > { %v6518_v41 = vmax.f32 %v6446_v54, 0.0  ;;  %v7670_v43 = vpack.c.bf16 %v6516_v30, %v6516_v30  ;;  %v4681_v46 = vcombine.high %v4673_v12, %v4673_v12  ;;  %v5408_v35 = vrot.slane %v5407_v39, 1 }
 0x3c6   : > { %v7671_v19 = vpack.c.bf16 %v6517_v38, %v6517_v38  ;;  %v5546_v28 = vrot.slane %v5545_v22, 2  ;;  %v5525_v11 = vrot.slane %v10333_v18, 2  ;;  %v5532_v2 = vrot.slane %v10335_v8, 2 }
 0x3c7   : > { %v7672_v62 = vpack.c.bf16 %v6518_v41, %v6518_v41  ;;  %v6876_v13 = vunpack.c.l.b16 %v7670_v43  ;;  %v4682_v48 = vcombine.high %v4680_v37, %v4680_v37  ;;  %v5466_v60 = vsel %vm428_vm0, %v4673_v12, -inf }
 0x3c8   : > { %v6877_v27 = vunpack.c.l.b16 %v7671_v19  ;;  %v5547_v23 = vmax.f32 %v5545_v22, %v5546_v28  ;;  %v10343_v56 = vmax.f32 %v5536_v57, %v5537_v42  ;;  %v5467_v4 = vrot.slane %v5466_v60, 4 }
 0x3c9   : > { %v6878_v53 = vunpack.c.l.b16 %v7672_v62  ;;  %v6953_v50 = vrot.slane %v6876_v13, 4  ;;  %v5473_v54 = vsel %vm428_vm0, %v4681_v46, -inf  ;;  %v5409_v38 = vmax.f32 %v5407_v39, %v5408_v35  ;;  %v10357_v35 = vpop.f32.mrb[2].mxu1 }
 0x3ca   : > { %v6956_v1 = vrot.slane %v6877_v27, 3  ;;  %v5474_v41 = vrot.slane %v5473_v54, 4  ;;  %v5468_v19 = vmax.f32 %v5466_v60, %v5467_v4  ;;  %v5480_v62 = vsel %vm428_vm0, %v4680_v37, -inf }
 0x3cb   : > { %v6955_v30 = vsel %vm6954_vm13, %v6953_v50, %v6952_v44  ;;  %v6959_v61 = vrot.slane %v6878_v53, 2  ;;  %v5487_v22 = vsel %vm428_vm0, %v4682_v48, -inf  ;;  %v5548_v57 = vrot.slane %v5547_v23, 1 }
 0x3cc   : > { %v6958_v43 = vsel %vm6957_vm14, %v6956_v1, %v6955_v30  ;;  %v5475_v42 = vmax.f32 %v5473_v54, %v5474_v41  ;;  %v5481_v13 = vrot.slane %v5480_v62, 4  ;;  %v5469_v28 = vrot.slane %v5468_v19, 2 }
 0x3cd   : > { %v10351_v12 = vsel %vm6960_vm15, %v6959_v61, %v6958_v43  ;;  %v5488_v46 = vrot.slane %v5487_v22, 4  ;;  %v8703_v44 = vadd.f32 %v10259_v33, %v10219_v9  ;;  %v8704_v39 = vadd.f32 %v10262_v36, %v10221_v14 }
 0x3ce   : > { %v5476_v27 = vrot.slane %v5475_v42, 2  ;;  %v5482_v37 = vmax.f32 %v5480_v62, %v5481_v13  ;;  %v10361_v48 = vadd.f32 %v10267_v7, %v10223_v47  ;;  %v10365_v53 = vadd.f32 %v10269_v34, %v10225_v10 }
 0x3cf   : > { %v5470_v50 = vmax.f32 %v5468_v19, %v5469_v28  ;;  %v5489_v60 = vmax.f32 %v5487_v22, %v5488_v46  ;;  %v4717_v1 = vcombine.high %v8703_v44, %v8703_v44  ;;  %v4724_v9 = vrot.slane %v8703_v44, %v10239_v51 }
 0x3d0   : > { %v5549_v33 = vmax.f32 %v5547_v23, %v5548_v57  ;;  %v5477_v4 = vmax.f32 %v5475_v42, %v5476_v27  ;;  %v5483_v14 = vrot.slane %v5482_v37, 2  ;;  %v4683_v36 = vcombine.high %v8704_v39, %v8704_v39 }
 0x3d1   : > { %v5471_v54 = vrot.slane %v5470_v50, 1  ;;  %v5490_v30 = vrot.slane %v5489_v60, 2  ;;  %v4731_v47 = vrot.slane %v4717_v1, %v10239_v51  ;;  %v4732_v7 = vcombine.high %v4724_v9, %v4724_v9 }
 0x3d2   : > { %v5478_v61 = vrot.slane %v5477_v4, 1  ;;  %v5484_v10 = vmax.f32 %v5482_v37, %v5483_v14  ;;  %v5550_v34 = vsel %vm428_vm0, %v4724_v9, -inf  ;;  %v10371_v41 = vrot.slane %v8704_v39, %v10239_v51  ;;  %v10376_v37 = vpop.f32.mrb[3].mxu1 }
 0x3d3   : > { %v5472_v43 = vmax.f32 %v5470_v50, %v5471_v54  ;;  %v5491_v23 = vmax.f32 %v5489_v60, %v5490_v30  ;;  %v4733_v19 = vcombine.high %v4731_v47, %v4731_v47  ;;  %v5551_v62 = vrot.slane %v5550_v34, 4 }
 0x3d4   : > { %v5479_v22 = vmax.f32 %v5477_v4, %v5478_v61  ;;  %v5485_v57 = vrot.slane %v5484_v10, 1  ;;  %v5557_v42 = vsel %vm428_vm0, %v4732_v7, -inf  ;;  %v5564_v13 = vsel %vm428_vm0, %v4731_v47, -inf }
 0x3d5   : > { %v5492_v28 = vrot.slane %v5491_v23, 1  ;;  %v6369_v46 = vmax.f32 %v5409_v38, %v5472_v43  ;;  %v5552_v44 = vmax.f32 %v5550_v34, %v5551_v62  ;;  %v5558_v27 = vrot.slane %v5557_v42, 4 }
 0x3d6   : > { %v5486_v1 = vmax.f32 %v5484_v10, %v5485_v57  ;;  %v6370_v39 = vmax.f32 %v10338_v49, %v5479_v22  ;;  %v5565_v50 = vrot.slane %v5564_v13, 4  ;;  %v5571_v60 = vsel %vm428_vm0, %v4733_v19, -inf }
 0x3d7   : > { %v6447_v9 = vadd.f32 %v10278_v21, %v6369_v46  ;;  %v5553_v4 = vrot.slane %v5552_v44, 2  ;;  %v5559_v14 = vmax.f32 %v5557_v42, %v5558_v27  ;;  %v4697_v54 = vrot.slane %v4683_v36, %v10239_v51 }
 0x3d8   : > { %v6371_v38 = vmax.f32 %v5486_v1, %v5549_v33  ;;  %v6448_v30 = vadd.f32 %v10278_v21, %v6370_v39  ;;  %v5566_v49 = vmax.f32 %v5564_v13, %v5565_v50  ;;  %v5572_v47 = vrot.slane %v5571_v60, 4  ;;  %v7099_v33 = vld [vmem:[%s10385_s23 + $0x4] sm:$0x1] }
 0x3d9   : > { %v6519_v7 = vmax.f32 %v6447_v9, 0.0  ;;  %v5493_v61 = vmax.f32 %v5491_v23, %v5492_v28  ;;  %v5554_v10 = vmax.f32 %v5552_v44, %v5553_v4  ;;  %v5560_v34 = vrot.slane %v5559_v14, 2 }
 0x3da   : > { %v6449_v43 = vadd.f32 %v10278_v21, %v6371_v38  ;;  %v6520_v19 = vmax.f32 %v6448_v30, 0.0  ;;  %v5567_v62 = vrot.slane %v5566_v49, 2  ;;  %v5573_v36 = vmax.f32 %v5571_v60, %v5572_v47 }
 0x3db   : > { %v7673_v22 = vpack.c.bf16 %v6519_v7, %v6519_v7  ;;  %v5555_v42 = vrot.slane %v5554_v10, 1  ;;  %v5561_v13 = vmax.f32 %v5559_v14, %v5560_v34  ;;  %v4698_v23 = vcombine.high %v10371_v41, %v10371_v41 }
 0x3dc   : > { %v6521_v28 = vmax.f32 %v6449_v43, 0.0  ;;  %v7738_v46 = vpack.c.bf16 %v6520_v19, %v6520_v19  ;;  %v5568_v44 = vmax.f32 %v5566_v49, %v5567_v62  ;;  %v5574_v27 = vrot.slane %v5573_v36, 2 }
 0x3dd   : > { %v10401_v1 = vmax.f32 %v10333_v18, %v5525_v11  ;;  %v6879_v39 = vunpack.c.l.b16 %v7673_v22  ;;  %v5556_v50 = vmax.f32 %v5554_v10, %v5555_v42  ;;  %v5494_v60 = vsel %vm428_vm0, %v10371_v41, -inf }
 0x3de   : > { %v10408_v9 = vmax.f32 %v10335_v8, %v5532_v2  ;;  %v7100_v4 = vsel %vm10391_vm4, %v7738_v46, %v7099_v33  ;;  %v5562_v14 = vrot.slane %v5561_v13, 1  ;;  %v4699_v38 = vcombine.high %v4697_v54, %v4697_v54 }
 0x3df   : > { %v5539_v30 = vrot.slane %v10343_v56, 2  ;;  %v6962_v49 = vrot.slane %v6879_v39, 1  ;;  %7101 = vst [vmem:[%s10385_s23 + $0x4] sm:$0x1] %v7100_v4  ;;  %v6372_v18 = vmax.f32 %v5493_v61, %v5556_v50  ;;  %v5495_v11 = vrot.slane %v5494_v60, 4 }
 0x3e0   : > { %v7675_v47 = vpack.c.bf16 %v6521_v28, %v6521_v28  ;;  %v5569_v7 = vrot.slane %v5568_v44, 1  ;;  %v5575_v41 = vmax.f32 %v5573_v36, %v5574_v27  ;;  %v5501_v10 = vsel %vm428_vm0, %v4698_v23, -inf }
 0x3e1   : > { %v6964_v8 = vsel %vm6963_vm3, %v6962_v49, %v10351_v12  ;;  %v6450_v2 = vadd.f32 %v10278_v21, %v6372_v18  ;;  %v5496_v34 = vmax.f32 %v5494_v60, %v5495_v11  ;;  %v5502_v43 = vrot.slane %v5501_v10, 4 }
 0x3e2   : > { %v7063_v19 = vpack.c.b16 %v6964_v8, %v6964_v8  ;;  %v5563_v62 = vmax.f32 %v5561_v13, %v5562_v14  ;;  %v5508_v22 = vsel %vm428_vm0, %v4697_v54, -inf  ;;  %v5515_v61 = vsel %vm428_vm0, %v4699_v38, -inf }
 0x3e3   : > { %v6522_v33 = vmax.f32 %v6450_v2, 0.0  ;;  %v5497_v42 = vrot.slane %v5496_v34, 2  ;;  %v5503_v28 = vmax.f32 %v5501_v10, %v5502_v43  ;;  %v5509_v46 = vrot.slane %v5508_v22, 4 }
 0x3e4   : > { %v6881_v36 = vunpack.c.l.b16 %v7675_v47  ;;  %7095 = vst [vmem:[%s10385_s23] sm:$0xf] %v7063_v19  ;;  %v5516_v23 = vrot.slane %v5515_v61, 4  ;;  %v4768_v12 = vcombine.high %v10361_v48, %v10361_v48  ;;  %v4775_v27 = vrot.slane %v10361_v48, %v10239_v51 }
 0x3e5   : > { %v7676_v39 = vpack.c.bf16 %v6522_v33, %v6522_v33  ;;  %v5498_v50 = vmax.f32 %v5496_v34, %v5497_v42  ;;  %v5504_v13 = vrot.slane %v5503_v28, 2  ;;  %v5510_v60 = vmax.f32 %v5508_v22, %v5509_v46  ;;  %v10428_v22 = vpop.f32.mrb[4].mxu1 }
 0x3e6   : > { %v5576_v54 = vrot.slane %v5575_v41, 1  ;;  %v4782_v4 = vrot.slane %v4768_v12, %v10239_v51  ;;  %v4783_v14 = vcombine.high %v4775_v27, %v4775_v27  ;;  %v5634_v38 = vsel %vm428_vm0, %v4775_v27, -inf }
 0x3e7   : > { %v6882_v49 = vunpack.c.l.b16 %v7676_v39  ;;  %v5499_v18 = vrot.slane %v5498_v50, 1  ;;  %v5505_v11 = vmax.f32 %v5503_v28, %v5504_v13  ;;  %v5511_v47 = vrot.slane %v5510_v60, 2 }
 0x3e8   : > { %v5570_v10 = vmax.f32 %v5568_v44, %v5569_v7  ;;  %v5517_v8 = vmax.f32 %v5515_v61, %v5516_v23  ;;  %v5635_v2 = vrot.slane %v5634_v38, 4  ;;  %v5641_v43 = vsel %vm428_vm0, %v4783_v14, -inf }
 0x3e9   : > { %v6965_v48 = vrot.slane %v6882_v49, 7  ;;  %v5500_v19 = vmax.f32 %v5498_v50, %v5499_v18  ;;  %v5506_v34 = vrot.slane %v5505_v11, 1  ;;  %v5512_v33 = vmax.f32 %v5510_v60, %v5511_v47 }
 0x3ea   : > { %v5577_v42 = vmax.f32 %v5575_v41, %v5576_v54  ;;  %v5636_v46 = vmax.f32 %v5634_v38, %v5635_v2  ;;  %v5642_v12 = vrot.slane %v5641_v43, 4  ;;  %v5648_v27 = vsel %vm428_vm0, %v4782_v4, -inf  ;;  %v10436_v54 = vpop.f32.mrb[5].mxu1 }
 0x3eb   : > { %v6966_v39 = vsel %vm6945_vm10, %v6965_v48, %v6881_v36  ;;  %v5507_v28 = vmax.f32 %v5505_v11, %v5506_v34  ;;  %v5513_v13 = vrot.slane %v5512_v33, 1  ;;  %v6373_v44 = vmax.f32 %v5500_v19, %v5563_v62 }
 0x3ec   : > { %v5540_v7 = vmax.f32 %v10343_v56, %v5539_v30  ;;  %v5518_v61 = vrot.slane %v5517_v8, 2  ;;  %v4784_v23 = vcombine.high %v4782_v4, %v4782_v4  ;;  %v5637_v14 = vrot.slane %v5636_v46, 2 }
 0x3ed   : > { %v5514_v50 = vmax.f32 %v5512_v33, %v5513_v13  ;;  %v6374_v49 = vmax.f32 %v5507_v28, %v5570_v10  ;;  %v6451_v60 = vadd.f32 %v10278_v21, %v6373_v44  ;;  %v4734_v41 = vcombine.high %v10365_v53, %v10365_v53 }
 0x3ee   : > { %v5527_v38 = vrot.slane %v10401_v1, 1  ;;  %v5534_v36 = vrot.slane %v10408_v9, 1  ;;  %v5643_v18 = vmax.f32 %v5641_v43, %v5642_v12  ;;  %v5649_v62 = vrot.slane %v5648_v27, 4 }
 0x3ef   : > { %v6375_v11 = vmax.f32 %v5514_v50, %v5577_v42  ;;  %v6452_v56 = vadd.f32 %v10278_v21, %v6374_v49  ;;  %v6523_v30 = vmax.f32 %v6451_v60, 0.0  ;;  %v4741_v4 = vrot.slane %v10365_v53, %v10239_v51 }
 0x3f0   : > { %v5541_v47 = vrot.slane %v5540_v7, 1  ;;  %v10443_v10 = vmax.f32 %v5517_v8, %v5518_v61  ;;  %v5638_v2 = vmax.f32 %v5636_v46, %v5637_v14  ;;  %v5655_v48 = vsel %vm428_vm0, %v4784_v23, -inf }
 0x3f1   : > { %v6453_v19 = vadd.f32 %v10278_v21, %v6375_v11  ;;  %v6524_v34 = vmax.f32 %v6452_v56, 0.0  ;;  %v7677_v33 = vpack.c.bf16 %v6523_v30, %v6523_v30  ;;  %v4748_v43 = vrot.slane %v4734_v41, %v10239_v51 }
 0x3f2   : > { %v10449_v42 = vmax.f32 %v10401_v1, %v5527_v38  ;;  %v10452_v12 = vmax.f32 %v10408_v9, %v5534_v36  ;;  %v5644_v28 = vrot.slane %v5643_v18, 2  ;;  %v10454_v53 = vmax.f32 %v5648_v27, %v5649_v62 }
 0x3f3   : > { %v6525_v8 = vmax.f32 %v6453_v19, 0.0  ;;  %v7678_v13 = vpack.c.bf16 %v6524_v34, %v6524_v34  ;;  %v6883_v46 = vunpack.c.l.b16 %v7677_v33  ;;  %v4749_v44 = vcombine.high %v4741_v4, %v4741_v4 }
 0x3f4   : > { %v10456_v61 = vmax.f32 %v5540_v7, %v5541_v47  ;;  %v5520_v23 = vrot.slane %v10443_v10, 1  ;;  %v5656_v14 = vrot.slane %v5655_v48, 4  ;;  %v4750_v50 = vcombine.high %v4748_v43, %v4748_v43 }
 0x3f5   : > { %v7679_v49 = vpack.c.bf16 %v6525_v8, %v6525_v8  ;;  %v6884_v60 = vunpack.c.l.b16 %v7678_v13  ;;  %v6967_v1 = vrot.slane %v6883_v46, 6  ;;  %v5639_v41 = vrot.slane %v5638_v2, 1 }
 0x3f6   : > { %v10459_v38 = vmax.f32 %v5643_v18, %v5644_v28  ;;  %v5578_v27 = vsel %vm428_vm0, %v4741_v4, -inf  ;;  %v5585_v36 = vsel %vm428_vm0, %v4749_v44, -inf  ;;  %v5592_v47 = vsel %vm428_vm0, %v4748_v43, -inf }
 0x3f7   : > { %v6885_v62 = vunpack.c.l.b16 %v7679_v49  ;;  %v6968_v7 = vsel %vm6948_vm11, %v6967_v1, %v6966_v39  ;;  %v6969_v11 = vrot.slane %v6884_v60, 5  ;;  %v5579_v56 = vrot.slane %v5578_v27, 4 }
 0x3f8   : > { %v5586_v30 = vrot.slane %v5585_v36, 4  ;;  %v5599_v19 = vsel %vm428_vm0, %v4750_v50, -inf  ;;  %v8707_v18 = vadd.f32 %v10273_v0, %v10227_v32  ;;  %v5593_v4 = vrot.slane %v5592_v47, 4 }
 0x3f9   : > { %v6970_v34 = vsel %vm6951_vm12, %v6969_v11, %v6968_v7  ;;  %v6971_v33 = vrot.slane %v6885_v62, 4  ;;  %v5580_v28 = vmax.f32 %v5578_v27, %v5579_v56  ;;  %v5600_v13 = vrot.slane %v5599_v19, 4 }
 0x3fa   : > { %v5587_v8 = vmax.f32 %v5585_v36, %v5586_v30  ;;  %v4785_v46 = vcombine.high %v8707_v18, %v8707_v18  ;;  %v4792_v39 = vrot.slane %v8707_v18, %v10239_v51  ;;  %v5594_v43 = vmax.f32 %v5592_v47, %v5593_v4  ;;  %v10484_v18 = vpop.f32.mrb[6].mxu1 }
 0x3fb   : > { %v10472_v44 = vsel %vm6954_vm13, %v6971_v33, %v6970_v34  ;;  %v5581_v49 = vrot.slane %v5580_v28, 2  ;;  %v10476_v50 = vadd.f32 %v10281_v31, %v10229_v55  ;;  %v5601_v0 = vmax.f32 %v5599_v19, %v5600_v13 }
 0x3fc   : > { %v5588_v32 = vrot.slane %v5587_v8, 2  ;;  %v4799_v60 = vrot.slane %v4785_v46, %v10239_v51  ;;  %v4800_v1 = vcombine.high %v4792_v39, %v4792_v39  ;;  %v10479_v27 = vmax.f32 %v5638_v2, %v5639_v41 }
 0x3fd   : > { %v10481_v36 = vmax.f32 %v5655_v48, %v5656_v14  ;;  %v5582_v62 = vmax.f32 %v5580_v28, %v5581_v49  ;;  %v5595_v7 = vrot.slane %v5594_v43, 2  ;;  %v5602_v56 = vrot.slane %v5601_v0, 2 }
 0x3fe   : > { %v5589_v11 = vmax.f32 %v5587_v8, %v5588_v32  ;;  %v4801_v30 = vcombine.high %v4799_v60, %v4799_v60  ;;  %v5662_v47 = vsel %vm428_vm0, %v4792_v39, -inf  ;;  %v5669_v19 = vsel %vm428_vm0, %v4800_v1, -inf }
 0x3ff   : > { %v5583_v55 = vrot.slane %v5582_v62, 1  ;;  %v5596_v31 = vmax.f32 %v5594_v43, %v5595_v7  ;;  %v5676_v34 = vsel %vm428_vm0, %v4799_v60, -inf  ;;  %v5521_v2 = vmax.f32 %v10443_v10, %v5520_v23 }
 0x400   : > { %v5590_v41 = vrot.slane %v5589_v11, 1  ;;  %v5603_v48 = vmax.f32 %v5601_v0, %v5602_v56  ;;  %v5670_v14 = vrot.slane %v5669_v19, 4  ;;  %v5677_v4 = vrot.slane %v5676_v34, 4 }
 0x401   : > { %v5584_v33 = vmax.f32 %v5582_v62, %v5583_v55  ;;  %v5597_v28 = vrot.slane %v5596_v31, 1  ;;  %v5683_v8 = vsel %vm428_vm0, %v4801_v30, -inf  ;;  %v5663_v39 = vrot.slane %v5662_v47, 4 }
 0x402   : > { %v5591_v13 = vmax.f32 %v5589_v11, %v5590_v41  ;;  %v5604_v46 = vrot.slane %v5603_v48, 1  ;;  %v5671_v49 = vmax.f32 %v5669_v19, %v5670_v14  ;;  %v5678_v7 = vmax.f32 %v5676_v34, %v5677_v4  ;;  %v10498_v34 = vpop.f32.mrb[7].mxu1 }
 0x403   : > { %v5598_v32 = vmax.f32 %v5596_v31, %v5597_v28  ;;  %v6376_v43 = vmax.f32 %v5521_v2, %v5584_v33  ;;  %v5684_v1 = vrot.slane %v5683_v8, 4  ;;  %v5646_v60 = vrot.slane %v10459_v38, 1 }
 0x404   : > { %v5605_v9 = vmax.f32 %v5603_v48, %v5604_v46  ;;  %v6377_v10 = vmax.f32 %v10449_v42, %v5591_v13  ;;  %v5672_v23 = vrot.slane %v5671_v49, 2  ;;  %v5679_v56 = vrot.slane %v5678_v7, 2 }
 0x405   : > { %v6378_v0 = vmax.f32 %v10452_v12, %v5598_v32  ;;  %v6454_v62 = vadd.f32 %v10278_v21, %v6376_v43  ;;  %v5685_v30 = vmax.f32 %v5683_v8, %v5684_v1  ;;  %v10496_v31 = vmax.f32 %v5662_v47, %v5663_v39  ;;  %v7103_v43 = vld [vmem:[%s10385_s23 + $0xc] sm:$0x1] }
 0x406   : > { %v6379_v11 = vmax.f32 %v10456_v61, %v5605_v9  ;;  %v6455_v55 = vadd.f32 %v10278_v21, %v6377_v10  ;;  %v5673_v19 = vmax.f32 %v5671_v49, %v5672_v23  ;;  %v5680_v42 = vmax.f32 %v5678_v7, %v5679_v56 }
 0x407   : > { %v6456_v2 = vadd.f32 %v10278_v21, %v6378_v0  ;;  %v6526_v41 = vmax.f32 %v6454_v62, 0.0  ;;  %v5686_v48 = vrot.slane %v5685_v30, 2  ;;  %v11277_v12 = vrot.slane %v10454_v53, 2 }
 0x408   : > { %v6457_v61 = vadd.f32 %v10278_v21, %v6379_v11  ;;  %v6527_v9 = vmax.f32 %v6455_v55, 0.0  ;;  %v4751_v47 = vcombine.high %v10476_v50, %v10476_v50  ;;  %v5658_v33 = vrot.slane %v10481_v36, 2 }
 0x409   : > { %v10504_v14 = vmax.f32 %v10454_v53, %v11277_v12  ;;  %v6528_v28 = vmax.f32 %v6456_v2, 0.0  ;;  %v7680_v4 = vpack.c.bf16 %v6526_v41, %v6526_v41  ;;  %v5674_v8 = vrot.slane %v5673_v19, 1 }
 0x40a   : > { %v6529_v13 = vmax.f32 %v6457_v61, 0.0  ;;  %v7681_v46 = vpack.c.bf16 %v6527_v9, %v6527_v9  ;;  %v5665_v39 = vrot.slane %v10496_v31, 2  ;;  %v4758_v49 = vrot.slane %v10476_v50, %v10239_v51 }
 0x40b   : > { %v7682_v53 = vpack.c.bf16 %v6528_v28, %v6528_v28  ;;  %v6886_v32 = vunpack.c.l.b16 %v7680_v4  ;;  %v5681_v21 = vrot.slane %v5680_v42, 1  ;;  %v5687_v7 = vmax.f32 %v5685_v30, %v5686_v48 }
 0x40c   : > { %v6887_v1 = vunpack.c.l.b16 %v7681_v46  ;;  %v7739_v10 = vpack.c.bf16 %v6529_v13, %v6529_v13  ;;  %v4765_v23 = vrot.slane %v4751_v47, %v10239_v51  ;;  %v4766_v0 = vcombine.high %v4758_v49, %v4758_v49 }
 0x40d   : > { %v6888_v62 = vunpack.c.l.b16 %v7682_v53  ;;  %v6973_v56 = vrot.slane %v6886_v32, 3  ;;  %v10515_v11 = vmax.f32 %v5673_v19, %v5674_v8  ;;  %v5606_v55 = vsel %vm428_vm0, %v4758_v49, -inf }
 0x40e   : > { %v6975_v2 = vrot.slane %v6887_v1, 2  ;;  %v7104_v50 = vsel %vm10391_vm4, %v7739_v10, %v7103_v43  ;;  %v4767_v41 = vcombine.high %v4765_v23, %v4765_v23  ;;  %v5607_v12 = vrot.slane %v5606_v55, 4 }
 0x40f   : > { %v6974_v30 = vsel %vm6957_vm14, %v6973_v56, %v10472_v44  ;;  %v6977_v48 = vrot.slane %v6888_v62, 1  ;;  %7105 = vst [vmem:[%s10385_s23 + $0xc] sm:$0x1] %v7104_v50  ;;  %v5613_v61 = vsel %vm428_vm0, %v4766_v0, -inf  ;;  %v5620_v9 = vsel %vm428_vm0, %v4765_v23, -inf }
 0x410   : > { %v6976_v19 = vsel %vm6960_vm15, %v6975_v2, %v6974_v30  ;;  %v5608_v47 = vmax.f32 %v5606_v55, %v5607_v12  ;;  %v5614_v28 = vrot.slane %v5613_v61, 4  ;;  %v5621_v4 = vrot.slane %v5620_v9, 4 }
 0x411   : > { %v6978_v8 = vsel %vm6963_vm3, %v6977_v48, %v6976_v19  ;;  %v5627_v13 = vsel %vm428_vm0, %v4767_v41, -inf  ;;  %v8709_v46 = vadd.f32 %v10290_v24, %v10231_v16  ;;  %v8710_v44 = vadd.f32 %v10296_v5, %v10233_v17 }
 0x412   : > { %v7065_v49 = vpack.c.b16 %v6978_v8, %v6978_v8  ;;  %v5609_v53 = vrot.slane %v5608_v47, 2  ;;  %v5615_v32 = vmax.f32 %v5613_v61, %v5614_v28  ;;  %v5622_v43 = vmax.f32 %v5620_v9, %v5621_v4 }
 0x413   : > { %v5688_v1 = vrot.slane %v5687_v7, 1  ;;  %v5628_v10 = vrot.slane %v5627_v13, 4  ;;  %v4836_v23 = vcombine.high %v8709_v46, %v8709_v46  ;;  %v4843_v0 = vrot.slane %v8709_v46, %v10239_v51 }
 0x414   : > { %7102 = vst [vmem:[%s10385_s23 + $0x8] sm:$0xf] %v7065_v49  ;;  %v5682_v62 = vmax.f32 %v5680_v42, %v5681_v21  ;;  %v5610_v56 = vmax.f32 %v5608_v47, %v5609_v53  ;;  %v5616_v55 = vrot.slane %v5615_v32, 2  ;;  %v5623_v2 = vrot.slane %v5622_v43, 2 }
 0x415   : > { %v5629_v50 = vmax.f32 %v5627_v13, %v5628_v10  ;;  %v4850_v16 = vrot.slane %v4836_v23, %v10239_v51  ;;  %v4851_v24 = vcombine.high %v4843_v0, %v4843_v0  ;;  %v5746_v17 = vsel %vm428_vm0, %v4843_v0, -inf }
 0x416   : > { %v5611_v5 = vrot.slane %v5610_v56, 1  ;;  %v5617_v41 = vmax.f32 %v5615_v32, %v5616_v55  ;;  %v5624_v12 = vmax.f32 %v5622_v43, %v5623_v2  ;;  %v5747_v30 = vrot.slane %v5746_v17, 4 }
 0x417   : > { %v5689_v48 = vmax.f32 %v5687_v7, %v5688_v1  ;;  %v4852_v61 = vcombine.high %v4850_v16, %v4850_v16  ;;  %v5753_v9 = vsel %vm428_vm0, %v4851_v24, -inf  ;;  %v5760_v19 = vsel %vm428_vm0, %v4850_v16, -inf  ;;  %v10540_v7 = vpop.f32.mrb[8].mxu1 }
 0x418   : > { %v5612_v42 = vmax.f32 %v5610_v56, %v5611_v5  ;;  %v5618_v21 = vrot.slane %v5617_v41, 1  ;;  %v5625_v47 = vrot.slane %v5624_v12, 1  ;;  %v5748_v28 = vmax.f32 %v5746_v17, %v5747_v30  ;;  %v10552_v56 = vld [vmem:[%s11204_s3] ss:$0 sm:$0xff]  ;;  %v10556_v2 = vpop.f32.mrb[9].mxu1 }
 0x419   : > { %v5666_v4 = vmax.f32 %v10496_v31, %v5665_v39  ;;  %v5630_v8 = vrot.slane %v5629_v50, 2  ;;  %v5754_v13 = vrot.slane %v5753_v9, 4  ;;  %v4802_v46 = vcombine.high %v8710_v44, %v8710_v44 }
 0x41a   : > { %v5619_v49 = vmax.f32 %v5617_v41, %v5618_v21  ;;  %v5626_v53 = vmax.f32 %v5624_v12, %v5625_v47  ;;  %v6380_v32 = vmax.f32 %v5612_v42, %v10515_v11  ;;  %v5761_v43 = vrot.slane %v5760_v19, 4 }
 0x41b   : > { %v5653_v1 = vrot.slane %v10504_v14, 1  ;;  %v10546_v10 = vmax.f32 %v10481_v36, %v5658_v33  ;;  %v5749_v23 = vrot.slane %v5748_v28, 2  ;;  %v4809_v31 = vrot.slane %v8710_v44, %v10239_v51 }
 0x41c   : > { %v6381_v39 = vmax.f32 %v5619_v49, %v5682_v62  ;;  %v6382_v0 = vmax.f32 %v5626_v53, %v5689_v48  ;;  %v6458_v11 = vadd.f32 %v10552_v56, %v6380_v32  ;;  %v5767_v55 = vsel %vm428_vm0, %v4852_v61, -inf }
 0x41d   : > { %v5667_v16 = vrot.slane %v5666_v4, 1  ;;  %v10558_v24 = vmax.f32 %v5629_v50, %v5630_v8  ;;  %v5755_v36 = vmax.f32 %v5753_v9, %v5754_v13  ;;  %v4816_v33 = vrot.slane %v4802_v46, %v10239_v51 }
 0x41e   : > { %v6459_v44 = vadd.f32 %v10552_v56, %v6381_v39  ;;  %v6460_v62 = vadd.f32 %v10552_v56, %v6382_v0  ;;  %v6530_v17 = vmax.f32 %v6458_v11, 0.0  ;;  %v5762_v5 = vmax.f32 %v5760_v19, %v5761_v43 }
 0x41f   : > { %v10566_v41 = vmax.f32 %v10459_v38, %v5646_v60  ;;  %v10569_v12 = vmax.f32 %v10504_v14, %v5653_v1  ;;  %v10571_v30 = vmax.f32 %v5748_v28, %v5749_v23  ;;  %v5768_v50 = vrot.slane %v5767_v55, 4 }
 0x420   : > { %v6531_v48 = vmax.f32 %v6459_v44, 0.0  ;;  %v6532_v61 = vmax.f32 %v6460_v62, 0.0  ;;  %v7684_v9 = vpack.c.bf16 %v6530_v17, %v6530_v17  ;;  %v4817_v42 = vcombine.high %v4809_v31, %v4809_v31 }
 0x421   : > { %v5660_v21 = vrot.slane %v10546_v10, 1  ;;  %v10574_v47 = vmax.f32 %v5666_v4, %v5667_v16  ;;  %v5632_v19 = vrot.slane %v10558_v24, 1  ;;  %v4818_v8 = vcombine.high %v4816_v33, %v4816_v33 }
 0x422   : > { %v7685_v13 = vpack.c.bf16 %v6531_v48, %v6531_v48  ;;  %v7686_v38 = vpack.c.bf16 %v6532_v61, %v6532_v61  ;;  %v5756_v60 = vrot.slane %v5755_v36, 2  ;;  %v5763_v46 = vrot.slane %v5762_v5, 2 }
 0x423   : > { %v6890_v14 = vunpack.c.l.b16 %v7684_v9  ;;  %v5751_v28 = vrot.slane %v10571_v30, 1  ;;  %v10578_v49 = vmax.f32 %v5767_v55, %v5768_v50  ;;  %v5690_v53 = vsel %vm428_vm0, %v4809_v31, -inf }
 0x424   : > { %v6891_v32 = vunpack.c.l.b16 %v7685_v13  ;;  %v6892_v43 = vunpack.c.l.b16 %v7686_v38  ;;  %v5691_v1 = vrot.slane %v5690_v53, 4  ;;  %v5697_v4 = vsel %vm428_vm0, %v4817_v42, -inf }
 0x425   : > { %v5698_v23 = vrot.slane %v5697_v4, 4  ;;  %v5704_v39 = vsel %vm428_vm0, %v4816_v33, -inf  ;;  %v5711_v0 = vsel %vm428_vm0, %v4818_v8, -inf  ;;  %v8711_v11 = vadd.f32 %v10315_v26, %v10235_v3 }
 0x426   : > { %v6979_v16 = vrot.slane %v6891_v32, 7  ;;  %v6981_v44 = vrot.slane %v6892_v43, 6  ;;  %v5692_v62 = vmax.f32 %v5690_v53, %v5691_v1  ;;  %v5705_v55 = vrot.slane %v5704_v39, 4 }
 0x427   : > { %v5699_v17 = vmax.f32 %v5697_v4, %v5698_v23  ;;  %v5712_v50 = vrot.slane %v5711_v0, 4  ;;  %v4853_v31 = vcombine.high %v8711_v11, %v8711_v11  ;;  %v4860_v48 = vrot.slane %v8711_v11, %v10239_v51 }
 0x428   : > { %v6980_v61 = vsel %vm6945_vm10, %v6979_v16, %v6890_v14  ;;  %v5693_v9 = vrot.slane %v5692_v62, 2  ;;  %v5706_v42 = vmax.f32 %v5704_v39, %v5705_v55  ;;  %v10590_v33 = vadd.f32 %v10318_v40, %v10237_v52 }
 0x429   : > { %v10593_v8 = vsel %vm6948_vm11, %v6981_v44, %v6980_v61  ;;  %v5700_v3 = vrot.slane %v5699_v17, 2  ;;  %v5713_v26 = vmax.f32 %v5711_v0, %v5712_v50  ;;  %v4867_v13 = vrot.slane %v4853_v31, %v10239_v51 }
 0x42a   : > { %v5694_v38 = vmax.f32 %v5692_v62, %v5693_v9  ;;  %v5707_v53 = vrot.slane %v5706_v42, 2  ;;  %v4868_v32 = vcombine.high %v4860_v48, %v4860_v48  ;;  %v5774_v43 = vsel %vm428_vm0, %v4860_v48, -inf }
 0x42b   : > { %v5701_v1 = vmax.f32 %v5699_v17, %v5700_v3  ;;  %v5714_v14 = vrot.slane %v5713_v26, 2  ;;  %v4869_v4 = vcombine.high %v4867_v13, %v4867_v13  ;;  %v5775_v23 = vrot.slane %v5774_v43, 4  ;;  %v10602_v3 = vpop.f32.mrb[10].mxu1 }
 0x42c   : > { %v5757_v39 = vmax.f32 %v5755_v36, %v5756_v60  ;;  %v5764_v11 = vmax.f32 %v5762_v5, %v5763_v46  ;;  %v5695_v52 = vrot.slane %v5694_v38, 1  ;;  %v5708_v40 = vmax.f32 %v5706_v42, %v5707_v53 }
 0x42d   : > { %v5770_v16 = vrot.slane %v10578_v49, 2  ;;  %v5702_v44 = vrot.slane %v5701_v1, 1  ;;  %v5715_v55 = vmax.f32 %v5713_v26, %v5714_v14  ;;  %v5781_v0 = vsel %vm428_vm0, %v4868_v32, -inf }
 0x42e   : > { %v5633_v62 = vmax.f32 %v10558_v24, %v5632_v19  ;;  %v5696_v50 = vmax.f32 %v5694_v38, %v5695_v52  ;;  %v5709_v31 = vrot.slane %v5708_v40, 1  ;;  %v5795_v48 = vsel %vm428_vm0, %v4869_v4, -inf }
 0x42f   : > { %v5703_v17 = vmax.f32 %v5701_v1, %v5702_v44  ;;  %v5716_v61 = vrot.slane %v5715_v55, 1  ;;  %v5776_v9 = vmax.f32 %v5774_v43, %v5775_v23  ;;  %v5788_v36 = vsel %vm428_vm0, %v4867_v13, -inf }
 0x430   : > { %v5710_v5 = vmax.f32 %v5708_v40, %v5709_v31  ;;  %v6383_v60 = vmax.f32 %v5633_v62, %v5696_v50  ;;  %v5782_v46 = vrot.slane %v5781_v0, 4  ;;  %v5796_v42 = vrot.slane %v5795_v48, 4 }
 0x431   : > { %v10605_v26 = vmax.f32 %v10571_v30, %v5751_v28  ;;  %v5758_v53 = vrot.slane %v5757_v39, 1  ;;  %v5717_v24 = vmax.f32 %v5715_v55, %v5716_v61  ;;  %v6384_v19 = vmax.f32 %v10479_v27, %v5703_v17 }
 0x432   : > { %v6385_v38 = vmax.f32 %v10566_v41, %v5710_v5  ;;  %v6461_v32 = vadd.f32 %v10552_v56, %v6383_v60  ;;  %v5789_v43 = vrot.slane %v5788_v36, 4  ;;  %v5797_v1 = vmax.f32 %v5795_v48, %v5796_v42  ;;  %v10619_v48 = vpop.f32.mrb[11].mxu1 }
 0x433   : > { %v5765_v13 = vrot.slane %v5764_v11, 1  ;;  %v6386_v14 = vmax.f32 %v10569_v12, %v5717_v24  ;;  %v6462_v4 = vadd.f32 %v10552_v56, %v6384_v19  ;;  %v5777_v23 = vrot.slane %v5776_v9, 2 }
 0x434   : > { %v6463_v52 = vadd.f32 %v10552_v56, %v6385_v38  ;;  %v6533_v30 = vmax.f32 %v6461_v32, 0.0  ;;  %v5783_v28 = vmax.f32 %v5781_v0, %v5782_v46  ;;  %v5798_v40 = vrot.slane %v5797_v1, 2 }
 0x435   : > { %v10613_v44 = vmax.f32 %v5757_v39, %v5758_v53  ;;  %v10616_v27 = vmax.f32 %v10578_v49, %v5770_v16  ;;  %v6464_v41 = vadd.f32 %v10552_v56, %v6386_v14  ;;  %v6534_v55 = vmax.f32 %v6462_v4, 0.0 }
 0x436   : > { %v6535_v62 = vmax.f32 %v6463_v52, 0.0  ;;  %v7687_v50 = vpack.c.bf16 %v6533_v30, %v6533_v30  ;;  %v5790_v31 = vmax.f32 %v5788_v36, %v5789_v43  ;;  %v5799_v12 = vmax.f32 %v5797_v1, %v5798_v40 }
 0x437   : > { %v10621_v17 = vmax.f32 %v5764_v11, %v5765_v13  ;;  %v6536_v61 = vmax.f32 %v6464_v41, 0.0  ;;  %v7688_v5 = vpack.c.bf16 %v6534_v55, %v6534_v55  ;;  %v4819_v39 = vcombine.high %v10590_v33, %v10590_v33 }
 0x438   : > { %v7689_v0 = vpack.c.bf16 %v6535_v62, %v6535_v62  ;;  %v6893_v60 = vunpack.c.l.b16 %v7687_v50  ;;  %v10625_v49 = vmax.f32 %v5776_v9, %v5777_v23  ;;  %v5784_v16 = vrot.slane %v5783_v28, 2 }
 0x439   : > { %v7690_v46 = vpack.c.bf16 %v6536_v61, %v6536_v61  ;;  %v6894_v42 = vunpack.c.l.b16 %v7688_v5  ;;  %v4826_v36 = vrot.slane %v10590_v33, %v10239_v51  ;;  %v4833_v53 = vrot.slane %v4819_v39, %v10239_v51 }
 0x43a   : > { %v6895_v24 = vunpack.c.l.b16 %v7689_v0  ;;  %v6983_v11 = vrot.slane %v6893_v60, 5  ;;  %v5791_v19 = vrot.slane %v5790_v31, 2  ;;  %v5800_v38 = vrot.slane %v5799_v12, 1 }
 0x43b   : > { %v6896_v32 = vunpack.c.l.b16 %v7690_v46  ;;  %v6985_v43 = vrot.slane %v6894_v42, 4  ;;  %v4834_v1 = vcombine.high %v4826_v36, %v4826_v36  ;;  %v4835_v13 = vcombine.high %v4833_v53, %v4833_v53 }
 0x43c   : > { %v6984_v9 = vsel %vm6951_vm12, %v6983_v11, %v10593_v8  ;;  %v6987_v14 = vrot.slane %v6895_v24, 3  ;;  %v5718_v4 = vsel %vm428_vm0, %v4826_v36, -inf  ;;  %v5732_v23 = vsel %vm428_vm0, %v4833_v53, -inf }
 0x43d   : > { %v6986_v33 = vsel %vm6954_vm13, %v6985_v43, %v6984_v9  ;;  %v6989_v52 = vrot.slane %v6896_v32, 2  ;;  %v5719_v30 = vrot.slane %v5718_v4, 4  ;;  %v5725_v40 = vsel %vm428_vm0, %v4834_v1, -inf }
 0x43e   : > { %v6988_v41 = vsel %vm6957_vm14, %v6987_v14, %v6986_v33  ;;  %v5726_v55 = vrot.slane %v5725_v40, 4  ;;  %v5733_v62 = vrot.slane %v5732_v23, 4  ;;  %v5739_v50 = vsel %vm428_vm0, %v4835_v13, -inf }
 0x43f   : > { %v5720_v61 = vmax.f32 %v5718_v4, %v5719_v30  ;;  %v5740_v5 = vrot.slane %v5739_v50, 4  ;;  %v10639_v8 = vsel %vm6960_vm15, %v6989_v52, %v6988_v41  ;;  %v8713_v39 = vadd.f32 %v10325_v20, %v10161_v6 }
 0x440   : > { %v5727_v0 = vmax.f32 %v5725_v40, %v5726_v55  ;;  %v5734_v60 = vmax.f32 %v5732_v23, %v5733_v62  ;;  %v8714_v46 = vadd.f32 %v10329_v59, %v10163_v29  ;;  %v10647_v42 = vadd.f32 %v10357_v35, %v10166_v63 }
 0x441   : > { %v5785_v36 = vmax.f32 %v5783_v28, %v5784_v16  ;;  %v5721_v53 = vrot.slane %v5720_v61, 2  ;;  %v4904_v24 = vcombine.high %v8713_v39, %v8713_v39  ;;  %v4911_v11 = vrot.slane %v8713_v39, %v10239_v51 }
 0x442   : > { %v5792_v32 = vmax.f32 %v5790_v31, %v5791_v19  ;;  %v5801_v43 = vmax.f32 %v5799_v12, %v5800_v38  ;;  %v5728_v1 = vrot.slane %v5727_v0, 2  ;;  %v5735_v13 = vrot.slane %v5734_v60, 2 }
 0x443   : > { %v5722_v9 = vmax.f32 %v5720_v61, %v5721_v53  ;;  %v5741_v6 = vmax.f32 %v5739_v50, %v5740_v5  ;;  %v4918_v20 = vrot.slane %v4904_v24, %v10239_v51  ;;  %v4919_v14 = vcombine.high %v4911_v11, %v4911_v11 }
 0x444   : > { %v5661_v29 = vmax.f32 %v10546_v10, %v5660_v21  ;;  %v5729_v63 = vmax.f32 %v5727_v0, %v5728_v1  ;;  %v5736_v59 = vmax.f32 %v5734_v60, %v5735_v13  ;;  %v5858_v35 = vsel %vm428_vm0, %v4911_v11, -inf }
 0x445   : > { %v5723_v28 = vrot.slane %v5722_v9, 1  ;;  %v4920_v16 = vcombine.high %v4918_v20, %v4918_v20  ;;  %v5859_v4 = vrot.slane %v5858_v35, 4  ;;  %v4870_v31 = vcombine.high %v8714_v46, %v8714_v46 }
 0x446   : > { %v5730_v12 = vrot.slane %v5729_v63, 1  ;;  %v5737_v19 = vrot.slane %v5736_v59, 1  ;;  %v5865_v38 = vsel %vm428_vm0, %v4919_v14, -inf  ;;  %v5872_v23 = vsel %vm428_vm0, %v4918_v20, -inf }
 0x447   : > { %v5724_v33 = vmax.f32 %v5722_v9, %v5723_v28  ;;  %v5742_v52 = vrot.slane %v5741_v6, 2  ;;  %v5860_v30 = vmax.f32 %v5858_v35, %v5859_v4  ;;  %v5866_v40 = vrot.slane %v5865_v38, 4  ;;  %v10664_v9 = vpop.f32.mrb[12].mxu1 }
 0x448   : > { %v5731_v41 = vmax.f32 %v5729_v63, %v5730_v12  ;;  %v5738_v10 = vmax.f32 %v5736_v59, %v5737_v19  ;;  %v5873_v21 = vrot.slane %v5872_v23, 4  ;;  %v5879_v55 = vsel %vm428_vm0, %v4920_v16, -inf }
 0x449   : > { %v5779_v62 = vrot.slane %v10625_v49, 1  ;;  %v6387_v50 = vmax.f32 %v5661_v29, %v5724_v33  ;;  %v5861_v61 = vrot.slane %v5860_v30, 2  ;;  %v5867_v5 = vmax.f32 %v5865_v38, %v5866_v40  ;;  %v7107_v38 = vld [vmem:[%s10385_s23 + $0x14] sm:$0x1] }
 0x44a   : > { %v6388_v39 = vmax.f32 %v10574_v47, %v5731_v41  ;;  %v6389_v0 = vmax.f32 %v5738_v10, %v5801_v43  ;;  %v5880_v60 = vrot.slane %v5879_v55, 4  ;;  %v4877_v53 = vrot.slane %v8714_v46, %v10239_v51 }
 0x44b   : > { %v5786_v24 = vrot.slane %v5785_v36, 1  ;;  %v5793_v11 = vrot.slane %v5792_v32, 1  ;;  %v10661_v1 = vmax.f32 %v5741_v6, %v5742_v52  ;;  %v6465_v13 = vadd.f32 %v10552_v56, %v6387_v50  ;;  %v10672_v6 = vpop.f32.mrb[13].mxu1 }
 0x44c   : > { %v6466_v14 = vadd.f32 %v10552_v56, %v6388_v39  ;;  %v5874_v29 = vmax.f32 %v5872_v23, %v5873_v21  ;;  %v4884_v47 = vrot.slane %v4870_v31, %v10239_v51  ;;  %v10670_v43 = vmax.f32 %v10625_v49, %v5779_v62 }
 0x44d   : > { %v6537_v46 = vmax.f32 %v6465_v13, 0.0  ;;  %v5862_v63 = vmax.f32 %v5860_v30, %v5861_v61  ;;  %v5868_v59 = vrot.slane %v5867_v5, 2  ;;  %v10675_v35 = vadd.f32 %v10552_v56, %v6389_v0 }
 0x44e   : > { %v6538_v28 = vmax.f32 %v6466_v14, 0.0  ;;  %v10677_v16 = vmax.f32 %v5879_v55, %v5880_v60  ;;  %v4885_v4 = vcombine.high %v4877_v53, %v4877_v53  ;;  %v10679_v12 = vmax.f32 %v5785_v36, %v5786_v24 }
 0x44f   : > { %v10681_v19 = vmax.f32 %v5792_v32, %v5793_v11  ;;  %v5744_v31 = vrot.slane %v10661_v1, 1  ;;  %v7691_v49 = vpack.c.bf16 %v6537_v46, %v6537_v46  ;;  %v5875_v33 = vrot.slane %v5874_v29, 2 }
 0x450   : > { %v7740_v23 = vpack.c.bf16 %v6538_v28, %v6538_v28  ;;  %v4886_v52 = vcombine.high %v4884_v47, %v4884_v47  ;;  %v5802_v30 = vsel %vm428_vm0, %v4877_v53, -inf  ;;  %v5863_v41 = vrot.slane %v5862_v63, 1 }
 0x451   : > { %v6897_v40 = vunpack.c.l.b16 %v7691_v49  ;;  %v5869_v10 = vmax.f32 %v5867_v5, %v5868_v59  ;;  %v5803_v21 = vrot.slane %v5802_v30, 4  ;;  %v6539_v55 = vmax.f32 %v10675_v35, 0.0 }
 0x452   : > { %v7108_v36 = vsel %vm10391_vm4, %v7740_v23, %v7107_v38  ;;  %v5882_v32 = vrot.slane %v10677_v16, 2  ;;  %v5809_v62 = vsel %vm428_vm0, %v4885_v4, -inf  ;;  %v5816_v0 = vsel %vm428_vm0, %v4884_v47, -inf }
 0x453   : > { %v6991_v50 = vrot.slane %v6897_v40, 1  ;;  %7109 = vst [vmem:[%s10385_s23 + $0x14] sm:$0x1] %v7108_v36  ;;  %v5804_v61 = vmax.f32 %v5802_v30, %v5803_v21  ;;  %v5810_v39 = vrot.slane %v5809_v62, 4  ;;  %v5817_v60 = vrot.slane %v5816_v0, 4 }
 0x454   : > { %v5823_v5 = vsel %vm428_vm0, %v4886_v52, -inf  ;;  %v4921_v53 = vcombine.high %v10647_v42, %v10647_v42  ;;  %v4928_v24 = vrot.slane %v10647_v42, %v10239_v51 }
 0x455   : > { %v6992_v11 = vsel %vm6963_vm3, %v6991_v50, %v10639_v8  ;;  %v5805_v13 = vrot.slane %v5804_v61, 2  ;;  %v5811_v14 = vmax.f32 %v5809_v62, %v5810_v39  ;;  %v5824_v46 = vrot.slane %v5823_v5, 4 }
 0x456   : > { %v7067_v59 = vpack.c.b16 %v6992_v11, %v6992_v11  ;;  %v5818_v35 = vmax.f32 %v5816_v0, %v5817_v60  ;;  %v4935_v47 = vrot.slane %v4921_v53, %v10239_v51  ;;  %v4936_v28 = vcombine.high %v4928_v24, %v4928_v24 }
 0x457   : > { %v5806_v4 = vmax.f32 %v5804_v61, %v5805_v13  ;;  %v5812_v49 = vrot.slane %v5811_v14, 2  ;;  %v5825_v38 = vmax.f32 %v5823_v5, %v5824_v46  ;;  %v5886_v23 = vsel %vm428_vm0, %v4928_v24, -inf }
 0x458   : > { %7106 = vst [vmem:[%s10385_s23 + $0x10] sm:$0xf] %v7067_v59  ;;  %v5819_v52 = vrot.slane %v5818_v35, 2  ;;  %v4937_v30 = vcombine.high %v4935_v47, %v4935_v47  ;;  %v5887_v42 = vrot.slane %v5886_v23, 4  ;;  %v5893_v40 = vsel %vm428_vm0, %v4936_v28, -inf }
 0x459   : > { %v5807_v8 = vrot.slane %v5806_v4, 1  ;;  %v5813_v21 = vmax.f32 %v5811_v14, %v5812_v49  ;;  %v5826_v36 = vrot.slane %v5825_v38, 2  ;;  %v5894_v62 = vrot.slane %v5893_v40, 4 }
 0x45a   : > { %v10704_v50 = vmax.f32 %v5862_v63, %v5863_v41  ;;  %v5876_v39 = vmax.f32 %v5874_v29, %v5875_v33  ;;  %v5745_v0 = vmax.f32 %v10661_v1, %v5744_v31  ;;  %v5820_v61 = vmax.f32 %v5818_v35, %v5819_v52 }
 0x45b   : > { %v5808_v60 = vmax.f32 %v5806_v4, %v5807_v8  ;;  %v5814_v5 = vrot.slane %v5813_v21, 1  ;;  %v5827_v53 = vmax.f32 %v5825_v38, %v5826_v36  ;;  %v5907_v24 = vsel %vm428_vm0, %v4937_v30, -inf  ;;  %v10714_v38 = vpop.f32.mrb[14].mxu1 }
 0x45c   : > { %v5870_v11 = vrot.slane %v5869_v10, 1  ;;  %v5821_v13 = vrot.slane %v5820_v61, 1  ;;  %v5888_v46 = vmax.f32 %v5886_v23, %v5887_v42  ;;  %v5900_v59 = vsel %vm428_vm0, %v4935_v47, -inf }
 0x45d   : > { %v5815_v28 = vmax.f32 %v5813_v21, %v5814_v5  ;;  %v5828_v14 = vrot.slane %v5827_v53, 1  ;;  %v6390_v49 = vmax.f32 %v5745_v0, %v5808_v60  ;;  %v5895_v20 = vmax.f32 %v5893_v40, %v5894_v62 }
 0x45e   : > { %v7693_v63 = vpack.c.bf16 %v6539_v55, %v6539_v55  ;;  %v10710_v29 = vmax.f32 %v10677_v16, %v5882_v32  ;;  %v5822_v1 = vmax.f32 %v5820_v61, %v5821_v13  ;;  %v5908_v31 = vrot.slane %v5907_v24, 4 }
 0x45f   : > { %v5877_v33 = vrot.slane %v5876_v39, 1  ;;  %v5829_v41 = vmax.f32 %v5827_v53, %v5828_v14  ;;  %v6391_v35 = vmax.f32 %v10605_v26, %v5815_v28  ;;  %v6468_v4 = vadd.f32 %v10552_v56, %v6390_v49 }
 0x460   : > { %v10716_v23 = vmax.f32 %v5869_v10, %v5870_v11  ;;  %v6392_v47 = vmax.f32 %v10613_v44, %v5822_v1  ;;  %v5889_v52 = vrot.slane %v5888_v46, 2  ;;  %v5901_v30 = vrot.slane %v5900_v59, 4 }
 0x461   : > { %v6393_v55 = vmax.f32 %v10621_v17, %v5829_v41  ;;  %v6469_v16 = vadd.f32 %v10552_v56, %v6391_v35  ;;  %v6540_v32 = vmax.f32 %v6468_v4, 0.0  ;;  %v5896_v42 = vrot.slane %v5895_v20, 2 }
 0x462   : > { %v6899_v40 = vunpack.c.l.b16 %v7693_v63  ;;  %v5884_v8 = vrot.slane %v10710_v29, 1  ;;  %v6470_v26 = vadd.f32 %v10552_v56, %v6392_v47  ;;  %v5909_v21 = vmax.f32 %v5907_v24, %v5908_v31 }
 0x463   : > { %v10723_v36 = vmax.f32 %v5876_v39, %v5877_v33  ;;  %v6471_v10 = vadd.f32 %v10552_v56, %v6393_v55  ;;  %v6541_v62 = vmax.f32 %v6469_v16, 0.0  ;;  %v7694_v44 = vpack.c.bf16 %v6540_v32, %v6540_v32  ;;  %v10742_v55 = vpop.f32.mrb[15].mxu1 }
 0x464   : > { %v6542_v0 = vmax.f32 %v6470_v26, 0.0  ;;  %v10726_v61 = vmax.f32 %v5888_v46, %v5889_v52  ;;  %v10728_v17 = vmax.f32 %v5900_v59, %v5901_v30  ;;  %v8716_v60 = vadd.f32 %v10376_v37, %v10169_v25 }
 0x465   : > { %v6543_v5 = vmax.f32 %v6471_v10, 0.0  ;;  %v7695_v53 = vpack.c.bf16 %v6541_v62, %v6541_v62  ;;  %v6900_v11 = vunpack.c.l.b16 %v7694_v44  ;;  %v10732_v13 = vmax.f32 %v5895_v20, %v5896_v42 }
 0x466   : > { %v7696_v24 = vpack.c.bf16 %v6542_v0, %v6542_v0  ;;  %v5910_v39 = vrot.slane %v5909_v21, 2  ;;  %v4887_v28 = vcombine.high %v8716_v60, %v8716_v60  ;;  %v4894_v14 = vrot.slane %v8716_v60, %v10239_v51 }
 0x467   : > { %v7697_v49 = vpack.c.bf16 %v6543_v5, %v6543_v5  ;;  %v6901_v63 = vunpack.c.l.b16 %v7695_v53  ;;  %v6993_v1 = vrot.slane %v6900_v11, 7  ;;  %v8717_v46 = vadd.f32 %v10428_v22, %v10172_v45 }
 0x468   : > { %v6902_v59 = vunpack.c.l.b16 %v7696_v24  ;;  %v4901_v31 = vrot.slane %v4887_v28, %v10239_v51  ;;  %v4902_v25 = vcombine.high %v4894_v14, %v4894_v14  ;;  %v5830_v37 = vsel %vm428_vm0, %v4894_v14, -inf }
 0x469   : > { %v6903_v33 = vunpack.c.l.b16 %v7697_v49  ;;  %v6994_v20 = vsel %vm6945_vm10, %v6993_v1, %v6899_v40  ;;  %v6995_v41 = vrot.slane %v6901_v63, 6  ;;  %v5831_v35 = vrot.slane %v5830_v37, 4 }
 0x46a   : > { %v6997_v4 = vrot.slane %v6902_v59, 5  ;;  %v4903_v47 = vcombine.high %v4901_v31, %v4901_v31  ;;  %v5837_v52 = vsel %vm428_vm0, %v4902_v25, -inf  ;;  %v5844_v30 = vsel %vm428_vm0, %v4901_v31, -inf }
 0x46b   : > { %v6996_v45 = vsel %vm6948_vm11, %v6995_v41, %v6994_v20  ;;  %v6999_v22 = vrot.slane %v6903_v33, 4  ;;  %v5832_v16 = vmax.f32 %v5830_v37, %v5831_v35  ;;  %v5838_v32 = vrot.slane %v5837_v52, 4 }
 0x46c   : > { %v6998_v42 = vsel %vm6951_vm12, %v6997_v4, %v6996_v45  ;;  %v5845_v26 = vrot.slane %v5844_v30, 4  ;;  %v5851_v40 = vsel %vm428_vm0, %v4903_v47, -inf  ;;  %v4972_v10 = vcombine.high %v8717_v46, %v8717_v46 }
 0x46d   : > { %v5833_v62 = vrot.slane %v5832_v16, 2  ;;  %v5839_v44 = vmax.f32 %v5837_v52, %v5838_v32  ;;  %v5852_v0 = vrot.slane %v5851_v40, 4  ;;  %v10748_v60 = vsel %vm6954_vm13, %v6999_v22, %v6998_v42 }
 0x46e   : > { %v5903_v5 = vrot.slane %v10728_v17, 2  ;;  %v5846_v53 = vmax.f32 %v5844_v30, %v5845_v26  ;;  %v4979_v11 = vrot.slane %v8717_v46, %v10239_v51  ;;  %v4986_v24 = vrot.slane %v4972_v10, %v10239_v51 }
 0x46f   : > { %v5834_v28 = vmax.f32 %v5832_v16, %v5833_v62  ;;  %v5840_v14 = vrot.slane %v5839_v44, 2  ;;  %v5853_v49 = vmax.f32 %v5851_v40, %v5852_v0  ;;  %v10755_v63 = vadd.f32 %v10436_v54, %v10174_v15 }
 0x470   : > { %v5911_v1 = vmax.f32 %v5909_v21, %v5910_v39  ;;  %v5847_v59 = vrot.slane %v5846_v53, 2  ;;  %v4987_v31 = vcombine.high %v4979_v11, %v4979_v11  ;;  %v5970_v25 = vsel %vm428_vm0, %v4979_v11, -inf }
 0x471   : > { %v5835_v37 = vrot.slane %v5834_v28, 1  ;;  %v5841_v33 = vmax.f32 %v5839_v44, %v5840_v14  ;;  %v5854_v20 = vrot.slane %v5853_v49, 2  ;;  %v5971_v41 = vrot.slane %v5970_v25, 4 }
 0x472   : > { %v11278_v46 = vrot.slane %v10616_v27, 1  ;;  %v5848_v4 = vmax.f32 %v5846_v53, %v5847_v59  ;;  %v4988_v47 = vcombine.high %v4986_v24, %v4986_v24  ;;  %v5977_v52 = vsel %vm428_vm0, %v4987_v31, -inf }
 0x473   : > { %v5836_v30 = vmax.f32 %v5834_v28, %v5835_v37  ;;  %v5842_v15 = vrot.slane %v5841_v33, 1  ;;  %v5855_v54 = vmax.f32 %v5853_v49, %v5854_v20  ;;  %v5972_v21 = vmax.f32 %v5970_v25, %v5971_v41 }
 0x474   : > { %v5773_v35 = vmax.f32 %v10616_v27, %v11278_v46  ;;  %v5891_v39 = vrot.slane %v10726_v61, 1  ;;  %v5904_v45 = vmax.f32 %v10728_v17, %v5903_v5  ;;  %v5849_v22 = vrot.slane %v5848_v4, 1 }
 0x475   : > { %v5984_v16 = vsel %vm428_vm0, %v4986_v24, -inf  ;;  %v5843_v32 = vmax.f32 %v5841_v33, %v5842_v15  ;;  %v5856_v42 = vrot.slane %v5855_v54, 1  ;;  %v5973_v40 = vrot.slane %v5972_v21, 2 }
 0x476   : > { %v6394_v26 = vmax.f32 %v5773_v35, %v5836_v30  ;;  %v5912_v27 = vrot.slane %v5911_v1, 1  ;;  %v5850_v10 = vmax.f32 %v5848_v4, %v5849_v22  ;;  %v5978_v62 = vrot.slane %v5977_v52, 4 }
 0x477   : > { %v5991_v44 = vsel %vm428_vm0, %v4988_v47, -inf  ;;  %v5857_v0 = vmax.f32 %v5855_v54, %v5856_v42  ;;  %v6395_v53 = vmax.f32 %v10670_v43, %v5843_v32  ;;  %v5974_v28 = vmax.f32 %v5972_v21, %v5973_v40  ;;  %v7111_v42 = vld [vmem:[%s10385_s23 + $0x1c] sm:$0x1] }
 0x478   : > { %v6472_v11 = vadd.f32 %v10552_v56, %v6394_v26  ;;  %v5898_v17 = vrot.slane %v10732_v13, 1  ;;  %v5905_v5 = vrot.slane %v5904_v45, 1  ;;  %v6396_v24 = vmax.f32 %v10679_v12, %v5850_v10  ;;  %v10776_v12 = vpop.f32.mrb[16].mxu1 }
 0x479   : > { %v5985_v14 = vrot.slane %v5984_v16, 4  ;;  %v6397_v49 = vmax.f32 %v10681_v19, %v5857_v0  ;;  %v6473_v59 = vadd.f32 %v10552_v56, %v6395_v53  ;;  %v5975_v25 = vrot.slane %v5974_v28, 1  ;;  %v10795_v0 = vpop.f32.mrb[17].mxu1 }
 0x47a   : > { %v6544_v31 = vmax.f32 %v6472_v11, 0.0  ;;  %v6474_v37 = vadd.f32 %v10552_v56, %v6396_v24  ;;  %v10773_v33 = vmax.f32 %v5911_v1, %v5912_v27  ;;  %v5979_v43 = vmax.f32 %v5977_v52, %v5978_v62 }
 0x47b   : > { %v5992_v20 = vrot.slane %v5991_v44, 4  ;;  %v6475_v41 = vadd.f32 %v10552_v56, %v6397_v49  ;;  %v6545_v46 = vmax.f32 %v6473_v59, 0.0  ;;  %v5976_v4 = vmax.f32 %v5974_v28, %v5975_v25 }
 0x47c   : > { %v7698_v35 = vpack.c.bf16 %v6544_v31, %v6544_v31  ;;  %v10779_v19 = vmax.f32 %v10726_v61, %v5891_v39  ;;  %v10782_v47 = vmax.f32 %v10732_v13, %v5898_v17  ;;  %v6546_v30 = vmax.f32 %v6474_v37, 0.0 }
 0x47d   : > { %v5986_v15 = vmax.f32 %v5984_v16, %v5985_v14  ;;  %v6547_v1 = vmax.f32 %v6475_v41, 0.0  ;;  %v7699_v54 = vpack.c.bf16 %v6545_v46, %v6545_v46  ;;  %v6405_v21 = vmax.f32 %v10773_v33, %v5976_v4 }
 0x47e   : > { %v6904_v52 = vunpack.c.l.b16 %v7698_v35  ;;  %v10785_v22 = vmax.f32 %v5904_v45, %v5905_v5  ;;  %v7700_v32 = vpack.c.bf16 %v6546_v30, %v6546_v30  ;;  %v5993_v26 = vmax.f32 %v5991_v44, %v5992_v20 }
 0x47f   : > { %v4938_v61 = vcombine.high %v10755_v63, %v10755_v63  ;;  %v6905_v39 = vunpack.c.l.b16 %v7699_v54  ;;  %v7741_v13 = vpack.c.bf16 %v6547_v1, %v6547_v1  ;;  %v5980_v27 = vrot.slane %v5979_v43, 2 }
 0x480   : > { %v7001_v40 = vrot.slane %v6904_v52, 3  ;;  %v6906_v10 = vunpack.c.l.b16 %v7700_v32  ;;  %v4945_v16 = vrot.slane %v10755_v63, %v10239_v51  ;;  %v8719_v45 = vadd.f32 %v10484_v18, %v10177_v58  ;;  %v11279_v52 = vld [vmem:[#allocation6_spill] sm:$0xff] }
 0x481   : > { %v4952_v62 = vrot.slane %v4938_v61, %v10239_v51  ;;  %v7003_v53 = vrot.slane %v6905_v39, 2  ;;  %v7112_v11 = vsel %vm10391_vm4, %v7741_v13, %v7111_v42  ;;  %v5987_v28 = vrot.slane %v5986_v15, 2 }
 0x482   : > { %v7002_v44 = vsel %vm6957_vm14, %v7001_v40, %v10748_v60  ;;  %v7005_v17 = vrot.slane %v6906_v10, 1  ;;  %7113 = vst [vmem:[%s10385_s23 + $0x1c] sm:$0x1] %v7112_v11  ;;  %v4953_v5 = vcombine.high %v4945_v16, %v4945_v16  ;;  %v5914_v63 = vsel %vm428_vm0, %v4945_v16, -inf }
 0x483   : > { %v4954_v24 = vcombine.high %v4952_v62, %v4952_v62  ;;  %v7004_v14 = vsel %vm6960_vm15, %v7003_v53, %v7002_v44  ;;  %v5981_v58 = vmax.f32 %v5979_v43, %v5980_v27  ;;  %v5915_v18 = vrot.slane %v5914_v63, 4 }
 0x484   : > { %v5928_v49 = vsel %vm428_vm0, %v4952_v62, -inf  ;;  %v7006_v60 = vsel %vm6963_vm3, %v7005_v17, %v7004_v14  ;;  %v5921_v59 = vsel %vm428_vm0, %v4953_v5, -inf  ;;  %v5994_v33 = vrot.slane %v5993_v26, 2 }
 0x485   : > { %v5929_v31 = vrot.slane %v5928_v49, 4  ;;  %v5935_v25 = vsel %vm428_vm0, %v4954_v24, -inf  ;;  %v7069_v37 = vpack.c.b16 %v7006_v60, %v7006_v60  ;;  %v5916_v20 = vmax.f32 %v5914_v63, %v5915_v18 }
 0x486   : > { %v5922_v41 = vrot.slane %v5921_v59, 4  ;;  %v5936_v35 = vrot.slane %v5935_v25, 4  ;;  %v4989_v4 = vcombine.high %v8719_v45, %v8719_v45  ;;  %v4996_v30 = vrot.slane %v8719_v45, %v10239_v51 }
 0x487   : > { %v5930_v46 = vmax.f32 %v5928_v49, %v5929_v31  ;;  %7110 = vst [vmem:[%s10385_s23 + $0x18] sm:$0xf] %v7069_v37  ;;  %v5982_v43 = vrot.slane %v5981_v58, 1  ;;  %v5917_v1 = vrot.slane %v5916_v20, 2  ;;  %v10812_v32 = vadd.f32 %v10498_v34, %v11279_v52 }
 0x488   : > { %v5923_v54 = vmax.f32 %v5921_v59, %v5922_v41  ;;  %v5937_v61 = vmax.f32 %v5935_v25, %v5936_v35  ;;  %v5003_v39 = vrot.slane %v4989_v4, %v10239_v51  ;;  %v5004_v40 = vcombine.high %v4996_v30, %v4996_v30 }
 0x489   : > { %v5931_v42 = vrot.slane %v5930_v46, 2  ;;  %v6483_v13 = vadd.f32 %v10552_v56, %v6405_v21  ;;  %v5918_v27 = vmax.f32 %v5916_v20, %v5917_v1  ;;  %v5998_v16 = vsel %vm428_vm0, %v4996_v30, -inf }
 0x48a   : > { %v5924_v10 = vrot.slane %v5923_v54, 2  ;;  %v5938_v45 = vrot.slane %v5937_v61, 2  ;;  %v5005_v44 = vcombine.high %v5003_v39, %v5003_v39  ;;  %v5999_v53 = vrot.slane %v5998_v16, 4 }
 0x48b   : > { %v5932_v62 = vmax.f32 %v5930_v46, %v5931_v42  ;;  %v5983_v11 = vmax.f32 %v5981_v58, %v5982_v43  ;;  %v5988_v17 = vmax.f32 %v5986_v15, %v5987_v28  ;;  %v5919_v5 = vrot.slane %v5918_v27, 1 }
 0x48c   : > { %v5925_v34 = vmax.f32 %v5923_v54, %v5924_v10  ;;  %v10817_v24 = vmax.f32 %v5993_v26, %v5994_v33  ;;  %v5939_v14 = vmax.f32 %v5937_v61, %v5938_v45  ;;  %v6005_v18 = vsel %vm428_vm0, %v5004_v40, -inf }
 0x48d   : > { %v5933_v63 = vrot.slane %v5932_v62, 1  ;;  %v6555_v49 = vmax.f32 %v6483_v13, 0.0  ;;  %v5920_v21 = vmax.f32 %v5918_v27, %v5919_v5  ;;  %v6019_v59 = vsel %vm428_vm0, %v5005_v44, -inf }
 0x48e   : > { %v5926_v60 = vrot.slane %v5925_v34, 1  ;;  %v5940_v25 = vrot.slane %v5939_v14, 1  ;;  %v6000_v37 = vmax.f32 %v5998_v16, %v5999_v53  ;;  %v6012_v20 = vsel %vm428_vm0, %v5003_v39, -inf  ;;  %v10830_v39 = vpop.f32.mrb[18].mxu1 }
 0x48f   : > { %v5934_v31 = vmax.f32 %v5932_v62, %v5933_v63  ;;  %v6406_v15 = vmax.f32 %v5920_v21, %v5983_v11  ;;  %v6006_v28 = vrot.slane %v6005_v18, 4  ;;  %v6020_v41 = vrot.slane %v6019_v59, 4  ;;  %v7115_v62 = vld [vmem:[%s10385_s23 + $0x24] sm:$0x1] }
 0x490   : > { %v5927_v58 = vmax.f32 %v5925_v34, %v5926_v60  ;;  %v5989_v26 = vrot.slane %v5988_v17, 1  ;;  %v5996_v33 = vrot.slane %v10817_v24, 1  ;;  %v5941_v46 = vmax.f32 %v5939_v14, %v5940_v25 }
 0x491   : > { %v6399_v35 = vmax.f32 %v10716_v23, %v5934_v31  ;;  %v10824_v4 = vpack.c.bf16 %v6555_v49, %v6555_v49  ;;  %v6484_v43 = vadd.f32 %v10552_v56, %v6406_v15  ;;  %v6021_v1 = vmax.f32 %v6019_v59, %v6020_v41 }
 0x492   : > { %v6398_v30 = vmax.f32 %v10704_v50, %v5927_v58  ;;  %v6400_v54 = vmax.f32 %v10723_v36, %v5941_v46  ;;  %v6001_v42 = vrot.slane %v6000_v37, 2  ;;  %v6013_v61 = vrot.slane %v6012_v20, 4  ;;  %v10859_v46 = vpop.f32.mrb[19].mxu1 }
 0x493   : > { %v6477_v52 = vadd.f32 %v10552_v56, %v6399_v35  ;;  %v6556_v13 = vmax.f32 %v6484_v43, 0.0  ;;  %v10833_v23 = vmax.f32 %v6005_v18, %v6006_v28  ;;  %v6022_v27 = vrot.slane %v6021_v1, 2 }
 0x494   : > { %v6476_v40 = vadd.f32 %v10552_v56, %v6398_v30  ;;  %v10835_v10 = vmax.f32 %v5988_v17, %v5989_v26  ;;  %v6478_v50 = vadd.f32 %v10552_v56, %v6400_v54  ;;  %v4955_v36 = vcombine.high %v10812_v32, %v10812_v32 }
 0x495   : > { %v6549_v16 = vmax.f32 %v6477_v52, 0.0  ;;  %v6915_v45 = vunpack.c.l.b16 %v10824_v4  ;;  %v7742_v53 = vpack.c.bf16 %v6556_v13, %v6556_v13  ;;  %v10842_v11 = vmax.f32 %v6021_v1, %v6022_v27 }
 0x496   : > { %v6548_v44 = vmax.f32 %v6476_v40, 0.0  ;;  %v6550_v5 = vmax.f32 %v6478_v50, 0.0  ;;  %v10844_v63 = vmax.f32 %v6012_v20, %v6013_v61  ;;  %v4962_v17 = vrot.slane %v10812_v32, %v10239_v51  ;;  %v11280_v32 = vld [vmem:[#allocation8_spill] sm:$0xff] }
 0x497   : > { %v7703_v34 = vpack.c.bf16 %v6549_v16, %v6549_v16  ;;  %v7116_v14 = vsel %vm10391_vm4, %v7742_v53, %v7115_v62  ;;  %v10850_v18 = vmax.f32 %v6000_v37, %v6001_v42  ;;  %v6008_v49 = vrot.slane %v10833_v23, 2 }
 0x498   : > { %v7702_v56 = vpack.c.bf16 %v6548_v44, %v6548_v44  ;;  %v7704_v21 = vpack.c.bf16 %v6550_v5, %v6550_v5  ;;  %7117 = vst [vmem:[%s10385_s23 + $0x24] sm:$0x1] %v7116_v14  ;;  %v4969_v59 = vrot.slane %v4955_v36, %v10239_v51  ;;  %v4970_v31 = vcombine.high %v4962_v17, %v4962_v17 }
 0x499   : > { %v6909_v60 = vunpack.c.l.b16 %v7703_v34  ;;  %v6024_v20 = vrot.slane %v10842_v11, 1  ;;  %v5942_v58 = vsel %vm428_vm0, %v4962_v17, -inf  ;;  %v8721_v15 = vadd.f32 %v10540_v7, %v11280_v32 }
 0x49a   : > { %v6908_v25 = vunpack.c.l.b16 %v7702_v56  ;;  %v6910_v28 = vunpack.c.l.b16 %v7704_v21  ;;  %v4971_v37 = vcombine.high %v4969_v59, %v4969_v59  ;;  %v5943_v26 = vrot.slane %v5942_v58, 4 }
 0x49b   : > { %v7007_v41 = vrot.slane %v6909_v60, 7  ;;  %v5949_v35 = vsel %vm428_vm0, %v4970_v31, -inf  ;;  %v5956_v30 = vsel %vm428_vm0, %v4969_v59, -inf  ;;  %v5040_v43 = vcombine.high %v8721_v15, %v8721_v15 }
 0x49c   : > { %v5047_v1 = vrot.slane %v8721_v15, %v10239_v51  ;;  %v7009_v52 = vrot.slane %v6910_v28, 6  ;;  %v5944_v42 = vmax.f32 %v5942_v58, %v5943_v26  ;;  %v5950_v61 = vrot.slane %v5949_v35, 4 }
 0x49d   : > { %v7008_v54 = vsel %vm6945_vm10, %v7007_v41, %v6908_v25  ;;  %v5957_v40 = vrot.slane %v5956_v30, 4  ;;  %v5963_v7 = vsel %vm428_vm0, %v4971_v37, -inf  ;;  %v5054_v13 = vrot.slane %v5040_v43, %v10239_v51 }
 0x49e   : > { %v5055_v27 = vcombine.high %v5047_v1, %v5047_v1  ;;  %v5945_v50 = vrot.slane %v5944_v42, 2  ;;  %v5951_v16 = vmax.f32 %v5949_v35, %v5950_v61  ;;  %v5964_v62 = vrot.slane %v5963_v7, 4 }
 0x49f   : > { %v10868_v36 = vsel %vm6948_vm11, %v7009_v52, %v7008_v54  ;;  %v5885_v44 = vmax.f32 %v10710_v29, %v5884_v8  ;;  %v5958_v53 = vmax.f32 %v5956_v30, %v5957_v40  ;;  %v5056_v5 = vcombine.high %v5054_v13, %v5054_v13 }
 0x4a0   : > { %v6082_v34 = vsel %vm428_vm0, %v5047_v1, -inf  ;;  %v5946_v17 = vmax.f32 %v5944_v42, %v5945_v50  ;;  %v5952_v56 = vrot.slane %v5951_v16, 2  ;;  %v5965_v14 = vmax.f32 %v5963_v7, %v5964_v62 }
 0x4a1   : > { %v6083_v21 = vrot.slane %v6082_v34, 4  ;;  %v5959_v60 = vrot.slane %v5958_v53, 2  ;;  %v6089_v59 = vsel %vm428_vm0, %v5055_v27, -inf  ;;  %v6096_v31 = vsel %vm428_vm0, %v5054_v13, -inf }
 0x4a2   : > { %v6103_v25 = vsel %vm428_vm0, %v5056_v5, -inf  ;;  %v5947_v58 = vrot.slane %v5946_v17, 1  ;;  %v5953_v32 = vmax.f32 %v5951_v16, %v5952_v56  ;;  %v5966_v15 = vrot.slane %v5965_v14, 2 }
 0x4a3   : > { %v6084_v28 = vmax.f32 %v6082_v34, %v6083_v21  ;;  %v5960_v29 = vmax.f32 %v5958_v53, %v5959_v60  ;;  %v6090_v8 = vrot.slane %v6089_v59, 4  ;;  %v6097_v41 = vrot.slane %v6096_v31, 4  ;;  %v10882_v34 = vld [vmem:[%s11204_s3] ss:$0 sm:$0xff] }
 0x4a4   : > { %v6104_v37 = vrot.slane %v6103_v25, 4  ;;  %v5948_v26 = vmax.f32 %v5946_v17, %v5947_v58  ;;  %v5954_v35 = vrot.slane %v5953_v32, 1  ;;  %v5967_v30 = vmax.f32 %v5965_v14, %v5966_v15 }
 0x4a5   : > { %v6085_v43 = vrot.slane %v6084_v28, 2  ;;  %v5961_v1 = vrot.slane %v5960_v29, 1  ;;  %v6091_v54 = vmax.f32 %v6089_v59, %v6090_v8  ;;  %v6098_v52 = vmax.f32 %v6096_v31, %v6097_v41 }
 0x4a6   : > { %v6105_v42 = vmax.f32 %v6103_v25, %v6104_v37  ;;  %v5955_v61 = vmax.f32 %v5953_v32, %v5954_v35  ;;  %v5968_v40 = vrot.slane %v5967_v30, 1  ;;  %v6401_v7 = vmax.f32 %v5885_v44, %v5948_v26 }
 0x4a7   : > { %v6086_v13 = vmax.f32 %v6084_v28, %v6085_v43  ;;  %v6015_v27 = vrot.slane %v10844_v63, 2  ;;  %v5962_v50 = vmax.f32 %v5960_v29, %v5961_v1  ;;  %v6092_v16 = vrot.slane %v6091_v54, 2  ;;  %v11281_v43 = vld [vmem:[#allocation10_spill] sm:$0xff] }
 0x4a8   : > { %v6099_v62 = vrot.slane %v6098_v52, 2  ;;  %v5969_v53 = vmax.f32 %v5967_v30, %v5968_v40  ;;  %v6402_v5 = vmax.f32 %v10779_v19, %v5955_v61  ;;  %v6479_v17 = vadd.f32 %v10882_v34, %v6401_v7  ;;  %v11283_v61 = vld [vmem:[#allocation15_spill] sm:$0xff] }
 0x4a9   : > { %v6087_v56 = vrot.slane %v6086_v13, 1  ;;  %v6403_v14 = vmax.f32 %v10782_v47, %v5962_v50  ;;  %v6025_v44 = vmax.f32 %v10842_v11, %v6024_v20  ;;  %v6093_v21 = vmax.f32 %v6091_v54, %v6092_v16  ;;  %v11282_v54 = vld [vmem:[#allocation12_spill] sm:$0xff] }
 0x4aa   : > { %v6106_v60 = vrot.slane %v6105_v42, 2  ;;  %v6404_v59 = vmax.f32 %v10785_v22, %v5969_v53  ;;  %v6480_v19 = vadd.f32 %v10882_v34, %v6402_v5  ;;  %v6551_v31 = vmax.f32 %v6479_v17, 0.0 }
 0x4ab   : > { %v6088_v25 = vmax.f32 %v6086_v13, %v6087_v56  ;;  %v7019_v58 = vrot.slane %v6915_v45, 1  ;;  %v6003_v32 = vrot.slane %v10850_v18, 1  ;;  %v6481_v15 = vadd.f32 %v10882_v34, %v6403_v14 }
 0x4ac   : > { %v10895_v47 = vmax.f32 %v6098_v52, %v6099_v62  ;;  %v6482_v28 = vadd.f32 %v10882_v34, %v6404_v59  ;;  %v6552_v11 = vmax.f32 %v6480_v19, 0.0  ;;  %v7705_v20 = vpack.c.bf16 %v6551_v31, %v6551_v31 }
 0x4ad   : > { %v6412_v29 = vmax.f32 %v6025_v44, %v6088_v25  ;;  %v10901_v22 = vmax.f32 %v10833_v23, %v6008_v49  ;;  %v10904_v8 = vmax.f32 %v10844_v63, %v6015_v27  ;;  %v6553_v4 = vmax.f32 %v6481_v15, 0.0 }
 0x4ae   : > { %v10906_v45 = vmax.f32 %v6105_v42, %v6106_v60  ;;  %v6554_v41 = vmax.f32 %v6482_v28, 0.0  ;;  %v7706_v37 = vpack.c.bf16 %v6552_v11, %v6552_v11  ;;  %v6911_v26 = vunpack.c.l.b16 %v7705_v20 }
 0x4af   : > { %v6094_v35 = vrot.slane %v6093_v21, 1  ;;  %v7707_v30 = vpack.c.bf16 %v6553_v4, %v6553_v4  ;;  %v8722_v1 = vadd.f32 %v10556_v2, %v11281_v43  ;;  %v8723_v52 = vadd.f32 %v10602_v3, %v11282_v54 }
 0x4b0   : > { %v10914_v23 = vadd.f32 %v10619_v48, %v11283_v61  ;;  %v7708_v63 = vpack.c.bf16 %v6554_v41, %v6554_v41  ;;  %v6912_v49 = vunpack.c.l.b16 %v7706_v37  ;;  %v7011_v40 = vrot.slane %v6911_v26, 5 }
 0x4b1   : > { %v6101_v42 = vrot.slane %v10895_v47, 1  ;;  %v6913_v7 = vunpack.c.l.b16 %v7707_v30  ;;  %v6108_v13 = vrot.slane %v10906_v45, 1  ;;  %v5006_v27 = vcombine.high %v8722_v1, %v8722_v1 }
 0x4b2   : > { %v5013_v50 = vrot.slane %v8722_v1, %v10239_v51  ;;  %v6914_v16 = vunpack.c.l.b16 %v7708_v63  ;;  %v7012_v2 = vsel %vm6951_vm12, %v7011_v40, %v10868_v36  ;;  %v7013_v3 = vrot.slane %v6912_v49, 4 }
 0x4b3   : > { %v10921_v62 = vmax.f32 %v6093_v21, %v6094_v35  ;;  %v7015_v48 = vrot.slane %v6913_v7, 3  ;;  %v5020_v53 = vrot.slane %v5006_v27, %v10239_v51  ;;  %v5057_v60 = vcombine.high %v8723_v52, %v8723_v52 }
 0x4b4   : > { %v5021_v5 = vcombine.high %v5013_v50, %v5013_v50  ;;  %v6026_v17 = vsel %vm428_vm0, %v5013_v50, -inf  ;;  %v7014_v56 = vsel %vm6954_vm13, %v7013_v3, %v7012_v2  ;;  %v7017_v14 = vrot.slane %v6914_v16, 2 }
 0x4b5   : > { %v6027_v44 = vrot.slane %v6026_v17, 4  ;;  %v7016_v59 = vsel %vm6957_vm14, %v7015_v48, %v7014_v56  ;;  %v5022_v19 = vcombine.high %v5020_v53, %v5020_v53  ;;  %v6040_v36 = vsel %vm428_vm0, %v5020_v53, -inf }
 0x4b6   : > { %v6033_v31 = vsel %vm428_vm0, %v5021_v5, -inf  ;;  %v7018_v21 = vsel %vm6960_vm15, %v7017_v14, %v7016_v59  ;;  %v6490_v25 = vadd.f32 %v10882_v34, %v6412_v29  ;;  %v6041_v20 = vrot.slane %v6040_v36, 4 }
 0x4b7   : > { %v6028_v15 = vmax.f32 %v6026_v17, %v6027_v44  ;;  %v6034_v28 = vrot.slane %v6033_v31, 4  ;;  %v7020_v11 = vsel %vm6963_vm3, %v7019_v58, %v7018_v21  ;;  %v6047_v4 = vsel %vm428_vm0, %v5022_v19, -inf }
 0x4b8   : > { %v5064_v41 = vrot.slane %v8723_v52, %v10239_v51  ;;  %v7071_v37 = vpack.c.b16 %v7020_v11, %v7020_v11  ;;  %v6048_v30 = vrot.slane %v6047_v4, 4  ;;  %v6042_v43 = vmax.f32 %v6040_v36, %v6041_v20 }
 0x4b9   : > { %v6029_v26 = vrot.slane %v6028_v15, 2  ;;  %v6035_v35 = vmax.f32 %v6033_v31, %v6034_v28  ;;  %v5071_v1 = vrot.slane %v5057_v60, %v10239_v51  ;;  %v6562_v29 = vmax.f32 %v6490_v25, 0.0 }
 0x4ba   : > { %v5072_v54 = vcombine.high %v5064_v41, %v5064_v41  ;;  %v6110_v61 = vsel %vm428_vm0, %v5064_v41, -inf  ;;  %7114 = vst [vmem:[%s10385_s23 + $0x20] sm:$0xf] %v7071_v37  ;;  %v6049_v58 = vmax.f32 %v6047_v4, %v6048_v30  ;;  %v6043_v40 = vrot.slane %v6042_v43, 2 }
 0x4bb   : > { %v6030_v63 = vmax.f32 %v6028_v15, %v6029_v26  ;;  %v6036_v49 = vrot.slane %v6035_v35, 2  ;;  %v5073_v7 = vcombine.high %v5071_v1, %v5071_v1  ;;  %v6111_v27 = vrot.slane %v6110_v61, 4 }
 0x4bc   : > { %v6117_v52 = vsel %vm428_vm0, %v5072_v54, -inf  ;;  %v6102_v50 = vmax.f32 %v10895_v47, %v6101_v42  ;;  %v6050_v3 = vrot.slane %v6049_v58, 2  ;;  %v6044_v48 = vmax.f32 %v6042_v43, %v6043_v40 }
 0x4bd   : > { %v6031_v16 = vrot.slane %v6030_v63, 1  ;;  %v6037_v2 = vmax.f32 %v6035_v35, %v6036_v49  ;;  %v6118_v53 = vrot.slane %v6117_v52, 4  ;;  %v6124_v5 = vsel %vm428_vm0, %v5071_v1, -inf }
 0x4be   : > { %v6131_v17 = vsel %vm428_vm0, %v5073_v7, -inf  ;;  %v6109_v56 = vmax.f32 %v10906_v45, %v6108_v13  ;;  %v6051_v60 = vmax.f32 %v6049_v58, %v6050_v3  ;;  %v7716_v59 = vpack.c.bf16 %v6562_v29, %v6562_v29 }
 0x4bf   : > { %v6032_v14 = vmax.f32 %v6030_v63, %v6031_v16  ;;  %v6038_v44 = vrot.slane %v6037_v2, 1  ;;  %v6045_v19 = vrot.slane %v6044_v48, 1  ;;  %v6112_v31 = vmax.f32 %v6110_v61, %v6111_v27  ;;  %v7119_v16 = vld [vmem:[%s10385_s23 + $0x2c] sm:$0x1] }
 0x4c0   : > { %v6132_v36 = vrot.slane %v6131_v17, 4  ;;  %v6052_v47 = vrot.slane %v6051_v60, 1  ;;  %v6125_v25 = vrot.slane %v6124_v5, 4  ;;  %v6010_v15 = vrot.slane %v10901_v22, 1 }
 0x4c1   : > { %v6039_v21 = vmax.f32 %v6037_v2, %v6038_v44  ;;  %v6413_v42 = vmax.f32 %v6032_v14, %v10921_v62  ;;  %v6046_v28 = vmax.f32 %v6044_v48, %v6045_v19  ;;  %v6119_v11 = vmax.f32 %v6117_v52, %v6118_v53 }
 0x4c2   : > { %v6133_v20 = vmax.f32 %v6131_v17, %v6132_v36  ;;  %v6017_v4 = vrot.slane %v10904_v8, 1  ;;  %v6053_v45 = vmax.f32 %v6051_v60, %v6052_v47  ;;  %v6922_v37 = vunpack.c.l.b16 %v7716_v59 }
 0x4c3   : > { %v6414_v13 = vmax.f32 %v6039_v21, %v6102_v50  ;;  %v6491_v41 = vadd.f32 %v10882_v34, %v6413_v42  ;;  %v6415_v26 = vmax.f32 %v6046_v28, %v6109_v56  ;;  %v6113_v35 = vrot.slane %v6112_v31, 2 }
 0x4c4   : > { %v6134_v30 = vrot.slane %v6133_v20, 2  ;;  %v6407_v43 = vmax.f32 %v10835_v10, %v6053_v45  ;;  %v10948_v54 = vmax.f32 %v6124_v5, %v6125_v25  ;;  %v10953_v61 = vmax.f32 %v10850_v18, %v6003_v32 }
 0x4c5   : > { %v6492_v62 = vadd.f32 %v10882_v34, %v6414_v13  ;;  %v6563_v1 = vmax.f32 %v6491_v41, 0.0  ;;  %v6493_v29 = vadd.f32 %v10882_v34, %v6415_v26  ;;  %v6120_v63 = vrot.slane %v6119_v11, 2  ;;  %v11285_v26 = vld [vmem:[#allocation17_spill] sm:$0xff] }
 0x4c6   : > { %v10956_v49 = vmax.f32 %v6133_v20, %v6134_v30  ;;  %v6485_v58 = vadd.f32 %v10882_v34, %v6407_v43  ;;  %v5023_v7 = vcombine.high %v10914_v23, %v10914_v23  ;;  %v10964_v27 = vmax.f32 %v10901_v22, %v6010_v15 }
 0x4c7   : > { %v6564_v40 = vmax.f32 %v6492_v62, 0.0  ;;  %v10959_v10 = vpack.c.bf16 %v6563_v1, %v6563_v1  ;;  %v10967_v52 = vmax.f32 %v10904_v8, %v6017_v4  ;;  %v10969_v18 = vrot.slane %v6922_v37, 3  ;;  %v11284_v8 = vld [vmem:[#allocation16_spill] sm:$0xff] }
 0x4c8   : > { %v6565_v32 = vmax.f32 %v6493_v29, 0.0  ;;  %v6557_v50 = vmax.f32 %v6485_v58, 0.0  ;;  %v10972_v2 = vmax.f32 %v6112_v31, %v6113_v35  ;;  %v6127_v3 = vrot.slane %v10948_v54, 2 }
 0x4c9   : > { %v5030_v48 = vrot.slane %v10914_v23, %v10239_v51  ;;  %v10977_v5 = vmax.f32 %v6119_v11, %v6120_v63  ;;  %v5037_v22 = vrot.slane %v5023_v7, %v10239_v51  ;;  %v8725_v17 = vadd.f32 %v10664_v9, %v11284_v8 }
 0x4ca   : > { %v7743_v53 = vpack.c.bf16 %v6565_v32, %v6565_v32  ;;  %v10982_v56 = vpack.c.bf16 %v6564_v40, %v6564_v40  ;;  %v6923_v14 = vunpack.c.l.b16 %v10959_v10  ;;  %v6136_v44 = vrot.slane %v10956_v49, 1 }
 0x4cb   : > { %v5038_v60 = vcombine.high %v5030_v48, %v5030_v48  ;;  %v5039_v19 = vcombine.high %v5037_v22, %v5037_v22  ;;  %v6054_v23 = vsel %vm428_vm0, %v5030_v48, -inf  ;;  %v6068_v31 = vsel %vm428_vm0, %v5037_v22, -inf }
 0x4cc   : > { %v7120_v59 = vsel %vm10391_vm4, %v7743_v53, %v7119_v16  ;;  %v10990_v36 = vpack.c.bf16 %v6557_v50, %v6557_v50  ;;  %v5997_v9 = vmax.f32 %v10817_v24, %v5996_v33  ;;  %v6055_v21 = vrot.slane %v6054_v23, 4 }
 0x4cd   : > { %7121 = vst [vmem:[%s10385_s23 + $0x2c] sm:$0x1] %v7120_v59  ;;  %v6061_v47 = vsel %vm428_vm0, %v5038_v60, -inf  ;;  %v6069_v25 = vrot.slane %v6068_v31, 4  ;;  %v6075_v15 = vsel %vm428_vm0, %v5039_v19, -inf  ;;  %v5108_v28 = vcombine.high %v8725_v17, %v8725_v17 }
 0x4ce   : > { %v6062_v42 = vrot.slane %v6061_v47, 4  ;;  %v6924_v11 = vunpack.c.l.b16 %v10982_v56  ;;  %v6056_v20 = vmax.f32 %v6054_v23, %v6055_v21  ;;  %v6076_v4 = vrot.slane %v6075_v15, 4 }
 0x4cf   : > { %v5115_v45 = vrot.slane %v8725_v17, %v10239_v51  ;;  %v6070_v41 = vmax.f32 %v6068_v31, %v6069_v25  ;;  %v5122_v37 = vrot.slane %v5108_v28, %v10239_v51  ;;  %v11003_v24 = vadd.f32 %v10672_v6, %v11285_v26 }
 0x4d0   : > { %v6063_v13 = vmax.f32 %v6061_v47, %v6062_v42  ;;  %v6057_v33 = vrot.slane %v6056_v20, 2  ;;  %v6077_v35 = vmax.f32 %v6075_v15, %v6076_v4 }
 0x4d1   : > { %v5123_v30 = vcombine.high %v5115_v45, %v5115_v45  ;;  %v6194_v43 = vsel %vm428_vm0, %v5115_v45, -inf  ;;  %v6071_v1 = vrot.slane %v6070_v41, 2  ;;  %v5124_v29 = vcombine.high %v5122_v37, %v5122_v37 }
 0x4d2   : > { %v6064_v62 = vrot.slane %v6063_v13, 2  ;;  %v6195_v63 = vrot.slane %v6194_v43, 4  ;;  %v6058_v58 = vmax.f32 %v6056_v20, %v6057_v33  ;;  %v6078_v40 = vrot.slane %v6077_v35, 2 }
 0x4d3   : > { %v6201_v7 = vsel %vm428_vm0, %v5123_v30, -inf  ;;  %v6208_v32 = vsel %vm428_vm0, %v5122_v37, -inf  ;;  %v6072_v16 = vmax.f32 %v6070_v41, %v6071_v1  ;;  %v6215_v17 = vsel %vm428_vm0, %v5124_v29, -inf }
 0x4d4   : > { %v6065_v50 = vmax.f32 %v6063_v13, %v6064_v62  ;;  %v6196_v48 = vmax.f32 %v6194_v43, %v6195_v63  ;;  %v6202_v6 = vrot.slane %v6201_v7, 4  ;;  %v6059_v53 = vrot.slane %v6058_v58, 1 }
 0x4d5   : > { %v6079_v22 = vmax.f32 %v6077_v35, %v6078_v40  ;;  %v6209_v8 = vrot.slane %v6208_v32, 4  ;;  %v6073_v59 = vrot.slane %v6072_v16, 1  ;;  %v6216_v42 = vrot.slane %v6215_v17, 4 }
 0x4d6   : > { %v6066_v60 = vrot.slane %v6065_v50, 1  ;;  %v6197_v19 = vrot.slane %v6196_v48, 2  ;;  %v6203_v23 = vmax.f32 %v6201_v7, %v6202_v6  ;;  %v6060_v31 = vmax.f32 %v6058_v58, %v6059_v53 }
 0x4d7   : > { %v6080_v21 = vrot.slane %v6079_v22, 1  ;;  %v6210_v47 = vmax.f32 %v6208_v32, %v6209_v8  ;;  %v6074_v15 = vmax.f32 %v6072_v16, %v6073_v59  ;;  %v6217_v41 = vmax.f32 %v6215_v17, %v6216_v42 }
 0x4d8   : > { %v6067_v25 = vmax.f32 %v6065_v50, %v6066_v60  ;;  %v6198_v28 = vmax.f32 %v6196_v48, %v6197_v19  ;;  %v6204_v20 = vrot.slane %v6203_v23, 2  ;;  %v6408_v45 = vmax.f32 %v5997_v9, %v6060_v31 }
 0x4d9   : > { %v6081_v4 = vmax.f32 %v6079_v22, %v6080_v21  ;;  %v6211_v13 = vrot.slane %v6210_v47, 2  ;;  %v6410_v26 = vmax.f32 %v10964_v27, %v6074_v15  ;;  %v6137_v62 = vmax.f32 %v10956_v49, %v6136_v44 }
 0x4da   : > { %v6409_v37 = vmax.f32 %v10953_v61, %v6067_v25  ;;  %v6199_v33 = vrot.slane %v6198_v28, 1  ;;  %v6205_v35 = vmax.f32 %v6203_v23, %v6204_v20  ;;  %v6486_v43 = vadd.f32 %v10882_v34, %v6408_v45 }
 0x4db   : > { %v6411_v30 = vmax.f32 %v10967_v52, %v6081_v4  ;;  %v6212_v1 = vmax.f32 %v6210_v47, %v6211_v13  ;;  %v6488_v9 = vadd.f32 %v10882_v34, %v6410_v26  ;;  %v6218_v58 = vrot.slane %v6217_v41, 2 }
 0x4dc   : > { %v6487_v29 = vadd.f32 %v10882_v34, %v6409_v37  ;;  %v6200_v63 = vmax.f32 %v6198_v28, %v6199_v33  ;;  %v7031_v61 = vrot.slane %v6923_v14, 2  ;;  %v6558_v40 = vmax.f32 %v6486_v43, 0.0 }
 0x4dd   : > { %v6489_v27 = vadd.f32 %v10882_v34, %v6411_v30  ;;  %v6206_v52 = vrot.slane %v6205_v35, 1  ;;  %v6560_v32 = vmax.f32 %v6488_v9, 0.0  ;;  %v6213_v50 = vrot.slane %v6212_v1, 1 }
 0x4de   : > { %v6559_v7 = vmax.f32 %v6487_v29, 0.0  ;;  %v6419_v16 = vmax.f32 %v6137_v62, %v6200_v63  ;;  %v6917_v49 = vunpack.c.l.b16 %v10990_v36  ;;  %v7033_v44 = vrot.slane %v6924_v11, 1 }
 0x4df   : > { %v6561_v48 = vmax.f32 %v6489_v27, 0.0  ;;  %v7712_v6 = vpack.c.bf16 %v6558_v40, %v6558_v40  ;;  %v7714_v22 = vpack.c.bf16 %v6560_v32, %v6560_v32  ;;  %v6219_v8 = vmax.f32 %v6217_v41, %v6218_v58  ;;  %v11286_v40 = vld [vmem:[#allocation18_spill] sm:$0xff] }
 0x4e0   : > { %v7713_v53 = vpack.c.bf16 %v6559_v7, %v6559_v7  ;;  %v5074_v10 = vcombine.high %v11003_v24, %v11003_v24  ;;  %v11026_v60 = vmax.f32 %v6205_v35, %v6206_v52  ;;  %v5081_v59 = vrot.slane %v11003_v24, %v10239_v51 }
 0x4e1   : > { %v7715_v14 = vpack.c.bf16 %v6561_v48, %v6561_v48  ;;  %v6918_v17 = vunpack.c.l.b16 %v7712_v6  ;;  %v6920_v36 = vunpack.c.l.b16 %v7714_v22  ;;  %v11030_v23 = vmax.f32 %v6212_v1, %v6213_v50 }
 0x4e2   : > { %v6919_v19 = vunpack.c.l.b16 %v7713_v53  ;;  %v5088_v56 = vrot.slane %v5074_v10, %v10239_v51  ;;  %v5089_v21 = vcombine.high %v5081_v59, %v5081_v59  ;;  %v6138_v47 = vsel %vm428_vm0, %v5081_v59, -inf }
 0x4e3   : > { %v6921_v11 = vunpack.c.l.b16 %v7715_v14  ;;  %v7021_v31 = vrot.slane %v6918_v17, 7  ;;  %v7025_v25 = vrot.slane %v6920_v36, 5  ;;  %v6497_v15 = vadd.f32 %v10882_v34, %v6419_v16  ;;  %v11287_v16 = vld [vmem:[#allocation19_spill] sm:$0xff] }
 0x4e4   : > { %v7023_v42 = vrot.slane %v6919_v19, 6  ;;  %v5090_v28 = vcombine.high %v5088_v56, %v5088_v56  ;;  %v6139_v24 = vrot.slane %v6138_v47, 4  ;;  %v6145_v45 = vsel %vm428_vm0, %v5089_v21, -inf }
 0x4e5   : > { %v7022_v20 = vsel %vm6945_vm10, %v7021_v31, %v6917_v49  ;;  %v7027_v4 = vrot.slane %v6921_v11, 4  ;;  %v6220_v41 = vrot.slane %v6219_v8, 1  ;;  %v6146_v37 = vrot.slane %v6145_v45, 4 }
 0x4e6   : > { %v7024_v13 = vsel %vm6948_vm11, %v7023_v42, %v7022_v20  ;;  %v6152_v26 = vsel %vm428_vm0, %v5088_v56, -inf  ;;  %v6140_v35 = vmax.f32 %v6138_v47, %v6139_v24  ;;  %v6159_v43 = vsel %vm428_vm0, %v5090_v28, -inf }
 0x4e7   : > { %v7026_v33 = vsel %vm6951_vm12, %v7025_v25, %v7024_v13  ;;  %v6153_v30 = vrot.slane %v6152_v26, 4  ;;  %v6569_v1 = vmax.f32 %v6497_v15, 0.0  ;;  %v6147_v29 = vmax.f32 %v6145_v45, %v6146_v37 }
 0x4e8   : > { %v7028_v62 = vsel %vm6954_vm13, %v7027_v4, %v7026_v33  ;;  %v6160_v9 = vrot.slane %v6159_v43, 4  ;;  %v6141_v58 = vrot.slane %v6140_v35, 2  ;;  %v8727_v52 = vadd.f32 %v10714_v38, %v11286_v40 }
 0x4e9   : > { %v7030_v63 = vsel %vm6957_vm14, %v10969_v18, %v7028_v62  ;;  %v6154_v27 = vmax.f32 %v6152_v26, %v6153_v30  ;;  %v6148_v32 = vrot.slane %v6147_v29, 2  ;;  %v8728_v49 = vadd.f32 %v10742_v55, %v11287_v16 }
 0x4ea   : > { %v7032_v7 = vsel %vm6960_vm15, %v7031_v61, %v7030_v63  ;;  %v6161_v50 = vmax.f32 %v6159_v43, %v6160_v9  ;;  %v6142_v6 = vmax.f32 %v6140_v35, %v6141_v58  ;;  %v5125_v22 = vcombine.high %v8727_v52, %v8727_v52 }
 0x4eb   : > { %v7034_v48 = vsel %vm6963_vm3, %v7033_v44, %v7032_v7  ;;  %v6155_v53 = vrot.slane %v6154_v27, 2  ;;  %v6149_v18 = vmax.f32 %v6147_v29, %v6148_v32  ;;  %v5132_v17 = vrot.slane %v8727_v52, %v10239_v51 }
 0x4ec   : > { %v7073_v10 = vpack.c.b16 %v7034_v48, %v7034_v48  ;;  %v6162_v14 = vrot.slane %v6161_v50, 2  ;;  %v6221_v59 = vmax.f32 %v6219_v8, %v6220_v41  ;;  %v6143_v38 = vrot.slane %v6142_v6, 1 }
 0x4ed   : > { %v6156_v19 = vmax.f32 %v6154_v27, %v6155_v53  ;;  %v5139_v61 = vrot.slane %v5125_v22, %v10239_v51  ;;  %v6150_v36 = vrot.slane %v6149_v18, 1  ;;  %v5140_v11 = vcombine.high %v5132_v17, %v5132_v17 }
 0x4ee   : > { %7118 = vst [vmem:[%s10385_s23 + $0x28] sm:$0xf] %v7073_v10  ;;  %v6163_v56 = vmax.f32 %v6161_v50, %v6162_v14  ;;  %v6222_v55 = vsel %vm428_vm0, %v5132_v17, -inf  ;;  %v6144_v44 = vmax.f32 %v6142_v6, %v6143_v38  ;;  %v6128_v42 = vmax.f32 %v10948_v54, %v6127_v3 }
 0x4ef   : > { %v6157_v31 = vrot.slane %v6156_v19, 1  ;;  %v5141_v21 = vcombine.high %v5139_v61, %v5139_v61  ;;  %v6223_v47 = vrot.slane %v6222_v55, 4  ;;  %v7723_v25 = vpack.c.bf16 %v6569_v1, %v6569_v1 }
 0x4f0   : > { %v6151_v8 = vmax.f32 %v6149_v18, %v6150_v36  ;;  %v6229_v15 = vsel %vm428_vm0, %v5140_v11, -inf  ;;  %v6420_v20 = vmax.f32 %v6144_v44, %v11026_v60  ;;  %v6164_v45 = vrot.slane %v6163_v56, 1 }
 0x4f1   : > { %v6158_v28 = vmax.f32 %v6156_v19, %v6157_v31  ;;  %v6224_v4 = vmax.f32 %v6222_v55, %v6223_v47  ;;  %v6230_v24 = vrot.slane %v6229_v15, 4  ;;  %v6243_v41 = vsel %vm428_vm0, %v5141_v21, -inf }
 0x4f2   : > { %v6421_v13 = vmax.f32 %v6151_v8, %v11030_v23  ;;  %v5091_v37 = vcombine.high %v8728_v49, %v8728_v49  ;;  %v6498_v33 = vadd.f32 %v10882_v34, %v6420_v20  ;;  %v6115_v3 = vrot.slane %v10972_v2, 1 }
 0x4f3   : > { %v6422_v26 = vmax.f32 %v6158_v28, %v6221_v59  ;;  %v6225_v35 = vrot.slane %v6224_v4, 2  ;;  %v6231_v54 = vmax.f32 %v6229_v15, %v6230_v24  ;;  %v6244_v43 = vrot.slane %v6243_v41, 4 }
 0x4f4   : > { %v6499_v30 = vadd.f32 %v10882_v34, %v6421_v13  ;;  %v5098_v60 = vrot.slane %v8728_v49, %v10239_v51  ;;  %v6570_v1 = vmax.f32 %v6498_v33, 0.0  ;;  %v6122_v9 = vrot.slane %v10977_v5, 1 }
 0x4f5   : > { %v6500_v62 = vadd.f32 %v10882_v34, %v6422_v26  ;;  %v6226_v29 = vmax.f32 %v6224_v4, %v6225_v35  ;;  %v6232_v23 = vrot.slane %v6231_v54, 2  ;;  %v6129_v63 = vrot.slane %v6128_v42, 1 }
 0x4f6   : > { %v6571_v58 = vmax.f32 %v6499_v30, 0.0  ;;  %v5105_v27 = vrot.slane %v5091_v37, %v10239_v51  ;;  %v6929_v40 = vunpack.c.l.b16 %v7723_v25  ;;  %v6165_v52 = vmax.f32 %v6163_v56, %v6164_v45 }
 0x4f7   : > { %v6227_v7 = vrot.slane %v6226_v29, 1  ;;  %v6245_v32 = vmax.f32 %v6243_v41, %v6244_v43  ;;  %v6572_v50 = vmax.f32 %v6500_v62, 0.0  ;;  %v6233_v16 = vmax.f32 %v6231_v54, %v6232_v23 }
 0x4f8   : > { %v11068_v48 = vpack.c.bf16 %v6570_v1, %v6570_v1  ;;  %v11070_v49 = vpack.c.bf16 %v6571_v58, %v6571_v58  ;;  %v5106_v53 = vcombine.high %v5098_v60, %v5098_v60  ;;  %v11073_v22 = vmax.f32 %v10972_v2, %v6115_v3 }
 0x4f9   : > { %v6228_v6 = vmax.f32 %v6226_v29, %v6227_v7  ;;  %v11076_v10 = vmax.f32 %v10977_v5, %v6122_v9  ;;  %v5107_v18 = vcombine.high %v5105_v27, %v5105_v27  ;;  %v11078_v14 = vmax.f32 %v6128_v42, %v6129_v63  ;;  %v11288_v42 = vld [vmem:[#allocation20_spill] sm:$0xff] }
 0x4fa   : > { %v11080_v17 = vrot.slane %v6929_v40, 5  ;;  %v6246_v59 = vrot.slane %v6245_v32, 2  ;;  %v11082_v19 = vpack.c.bf16 %v6572_v50, %v6572_v50  ;;  %v6234_v36 = vrot.slane %v6233_v16, 1 }
 0x4fb   : > { %v6423_v38 = vmax.f32 %v6165_v52, %v6228_v6  ;;  %v11085_v56 = vsel %vm428_vm0, %v5139_v61, -inf  ;;  %v6166_v11 = vsel %vm428_vm0, %v5098_v60, -inf  ;;  %v6930_v2 = vunpack.c.l.b16 %v11068_v48 }
 0x4fc   : > { %v6931_v5 = vunpack.c.l.b16 %v11070_v49  ;;  %v6167_v55 = vrot.slane %v6166_v11, 4  ;;  %v6173_v44 = vsel %vm428_vm0, %v5106_v53, -inf  ;;  %v6180_v21 = vsel %vm428_vm0, %v5105_v27, -inf }
 0x4fd   : > { %v6174_v31 = vrot.slane %v6173_v44, 4  ;;  %v6187_v47 = vsel %vm428_vm0, %v5107_v18, -inf  ;;  %v8729_v25 = vadd.f32 %v10776_v12, %v11288_v42  ;;  %v6247_v8 = vmax.f32 %v6245_v32, %v6246_v59 }
 0x4fe   : > { %v6168_v61 = vmax.f32 %v6166_v11, %v6167_v55  ;;  %v6181_v15 = vrot.slane %v6180_v21, 4  ;;  %v6188_v28 = vrot.slane %v6187_v47, 4  ;;  %v6235_v20 = vmax.f32 %v6233_v16, %v6234_v36 }
 0x4ff   : > { %v6175_v4 = vmax.f32 %v6173_v44, %v6174_v31  ;;  %v5176_v24 = vcombine.high %v8729_v25, %v8729_v25  ;;  %v5183_v45 = vrot.slane %v8729_v25, %v10239_v51  ;;  %v6501_v13 = vadd.f32 %v10882_v34, %v6423_v38 }
 0x500   : > { %v6169_v41 = vrot.slane %v6168_v61, 2  ;;  %v6182_v37 = vmax.f32 %v6180_v21, %v6181_v15  ;;  %v6189_v26 = vmax.f32 %v6187_v47, %v6188_v28  ;;  %v6248_v3 = vrot.slane %v6247_v8, 1 }
 0x501   : > { %v6176_v33 = vrot.slane %v6175_v4, 2  ;;  %v5190_v35 = vrot.slane %v5176_v24, %v10239_v51  ;;  %v5191_v54 = vcombine.high %v5183_v45, %v5183_v45  ;;  %v6306_v12 = vsel %vm428_vm0, %v5183_v45, -inf }
 0x502   : > { %v6170_v30 = vmax.f32 %v6168_v61, %v6169_v41  ;;  %v6183_v43 = vrot.slane %v6182_v37, 2  ;;  %v6190_v60 = vrot.slane %v6189_v26, 2  ;;  %v6307_v29 = vrot.slane %v6306_v12, 4 }
 0x503   : > { %v6177_v62 = vmax.f32 %v6175_v4, %v6176_v33  ;;  %v5192_v1 = vcombine.high %v5190_v35, %v5190_v35  ;;  %v6313_v23 = vsel %vm428_vm0, %v5191_v54, -inf  ;;  %v6573_v9 = vmax.f32 %v6501_v13, 0.0 }
 0x504   : > { %v6171_v63 = vrot.slane %v6170_v30, 1  ;;  %v6184_v58 = vmax.f32 %v6182_v37, %v6183_v43  ;;  %v6191_v27 = vmax.f32 %v6189_v26, %v6190_v60  ;;  %v6308_v52 = vmax.f32 %v6306_v12, %v6307_v29 }
 0x505   : > { %v6178_v40 = vrot.slane %v6177_v62, 1  ;;  %v6314_v7 = vrot.slane %v6313_v23, 4  ;;  %v6320_v32 = vsel %vm428_vm0, %v5190_v35, -inf  ;;  %v6327_v36 = vsel %vm428_vm0, %v5192_v1, -inf }
 0x506   : > { %v6172_v50 = vmax.f32 %v6170_v30, %v6171_v63  ;;  %v6185_v16 = vrot.slane %v6184_v58, 1  ;;  %v6192_v6 = vrot.slane %v6191_v27, 1  ;;  %v6321_v53 = vrot.slane %v6320_v32, 4  ;;  %v11289_v63 = vld [vmem:[#allocation21_spill] sm:$0xff] }
 0x507   : > { %v6179_v18 = vmax.f32 %v6177_v62, %v6178_v40  ;;  %v6309_v59 = vrot.slane %v6308_v52, 2  ;;  %v6315_v38 = vmax.f32 %v6313_v23, %v6314_v7  ;;  %v6328_v25 = vrot.slane %v6327_v36, 4 }
 0x508   : > { %v6186_v11 = vmax.f32 %v6184_v58, %v6185_v16  ;;  %v6193_v55 = vmax.f32 %v6191_v27, %v6192_v6  ;;  %v6424_v44 = vmax.f32 %v6172_v50, %v6235_v20  ;;  %v6322_v31 = vmax.f32 %v6320_v32, %v6321_v53  ;;  %v11290_v27 = vld [vmem:[#allocation22_spill] sm:$0xff] }
 0x509   : > { %v6416_v21 = vmax.f32 %v11073_v22, %v6179_v18  ;;  %v6310_v47 = vmax.f32 %v6308_v52, %v6309_v59  ;;  %v6316_v42 = vrot.slane %v6315_v38, 2  ;;  %v6932_v61 = vunpack.c.l.b16 %v11082_v19  ;;  %v7123_v19 = vld [vmem:[%s10385_s23 + $0x34] sm:$0x1]  ;;  %v11291_v52 = vld [vmem:[#allocation26_spill] sm:$0xff] }
 0x50a   : > { %v6417_v15 = vmax.f32 %v11076_v10, %v6186_v11  ;;  %v6418_v28 = vmax.f32 %v11078_v14, %v6193_v55  ;;  %v6502_v4 = vadd.f32 %v10882_v34, %v6424_v44  ;;  %v7727_v24 = vpack.c.bf16 %v6573_v9, %v6573_v9 }
 0x50b   : > { %v6494_v45 = vadd.f32 %v10882_v34, %v6416_v21  ;;  %v6311_v13 = vrot.slane %v6310_v47, 1  ;;  %v6323_v20 = vrot.slane %v6322_v31, 2  ;;  %v11110_v26 = vmax.f32 %v6247_v8, %v6248_v3 }
 0x50c   : > { %v6495_v41 = vadd.f32 %v10882_v34, %v6417_v15  ;;  %v6496_v22 = vadd.f32 %v10882_v34, %v6418_v28  ;;  %v6574_v37 = vmax.f32 %v6502_v4, 0.0  ;;  %v6317_v10 = vmax.f32 %v6315_v38, %v6316_v42 }
 0x50d   : > { %v6566_v33 = vmax.f32 %v6494_v45, 0.0  ;;  %v11113_v35 = vmax.f32 %v6310_v47, %v6311_v13  ;;  %v6329_v14 = vmax.f32 %v6327_v36, %v6328_v25  ;;  %v7041_v54 = vrot.slane %v6930_v2, 4 }
 0x50e   : > { %v6567_v12 = vmax.f32 %v6495_v41, 0.0  ;;  %v6568_v30 = vmax.f32 %v6496_v22, 0.0  ;;  %v7744_v43 = vpack.c.bf16 %v6574_v37, %v6574_v37  ;;  %v7043_v60 = vrot.slane %v6931_v5, 3 }
 0x50f   : > { %v6933_v34 = vunpack.c.l.b16 %v7727_v24  ;;  %v11119_v62 = vmax.f32 %v6322_v31, %v6323_v20  ;;  %v6426_v8 = vmax.f32 %v11110_v26, %v11113_v35  ;;  %v7720_v3 = vpack.c.bf16 %v6566_v33, %v6566_v33 }
 0x510   : > { %v7721_v1 = vpack.c.bf16 %v6567_v12, %v6567_v12  ;;  %v7722_v29 = vpack.c.bf16 %v6568_v30, %v6568_v30  ;;  %v7124_v23 = vsel %vm10391_vm4, %v7744_v43, %v7123_v19  ;;  %v7045_v48 = vrot.slane %v6932_v61, 2 }
 0x511   : > { %7125 = vst [vmem:[%s10385_s23 + $0x34] sm:$0x1] %v7124_v23  ;;  %v6318_v2 = vrot.slane %v6317_v10, 1  ;;  %v6330_v9 = vrot.slane %v6329_v14, 2  ;;  %v8730_v49 = vadd.f32 %v10795_v0, %v11289_v63  ;;  %v8731_v40 = vadd.f32 %v10830_v39, %v11290_v27 }
 0x512   : > { %v6927_v5 = vunpack.c.l.b16 %v7721_v1  ;;  %v6928_v58 = vunpack.c.l.b16 %v7722_v29  ;;  %v11132_v7 = vadd.f32 %v10859_v46, %v11291_v52  ;;  %v7047_v32 = vrot.slane %v6933_v34, 1 }
 0x513   : > { %v6325_v50 = vrot.slane %v11119_v62, 1  ;;  %v5142_v16 = vcombine.high %v8730_v49, %v8730_v49  ;;  %v5149_v6 = vrot.slane %v8730_v49, %v10239_v51  ;;  %v6926_v53 = vunpack.c.l.b16 %v7720_v3 }
 0x514   : > { %v7035_v18 = vrot.slane %v6927_v5, 7  ;;  %v7037_v59 = vrot.slane %v6928_v58, 6  ;;  %v5193_v38 = vcombine.high %v8731_v40, %v8731_v40  ;;  %v5200_v39 = vrot.slane %v8731_v40, %v10239_v51 }
 0x515   : > { %v5156_v0 = vrot.slane %v5142_v16, %v10239_v51  ;;  %v5157_v36 = vcombine.high %v5149_v6, %v5149_v6  ;;  %v6250_v11 = vsel %vm428_vm0, %v5149_v6, -inf  ;;  %v11140_v55 = vmax.f32 %v6317_v10, %v6318_v2 }
 0x516   : > { %v7036_v46 = vsel %vm6945_vm10, %v7035_v18, %v6926_v53  ;;  %v6331_v44 = vmax.f32 %v6329_v14, %v6330_v9  ;;  %v6251_v31 = vrot.slane %v6250_v11, 4  ;;  %v5207_v25 = vrot.slane %v5193_v38, %v10239_v51 }
 0x517   : > { %v7038_v21 = vsel %vm6948_vm11, %v7037_v59, %v7036_v46  ;;  %v5158_v47 = vcombine.high %v5156_v0, %v5156_v0  ;;  %v6257_v42 = vsel %vm428_vm0, %v5157_v36, -inf  ;;  %v6264_v4 = vsel %vm428_vm0, %v5156_v0, -inf }
 0x518   : > { %v7040_v61 = vsel %vm6951_vm12, %v11080_v17, %v7038_v21  ;;  %v6252_v15 = vmax.f32 %v6250_v11, %v6251_v31  ;;  %v6258_v28 = vrot.slane %v6257_v42, 4  ;;  %v6265_v45 = vrot.slane %v6264_v4, 4 }
 0x519   : > { %v7042_v24 = vsel %vm6954_vm13, %v7041_v54, %v7040_v61  ;;  %v6271_v13 = vsel %vm428_vm0, %v5158_v47, -inf  ;;  %v5208_v20 = vcombine.high %v5200_v39, %v5200_v39  ;;  %v5209_v17 = vcombine.high %v5207_v25, %v5207_v25 }
 0x51a   : > { %v7044_v41 = vsel %vm6957_vm14, %v7043_v60, %v7042_v24  ;;  %v6253_v22 = vrot.slane %v6252_v15, 2  ;;  %v6259_v37 = vmax.f32 %v6257_v42, %v6258_v28  ;;  %v6272_v33 = vrot.slane %v6271_v13, 4 }
 0x51b   : > { %v7046_v19 = vsel %vm6960_vm15, %v7045_v48, %v7044_v41  ;;  %v6266_v10 = vmax.f32 %v6264_v4, %v6265_v45  ;;  %v6334_v14 = vsel %vm428_vm0, %v5200_v39, -inf  ;;  %v6332_v3 = vrot.slane %v6331_v44, 1 }
 0x51c   : > { %v7048_v12 = vsel %vm6963_vm3, %v7047_v32, %v7046_v19  ;;  %v6254_v30 = vmax.f32 %v6252_v15, %v6253_v22  ;;  %v6260_v54 = vrot.slane %v6259_v37, 2  ;;  %v6273_v43 = vmax.f32 %v6271_v13, %v6272_v33 }
 0x51d   : > { %v7075_v34 = vpack.c.b16 %v7048_v12, %v7048_v12  ;;  %v6267_v1 = vrot.slane %v6266_v10, 2  ;;  %v6335_v29 = vrot.slane %v6334_v14, 4  ;;  %v6341_v9 = vsel %vm428_vm0, %v5208_v20, -inf }
 0x51e   : > { %v6255_v60 = vrot.slane %v6254_v30, 1  ;;  %v6261_v23 = vmax.f32 %v6259_v37, %v6260_v54  ;;  %v6274_v2 = vrot.slane %v6273_v43, 2  ;;  %v11157_v48 = vmax.f32 %v11119_v62, %v6325_v50 }
 0x51f   : > { %7122 = vst [vmem:[%s10385_s23 + $0x30] sm:$0xf] %v7075_v34  ;;  %v6268_v63 = vmax.f32 %v6266_v10, %v6267_v1  ;;  %v6336_v49 = vmax.f32 %v6334_v14, %v6335_v29  ;;  %v6348_v5 = vsel %vm428_vm0, %v5207_v25, -inf  ;;  %v6355_v52 = vsel %vm428_vm0, %v5209_v17, -inf }
 0x520   : > { %v11160_v58 = vmax.f32 %v6254_v30, %v6255_v60  ;;  %v6262_v27 = vrot.slane %v6261_v23, 1  ;;  %v6275_v40 = vmax.f32 %v6273_v43, %v6274_v2  ;;  %v11163_v32 = vmax.f32 %v6331_v44, %v6332_v3 }
 0x521   : > { %v6269_v16 = vrot.slane %v6268_v63, 1  ;;  %v6337_v6 = vrot.slane %v6336_v49, 2  ;;  %v6342_v53 = vrot.slane %v6341_v9, 4  ;;  %v6349_v50 = vrot.slane %v6348_v5, 4 }
 0x522   : > { %v6263_v18 = vmax.f32 %v6261_v23, %v6262_v27  ;;  %v6276_v59 = vrot.slane %v6275_v40, 1  ;;  %v6427_v62 = vmax.f32 %v11160_v58, %v11140_v55  ;;  %v6356_v36 = vrot.slane %v6355_v52, 4 }
 0x523   : > { %v6270_v38 = vmax.f32 %v6268_v63, %v6269_v16  ;;  %v6338_v0 = vmax.f32 %v6336_v49, %v6337_v6  ;;  %v6237_v11 = vrot.slane %v11085_v56, 4  ;;  %v6343_v21 = vmax.f32 %v6341_v9, %v6342_v53 }
 0x524   : > { %v6428_v39 = vmax.f32 %v6263_v18, %v11157_v48  ;;  %v6277_v44 = vmax.f32 %v6275_v40, %v6276_v59  ;;  %v6350_v47 = vmax.f32 %v6348_v5, %v6349_v50  ;;  %v5159_v42 = vcombine.high %v11132_v7, %v11132_v7  ;;  %v9181_v5 = vld [vmem:[%s11204_s3] ss:$0 sm:$0xff] }
 0x525   : > { %v6429_v46 = vmax.f32 %v6270_v38, %v11163_v32  ;;  %v6339_v31 = vrot.slane %v6338_v0, 1  ;;  %v6357_v61 = vmax.f32 %v6355_v52, %v6356_v36  ;;  %v6238_v55 = vmax.f32 %v11085_v56, %v6237_v11 }
 0x526   : > { %v5166_v15 = vrot.slane %v11132_v7, %v10239_v51  ;;  %v6344_v28 = vrot.slane %v6343_v21, 2  ;;  %v6351_v24 = vrot.slane %v6350_v47, 2  ;;  %v5173_v45 = vrot.slane %v5159_v42, %v10239_v51 }
 0x527   : > { %v6340_v25 = vmax.f32 %v6338_v0, %v6339_v31  ;;  %v6358_v20 = vrot.slane %v6357_v61, 2  ;;  %v6239_v41 = vrot.slane %v6238_v55, 2  ;;  %v6504_v58 = vadd.f32 %v9181_v5, %v6426_v8 }
 0x528   : > { %v5174_v13 = vcombine.high %v5166_v15, %v5166_v15  ;;  %v5175_v22 = vcombine.high %v5173_v45, %v5173_v45  ;;  %v6278_v37 = vsel %vm428_vm0, %v5166_v15, -inf  ;;  %v6345_v33 = vmax.f32 %v6343_v21, %v6344_v28 }
 0x529   : > { %v6430_v4 = vmax.f32 %v6277_v44, %v6340_v25  ;;  %v6279_v19 = vrot.slane %v6278_v37, 4  ;;  %v6352_v17 = vmax.f32 %v6350_v47, %v6351_v24  ;;  %v6292_v14 = vsel %vm428_vm0, %v5173_v45, -inf }
 0x52a   : > { %v6285_v10 = vsel %vm428_vm0, %v5174_v13, -inf  ;;  %v6299_v7 = vsel %vm428_vm0, %v5175_v22, -inf  ;;  %v6359_v12 = vmax.f32 %v6357_v61, %v6358_v20  ;;  %v6293_v54 = vrot.slane %v6292_v14, 4 }
 0x52b   : > { %v6286_v56 = vrot.slane %v6285_v10, 4  ;;  %v6280_v30 = vmax.f32 %v6278_v37, %v6279_v19  ;;  %v6240_v51 = vmax.f32 %v6238_v55, %v6239_v41  ;;  %v6300_v34 = vrot.slane %v6299_v7, 4 }
 0x52c   : > { %v6346_v3 = vrot.slane %v6345_v33, 1  ;;  %v6294_v29 = vmax.f32 %v6292_v14, %v6293_v54  ;;  %v6353_v60 = vrot.slane %v6352_v17, 1  ;;  %v6360_v9 = vrot.slane %v6359_v12, 1  ;;  %v7127_v14 = vld [vmem:[%s10385_s23 + $0x3c] sm:$0x1] }
 0x52d   : > { %v6287_v43 = vmax.f32 %v6285_v10, %v6286_v56  ;;  %v6281_v1 = vrot.slane %v6280_v30, 2  ;;  %v6301_v2 = vmax.f32 %v6299_v7, %v6300_v34  ;;  %v6241_v49 = vrot.slane %v6240_v51, 1 }
 0x52e   : > { %v6295_v63 = vrot.slane %v6294_v29, 2  ;;  %v6505_v52 = vadd.f32 %v9181_v5, %v6427_v62  ;;  %v6347_v32 = vmax.f32 %v6345_v33, %v6346_v3  ;;  %v6506_v53 = vadd.f32 %v9181_v5, %v6428_v39 }
 0x52f   : > { %v6288_v23 = vrot.slane %v6287_v43, 2  ;;  %v6282_v48 = vmax.f32 %v6280_v30, %v6281_v1  ;;  %v6302_v40 = vrot.slane %v6301_v2, 2  ;;  %v6354_v18 = vmax.f32 %v6352_v17, %v6353_v60 }
 0x530   : > { %v6296_v6 = vmax.f32 %v6294_v29, %v6295_v63  ;;  %v6507_v38 = vadd.f32 %v9181_v5, %v6429_v46  ;;  %v6361_v0 = vmax.f32 %v6359_v12, %v6360_v9  ;;  %v6576_v44 = vmax.f32 %v6504_v58, 0.0 }
 0x531   : > { %v6289_v27 = vmax.f32 %v6287_v43, %v6288_v23  ;;  %v6283_v16 = vrot.slane %v6282_v48, 1  ;;  %v6303_v50 = vmax.f32 %v6301_v2, %v6302_v40  ;;  %v6508_v31 = vadd.f32 %v9181_v5, %v6430_v4 }
 0x532   : > { %v6297_v11 = vrot.slane %v6296_v6, 1  ;;  %v6577_v26 = vmax.f32 %v6505_v52, 0.0  ;;  %v6242_v42 = vmax.f32 %v6240_v51, %v6241_v49  ;;  %v6578_v62 = vmax.f32 %v6506_v53, 0.0 }
 0x533   : > { %v6290_v59 = vrot.slane %v6289_v27, 1  ;;  %v6284_v36 = vmax.f32 %v6282_v48, %v6283_v16  ;;  %v6304_v47 = vrot.slane %v6303_v50, 1  ;;  %v6579_v55 = vmax.f32 %v6507_v38, 0.0 }
 0x534   : > { %v6298_v35 = vmax.f32 %v6296_v6, %v6297_v11  ;;  %v7730_v28 = vpack.c.bf16 %v6576_v44, %v6576_v44  ;;  %v6580_v46 = vmax.f32 %v6508_v31, 0.0  ;;  %v7731_v13 = vpack.c.bf16 %v6577_v26, %v6577_v26 }
 0x535   : > { %v6291_v21 = vmax.f32 %v6289_v27, %v6290_v59  ;;  %v6431_v8 = vmax.f32 %v6284_v36, %v6347_v32  ;;  %v6305_v25 = vmax.f32 %v6303_v50, %v6304_v47  ;;  %v7732_v41 = vpack.c.bf16 %v6578_v62, %v6578_v62 }
 0x536   : > { %v6433_v39 = vmax.f32 %v6298_v35, %v6361_v0  ;;  %v7733_v33 = vpack.c.bf16 %v6579_v55, %v6579_v55  ;;  %v6936_v10 = vunpack.c.l.b16 %v7730_v28  ;;  %v7734_v17 = vpack.c.bf16 %v6580_v46, %v6580_v46 }
 0x537   : > { %v6432_v61 = vmax.f32 %v6291_v21, %v6354_v18  ;;  %v6509_v15 = vadd.f32 %v9181_v5, %v6431_v8  ;;  %v6425_v24 = vmax.f32 %v6242_v42, %v6305_v25  ;;  %v6937_v7 = vunpack.c.l.b16 %v7731_v13 }
 0x538   : > { %v6511_v20 = vadd.f32 %v9181_v5, %v6433_v39  ;;  %v6938_v54 = vunpack.c.l.b16 %v7732_v41  ;;  %v6939_v34 = vunpack.c.l.b16 %v7733_v33  ;;  %v7049_v1 = vrot.slane %v6936_v10, 7 }
 0x539   : > { %v6510_v45 = vadd.f32 %v9181_v5, %v6432_v61  ;;  %v6581_v4 = vmax.f32 %v6509_v15, 0.0  ;;  %v6503_v22 = vadd.f32 %v9181_v5, %v6425_v24  ;;  %v6940_v29 = vunpack.c.l.b16 %v7734_v17 }
 0x53a   : > { %v6583_v19 = vmax.f32 %v6511_v20, 0.0  ;;  %v7051_v23 = vrot.slane %v6937_v7, 6  ;;  %v7053_v9 = vrot.slane %v6938_v54, 5  ;;  %v7055_v49 = vrot.slane %v6939_v34, 4 }
 0x53b   : > { %v6582_v37 = vmax.f32 %v6510_v45, 0.0  ;;  %v6575_v56 = vmax.f32 %v6503_v22, 0.0  ;;  %v7735_v12 = vpack.c.bf16 %v6581_v4, %v6581_v4  ;;  %v7057_v58 = vrot.slane %v6940_v29, 3 }
 0x53c   : > { %v7745_v30 = vpack.c.bf16 %v6583_v19, %v6583_v19 }
 0x53d   : > { %v7729_v51 = vpack.c.bf16 %v6575_v56, %v6575_v56  ;;  %v7736_v43 = vpack.c.bf16 %v6582_v37, %v6582_v37  ;;  %v6941_v2 = vunpack.c.l.b16 %v7735_v12 }
 0x53e   : > { %v7128_v3 = vsel %vm10391_vm4, %v7745_v30, %v7127_v14 }
 0x53f   : > { %v6935_v60 = vunpack.c.l.b16 %v7729_v51  ;;  %7129 = vst [vmem:[%s10385_s23 + $0x3c] sm:$0x1] %v7128_v3  ;;  %v6942_v48 = vunpack.c.l.b16 %v7736_v43  ;;  %v7059_v40 = vrot.slane %v6941_v2, 2 }
 0x541   : > { %v7050_v63 = vsel %vm6945_vm10, %v7049_v1, %v6935_v60  ;;  %v7061_v32 = vrot.slane %v6942_v48, 1 }
 0x542   : > { %v7052_v5 = vsel %vm6948_vm11, %v7051_v23, %v7050_v63 }
 0x543   : > { %v7054_v27 = vsel %vm6951_vm12, %v7053_v9, %v7052_v5 }
 0x544   : > { %v7056_v57 = vsel %vm6954_vm13, %v7055_v49, %v7054_v27 }
 0x545   : > { %v7058_v52 = vsel %vm6957_vm14, %v7057_v58, %v7056_v57 }
 0x546   : > { %v7060_v16 = vsel %vm6960_vm15, %v7059_v40, %v7058_v52 }
 0x547   : > { %v7062_v6 = vsel %vm6963_vm3, %v7061_v32, %v7060_v16 }
 0x548   : > { %v7077_v53 = vpack.c.b16 %v7062_v6, %v7062_v6 }
 0x54a   : > { %7126 = vst [vmem:[%s10385_s23 + $0x38] sm:$0xf] %v7077_v53 }
 0x54b PF: > { %s14_s15 = sadd.s32 1, %s9188_s15  }
 0x54c   : > { %p11_p4 = scmp.ge.s32.totalorder %s14_s15, 4  }
 0x54e   :  { %13 = sbr.rel (!%p11_p4) target bundleno = 1 (0x1), region = 74 }

</bundles_post_ra>
